<compile_context>
chip_gen: v6e
topology: v6e:2x2x1
jax: 0.10.0
libtpu: 0.0.40
codegen_flags: <defaults>
</compile_context>

<pallas_src>
import jax
import jax.numpy as jnp
from jax.experimental import pallas as pl
from jax.experimental.pallas import tpu as pltpu


def _rcab_kernel(x_ref, sdn_ref, sup_ref, w1_ref, b1_ref, w2_hbm, b2_ref,
                 wd_ref, bd_ref, wu_ref, bu_ref, pool_ref, sel_ref, selt_ref,
                 o_ref, w2_buf, w2_sem):
  # x_ref   : (Bt, H, W*C) f32   lane-dense input rows (Bt fused batch images)
  # sdn/sup : (M, M) bf16        block-diag row shifts: (sdn@a)[r]=a[r-1] within
  #                              each image (zero rows at H boundaries = SAME pad)
  # w1/w2   : (3*W*C, W*C) bf16  K-concatenated banded conv weights
  # b1/b2   : (1, W*C) f32       conv biases pre-tiled over W
  # wd/bd   : (C, Cr), (1, Cr)   channel-attention "down" 1x1 conv (f32)
  # wu/bu   : (Cr, C), (1, C)    channel-attention "up"   1x1 conv (f32)
  # pool    : (Bt, M) f32        per-image row pooling with 1/(H*W) folded in
  # sel     : (W*C, C) f32       channel-pool selector; selt: (C, W*C) transpose
  # o_ref   : (Bt, H, W*C) f32
  Bt, H, WC = o_ref.shape
  M = Bt * H

  # Kick off the second conv's banded-weight DMA right away so it overlaps
  # conv1's MXU work (hides ~1.5 MiB of HBM fetch on v5e/v6e).
  w2_copy = pltpu.make_async_copy(w2_hbm, w2_buf, w2_sem)
  w2_copy.start()

  sdn = sdn_ref[...]
  sup = sup_ref[...]

  def conv3x3(a_bf, w_cat, b_row):
    # a_bf: (M, WC) bf16; w_cat: (3*WC, WC) bf16 (vertical taps dh=0,1,2 stacked).
    a_dn = jnp.dot(sdn, a_bf,
                   preferred_element_type=jnp.float32).astype(jnp.bfloat16)
    a_up = jnp.dot(sup, a_bf,
                   preferred_element_type=jnp.float32).astype(jnp.bfloat16)
    lhs = jnp.concatenate([a_dn, a_bf, a_up], axis=1)          # (M, 3*WC)
    return jnp.dot(lhs, w_cat, preferred_element_type=jnp.float32) + b_row

  # ---- body: conv -> ReLU -> conv --------------------------------------------
  xb = x_ref[...].reshape(M, WC).astype(jnp.bfloat16)
  h1 = jnp.maximum(conv3x3(xb, w1_ref[...], b1_ref[...]), 0.0)

  w2_copy.wait()
  h2 = conv3x3(h1.astype(jnp.bfloat16), w2_buf[...], b2_ref[...])   # (M, WC) f32

  # ---- CALayer: per-image squeeze-excite over channels (f32) -----------------
  pooled = jnp.dot(
      jnp.dot(pool_ref[...], h2, preferred_element_type=jnp.float32),
      sel_ref[...], preferred_element_type=jnp.float32)             # (Bt, C)
  y = jnp.maximum(
      jnp.dot(pooled, wd_ref[...], preferred_element_type=jnp.float32)
      + bd_ref[...], 0.0)                                            # (Bt, Cr)
  scale = jax.nn.sigmoid(
      jnp.dot(y, wu_ref[...], preferred_element_type=jnp.float32)
      + bu_ref[...])                                                 # (Bt, C)
  scale_row = jnp.dot(scale, selt_ref[...],
                      preferred_element_type=jnp.float32)            # (Bt, WC)

  # ---- channel scale + residual add (x re-read here, lane-dense store) -------
  o_ref[...] = h2.reshape(Bt, H, WC) * scale_row[:, None, :] + x_ref[...]


def _pick_bt(batch, height, target_rows=256):
  """Largest divisor of `batch` such that Bt*height <= target_rows (>= 1)."""
  bt = 1
  for cand in range(1, batch + 1):
    if batch % cand == 0 and cand * height <= target_rows:
      bt = cand
  return bt


def make_rcab_params(w1, b1, w2, b2, wd, bd, wu, bu, *, B, H, W):
  """Build every grid-invariant kernel operand ONCE (hoisted out of forward)."""
  C = w1.shape[2]
  Cr = wd.shape[1]
  WC = W * C
  Bt = _pick_bt(B, H)

  # Fold the 3 horizontal taps + SAME zero padding along W into banded (WC, WC)
  # matrices (one per vertical tap dh), then stack the three vertical taps along
  # K so each conv is a single (M, 3*WC) @ (3*WC, WC) MXU call.
  def banded_cat(w_hwio):
    mats = []
    for dh in range(3):
      m = sum(jnp.kron(jnp.eye(W, k=1 - dw, dtype=jnp.float32),
                       w_hwio[dh, dw].astype(jnp.float32))
              for dw in range(3))
      mats.append(m)
    return jnp.concatenate(mats, axis=0).astype(jnp.bfloat16)   # (3*WC, WC)

  eye_bt = jnp.eye(Bt, dtype=jnp.float32)
  eye_c = jnp.eye(C, dtype=jnp.float32)
  params = dict(
      w1cat=banded_cat(w1),
      w2cat=banded_cat(w2),
      # Block-diagonal row-shift matrices (zero rows at each image's H edges).
      sdn=jnp.kron(eye_bt, jnp.eye(H, k=-1, dtype=jnp.float32)).astype(jnp.bfloat16),
      sup=jnp.kron(eye_bt, jnp.eye(H, k=+1, dtype=jnp.float32)).astype(jnp.bfloat16),
      # Per-image row pooling with 1/(H*W) folded in.
      pool=jnp.kron(eye_bt, jnp.ones((1, H), jnp.float32)) / float(H * W),
      sel=jnp.tile(eye_c, (W, 1)),        # (WC, C)
      selt=jnp.tile(eye_c, (W, 1)).T,     # (C, WC)
      b1row=jnp.tile(b1.astype(jnp.float32), W).reshape(1, WC),
      b2row=jnp.tile(b2.astype(jnp.float32), W).reshape(1, WC),
      wd=wd.astype(jnp.float32),
      bd=bd.reshape(1, Cr).astype(jnp.float32),
      wu=wu.astype(jnp.float32),
      bu=bu.reshape(1, C).astype(jnp.float32),
  )
  return params


@jax.jit
def rcab_forward(x_nchw, params):
  """RCAB forward.  x_nchw: (B, C, H, W) f32 -> (B, C, H, W) f32."""
  B, C, H, W = x_nchw.shape
  WC = W * C
  Cr = params["wd"].shape[1]
  M = params["sdn"].shape[0]
  Bt = M // H

  # NCHW -> NHWC -> lane-dense rows (B, H, W*C).  (Kept NCHW at the boundary to
  # match the PyTorch module; in an NHWC end-to-end model these transposes fuse
  # away / disappear.)
  x_rows = jnp.transpose(x_nchw, (0, 2, 3, 1)).astype(jnp.float32).reshape(B, H, WC)

  def const(shape):
    nd = len(shape)
    # Grid-invariant input: single-buffered (no dead second VMEM copy).
    return pl.BlockSpec(shape, lambda b: (0,) * nd, pipeline_mode=pl.Buffered(1))

  out_rows = pl.pallas_call(
      _rcab_kernel,
      out_shape=jax.ShapeDtypeStruct((B, H, WC), jnp.float32),
      grid_spec=pltpu.PrefetchScalarGridSpec(
          num_scalar_prefetch=0,
          grid=(B // Bt,),
          in_specs=[
              pl.BlockSpec((Bt, H, WC), lambda b: (b, 0, 0)),   # x rows
              const((M, M)),                                    # sdn
              const((M, M)),                                    # sup
              const((3 * WC, WC)),                              # w1 banded (K-cat)
              const((1, WC)),                                   # b1 tiled
              pl.BlockSpec(memory_space=pl.ANY),                # w2 stays in HBM
              const((1, WC)),                                   # b2 tiled
              const((C, Cr)),                                   # wd
              const((1, Cr)),                                   # bd
              const((Cr, C)),                                   # wu
              const((1, C)),                                    # bu
              const((Bt, M)),                                   # pool
              const((WC, C)),                                   # sel
              const((C, WC)),                                   # selT
          ],
          out_specs=pl.BlockSpec((Bt, H, WC), lambda b: (b, 0, 0)),
          scratch_shapes=[
              pltpu.VMEM((3 * WC, WC), jnp.bfloat16),           # w2 landing buffer
              pltpu.SemaphoreType.DMA(()),
          ],
      ),
      compiler_params=pltpu.CompilerParams(
          dimension_semantics=("parallel",)),
  )(x_rows, params["sdn"], params["sup"], params["w1cat"], params["b1row"],
    params["w2cat"], params["b2row"], params["wd"], params["bd"],
    params["wu"], params["bu"], params["pool"], params["sel"], params["selt"])

  return jnp.transpose(out_rows.reshape(B, H, W, C), (0, 3, 1, 2))


def rcab_reference(x_nchw, w1, b1, w2, b2, wd, bd, wu, bu):
  """Pure-JAX f32 reference (mirrors the PyTorch module) for verification."""
  dn = ("NHWC", "HWIO", "NHWC")
  x = jnp.transpose(x_nchw, (0, 2, 3, 1)).astype(jnp.float32)
  h = jax.lax.conv_general_dilated(x, w1, (1, 1), "SAME",
                                   dimension_numbers=dn) + b1
  h = jax.nn.relu(h)
  h = jax.lax.conv_general_dilated(h, w2, (1, 1), "SAME",
                                   dimension_numbers=dn) + b2
  pooled = jnp.mean(h, axis=(1, 2), keepdims=True)            # (B,1,1,C)
  y = jax.nn.relu(jnp.einsum("bijc,cr->bijr", pooled, wd) + bd)
  s = jax.nn.sigmoid(jnp.einsum("bijr,rc->bijc", y, wu) + bu)
  out = h * s + x
  return jnp.transpose(out, (0, 3, 1, 2))


if __name__ == "__main__":
  # RCAB(conv=default_conv, n_feat=32, kernel_size=3, reduction=4, bias=True)
  B, C, H, W = 2, 32, 16, 16
  RED = 4
  CR = C // RED

  key = jax.random.PRNGKey(0)
  ks = jax.random.split(key, 9)
  x = jax.random.normal(ks[0], (B, C, H, W), dtype=jnp.float32)

  w1 = jax.random.normal(ks[1], (3, 3, C, C), dtype=jnp.float32) * 0.05
  b1 = jax.random.normal(ks[2], (C,), dtype=jnp.float32) * 0.05
  w2 = jax.random.normal(ks[3], (3, 3, C, C), dtype=jnp.float32) * 0.05
  b2 = jax.random.normal(ks[4], (C,), dtype=jnp.float32) * 0.05
  wd = jax.random.normal(ks[5], (C, CR), dtype=jnp.float32) * 0.1
  bd = jax.random.normal(ks[6], (CR,), dtype=jnp.float32) * 0.1
  wu = jax.random.normal(ks[7], (CR, C), dtype=jnp.float32) * 0.1
  bu = jax.random.normal(ks[8], (C,), dtype=jnp.float32) * 0.1

  # Grid-invariant operands built ONCE here (not inside the per-call forward).
  params = make_rcab_params(w1, b1, w2, b2, wd, bd, wu, bu, B=B, H=H, W=W)

  out = jax.block_until_ready(rcab_forward(x, params))
  ref = rcab_reference(x, w1, b1, w2, b2, wd, bd, wu, bu)

  assert out.shape == (B, C, H, W), out.shape
  # bf16 MXU operands (f32 accumulation) vs. the f32 reference -> relaxed tol.
  err = float(jnp.max(jnp.abs(out - ref)))
  assert err < 5e-2, err
  print("KERNEL_OK")
</pallas_src>

<mosaic_0001>
module attributes {stable_mosaic.version = 11 : i64} {
  func.func @_rcab_kernel(%arg0: i32, %arg1: memref<2x16x512xf32, #tpu.memory_space<vmem>>, %arg2: memref<32x32xbf16, #tpu.memory_space<vmem>>, %arg3: memref<32x32xbf16, #tpu.memory_space<vmem>>, %arg4: memref<1536x512xbf16, #tpu.memory_space<vmem>>, %arg5: memref<1x512xf32, #tpu.memory_space<vmem>>, %arg6: memref<1536x512xbf16, #tpu.memory_space<any>>, %arg7: memref<1x512xf32, #tpu.memory_space<vmem>>, %arg8: memref<32x8xf32, #tpu.memory_space<vmem>>, %arg9: memref<1x8xf32, #tpu.memory_space<vmem>>, %arg10: memref<8x32xf32, #tpu.memory_space<vmem>>, %arg11: memref<1x32xf32, #tpu.memory_space<vmem>>, %arg12: memref<2x32xf32, #tpu.memory_space<vmem>>, %arg13: memref<512x32xf32, #tpu.memory_space<vmem>>, %arg14: memref<32x512xf32, #tpu.memory_space<vmem>>, %arg15: memref<2x16x512xf32, #tpu.memory_space<vmem>>, %arg16: memref<1536x512xbf16, #tpu.memory_space<vmem>>, %arg17: memref<!tpu.dma_semaphore, #tpu.memory_space<semaphore_mem>>) attributes {dimension_semantics = [#tpu.dimension_semantics<parallel>], iteration_bounds = array<i64: 1>, scalar_prefetch = 0 : i64, scratch_operands = 2 : i64, tpu.core_type = #tpu.core_type<tc>, window_params = [{transform_indices = @transform_0, window_bounds = array<i64: 2, 16, 512>}, {pipeline_mode = #tpu.pipeline_mode<synchronous>, transform_indices = @transform_1, window_bounds = array<i64: 32, 32>}, {pipeline_mode = #tpu.pipeline_mode<synchronous>, transform_indices = @transform_2, window_bounds = array<i64: 32, 32>}, {pipeline_mode = #tpu.pipeline_mode<synchronous>, transform_indices = @transform_3, window_bounds = array<i64: 1536, 512>}, {pipeline_mode = #tpu.pipeline_mode<synchronous>, transform_indices = @transform_4, window_bounds = array<i64: 1, 512>}, {}, {pipeline_mode = #tpu.pipeline_mode<synchronous>, transform_indices = @transform_6, window_bounds = array<i64: 1, 512>}, {pipeline_mode = #tpu.pipeline_mode<synchronous>, transform_indices = @transform_7, window_bounds = array<i64: 32, 8>}, {pipeline_mode = #tpu.pipeline_mode<synchronous>, transform_indices = @transform_8, window_bounds = array<i64: 1, 8>}, {pipeline_mode = #tpu.pipeline_mode<synchronous>, transform_indices = @transform_9, window_bounds = array<i64: 8, 32>}, {pipeline_mode = #tpu.pipeline_mode<synchronous>, transform_indices = @transform_10, window_bounds = array<i64: 1, 32>}, {pipeline_mode = #tpu.pipeline_mode<synchronous>, transform_indices = @transform_11, window_bounds = array<i64: 2, 32>}, {pipeline_mode = #tpu.pipeline_mode<synchronous>, transform_indices = @transform_12, window_bounds = array<i64: 512, 32>}, {pipeline_mode = #tpu.pipeline_mode<synchronous>, transform_indices = @transform_13, window_bounds = array<i64: 32, 512>}, {transform_indices = @transform_14, window_bounds = array<i64: 2, 16, 512>}]} {
    tpu.enqueue_dma source(%arg6 : memref<1536x512xbf16, #tpu.memory_space<any>>) target(%arg16 : memref<1536x512xbf16, #tpu.memory_space<vmem>>) target_semaphore(%arg17 : memref<!tpu.dma_semaphore, #tpu.memory_space<semaphore_mem>>)
    %c0 = arith.constant 0 : index
    %c0_0 = arith.constant 0 : index
    %0 = vector.load %arg2[%c0, %c0_0] : memref<32x32xbf16, #tpu.memory_space<vmem>>, vector<32x32xbf16>
    %c0_1 = arith.constant 0 : index
    %c0_2 = arith.constant 0 : index
    %1 = vector.load %arg3[%c0_1, %c0_2] : memref<32x32xbf16, #tpu.memory_space<vmem>>, vector<32x32xbf16>
    %c0_3 = arith.constant 0 : index
    %c0_4 = arith.constant 0 : index
    %c0_5 = arith.constant 0 : index
    %2 = vector.load %arg1[%c0_3, %c0_4, %c0_5] : memref<2x16x512xf32, #tpu.memory_space<vmem>>, vector<2x16x512xf32>
    %3 = vector.shape_cast %2 : vector<2x16x512xf32> to vector<32x512xf32>
    %4 = arith.truncf %3 : vector<32x512xf32> to vector<32x512xbf16>
    %c0_6 = arith.constant 0 : index
    %c0_7 = arith.constant 0 : index
    %5 = vector.load %arg4[%c0_6, %c0_7] : memref<1536x512xbf16, #tpu.memory_space<vmem>>, vector<1536x512xbf16>
    %c0_8 = arith.constant 0 : index
    %c0_9 = arith.constant 0 : index
    %6 = vector.load %arg5[%c0_8, %c0_9] : memref<1x512xf32, #tpu.memory_space<vmem>>, vector<1x512xf32>
    %cst = arith.constant dense<0.000000e+00> : vector<32x512xf32>
    %7 = tpu.matmul %0, %4, %cst {dimension_numbers = #tpu.dot_dimension_numbers<[1], [0], [0], [1], [0, 0, 1, 1], [], []>} : vector<32x32xbf16>, vector<32x512xbf16>, vector<32x512xf32> -> vector<32x512xf32>
    %8 = arith.truncf %7 : vector<32x512xf32> to vector<32x512xbf16>
    %cst_10 = arith.constant dense<0.000000e+00> : vector<32x512xf32>
    %9 = tpu.matmul %1, %4, %cst_10 {dimension_numbers = #tpu.dot_dimension_numbers<[1], [0], [0], [1], [0, 0, 1, 1], [], []>} : vector<32x32xbf16>, vector<32x512xbf16>, vector<32x512xf32> -> vector<32x512xf32>
    %10 = arith.truncf %9 : vector<32x512xf32> to vector<32x512xbf16>
    %11 = tpu.concatenate %8, %4, %10 in 1 : vector<32x512xbf16>, vector<32x512xbf16>, vector<32x512xbf16> -> vector<32x1536xbf16>
    %cst_11 = arith.constant dense<0.000000e+00> : vector<32x512xf32>
    %12 = tpu.matmul %11, %5, %cst_11 {dimension_numbers = #tpu.dot_dimension_numbers<[1], [0], [0], [1], [0, 0, 1, 1], [], []>} : vector<32x1536xbf16>, vector<1536x512xbf16>, vector<32x512xf32> -> vector<32x512xf32>
    %13 = vector.broadcast %6 : vector<1x512xf32> to vector<32x512xf32>
    %14 = arith.addf %12, %13 : vector<32x512xf32>
    %cst_12 = arith.constant 0.000000e+00 : f32
    %15 = vector.broadcast %cst_12 : f32 to vector<32x512xf32>
    %16 = arith.maximumf %14, %15 : vector<32x512xf32>
    tpu.wait_dma2 semaphore(%arg17 : memref<!tpu.dma_semaphore, #tpu.memory_space<semaphore_mem>>) src(%arg6 : memref<1536x512xbf16, #tpu.memory_space<any>>) dst(%arg16 : memref<1536x512xbf16, #tpu.memory_space<vmem>>)
    %17 = arith.truncf %16 : vector<32x512xf32> to vector<32x512xbf16>
    %c0_13 = arith.constant 0 : index
    %c0_14 = arith.constant 0 : index
    %18 = vector.load %arg16[%c0_13, %c0_14] : memref<1536x512xbf16, #tpu.memory_space<vmem>>, vector<1536x512xbf16>
    %c0_15 = arith.constant 0 : index
    %c0_16 = arith.constant 0 : index
    %19 = vector.load %arg7[%c0_15, %c0_16] : memref<1x512xf32, #tpu.memory_space<vmem>>, vector<1x512xf32>
    %cst_17 = arith.constant dense<0.000000e+00> : vector<32x512xf32>
    %20 = tpu.matmul %0, %17, %cst_17 {dimension_numbers = #tpu.dot_dimension_numbers<[1], [0], [0], [1], [0, 0, 1, 1], [], []>} : vector<32x32xbf16>, vector<32x512xbf16>, vector<32x512xf32> -> vector<32x512xf32>
    %21 = arith.truncf %20 : vector<32x512xf32> to vector<32x512xbf16>
    %cst_18 = arith.constant dense<0.000000e+00> : vector<32x512xf32>
    %22 = tpu.matmul %1, %17, %cst_18 {dimension_numbers = #tpu.dot_dimension_numbers<[1], [0], [0], [1], [0, 0, 1, 1], [], []>} : vector<32x32xbf16>, vector<32x512xbf16>, vector<32x512xf32> -> vector<32x512xf32>
    %23 = arith.truncf %22 : vector<32x512xf32> to vector<32x512xbf16>
    %24 = tpu.concatenate %21, %17, %23 in 1 : vector<32x512xbf16>, vector<32x512xbf16>, vector<32x512xbf16> -> vector<32x1536xbf16>
    %cst_19 = arith.constant dense<0.000000e+00> : vector<32x512xf32>
    %25 = tpu.matmul %24, %18, %cst_19 {dimension_numbers = #tpu.dot_dimension_numbers<[1], [0], [0], [1], [0, 0, 1, 1], [], []>} : vector<32x1536xbf16>, vector<1536x512xbf16>, vector<32x512xf32> -> vector<32x512xf32>
    %26 = vector.broadcast %19 : vector<1x512xf32> to vector<32x512xf32>
    %27 = arith.addf %25, %26 : vector<32x512xf32>
    %c0_20 = arith.constant 0 : index
    %c0_21 = arith.constant 0 : index
    %28 = vector.load %arg12[%c0_20, %c0_21] : memref<2x32xf32, #tpu.memory_space<vmem>>, vector<2x32xf32>
    %cst_22 = arith.constant dense<0.000000e+00> : vector<2x512xf32>
    %29 = tpu.matmul %28, %27, %cst_22 {dimension_numbers = #tpu.dot_dimension_numbers<[1], [0], [0], [1], [0, 0, 1, 1], [], []>} : vector<2x32xf32>, vector<32x512xf32>, vector<2x512xf32> -> vector<2x512xf32>
    %c0_23 = arith.constant 0 : index
    %c0_24 = arith.constant 0 : index
    %30 = vector.load %arg13[%c0_23, %c0_24] : memref<512x32xf32, #tpu.memory_space<vmem>>, vector<512x32xf32>
    %cst_25 = arith.constant dense<0.000000e+00> : vector<2x32xf32>
    %31 = tpu.matmul %29, %30, %cst_25 {dimension_numbers = #tpu.dot_dimension_numbers<[1], [0], [0], [1], [0, 0, 1, 1], [], []>} : vector<2x512xf32>, vector<512x32xf32>, vector<2x32xf32> -> vector<2x32xf32>
    %c0_26 = arith.constant 0 : index
    %c0_27 = arith.constant 0 : index
    %32 = vector.load %arg8[%c0_26, %c0_27] : memref<32x8xf32, #tpu.memory_space<vmem>>, vector<32x8xf32>
    %cst_28 = arith.constant dense<0.000000e+00> : vector<2x8xf32>
    %33 = tpu.matmul %31, %32, %cst_28 {dimension_numbers = #tpu.dot_dimension_numbers<[1], [0], [0], [1], [0, 0, 1, 1], [], []>} : vector<2x32xf32>, vector<32x8xf32>, vector<2x8xf32> -> vector<2x8xf32>
    %c0_29 = arith.constant 0 : index
    %c0_30 = arith.constant 0 : index
    %34 = vector.load %arg9[%c0_29, %c0_30] : memref<1x8xf32, #tpu.memory_space<vmem>>, vector<1x8xf32>
    %35 = vector.broadcast %34 : vector<1x8xf32> to vector<2x8xf32>
    %36 = arith.addf %33, %35 : vector<2x8xf32>
    %cst_31 = arith.constant 0.000000e+00 : f32
    %37 = vector.broadcast %cst_31 : f32 to vector<2x8xf32>
    %38 = arith.maximumf %36, %37 : vector<2x8xf32>
    %c0_32 = arith.constant 0 : index
    %c0_33 = arith.constant 0 : index
    %39 = vector.load %arg10[%c0_32, %c0_33] : memref<8x32xf32, #tpu.memory_space<vmem>>, vector<8x32xf32>
    %cst_34 = arith.constant dense<0.000000e+00> : vector<2x32xf32>
    %40 = tpu.matmul %38, %39, %cst_34 {dimension_numbers = #tpu.dot_dimension_numbers<[1], [0], [0], [1], [0, 0, 1, 1], [], []>} : vector<2x8xf32>, vector<8x32xf32>, vector<2x32xf32> -> vector<2x32xf32>
    %c0_35 = arith.constant 0 : index
    %c0_36 = arith.constant 0 : index
    %41 = vector.load %arg11[%c0_35, %c0_36] : memref<1x32xf32, #tpu.memory_space<vmem>>, vector<1x32xf32>
    %42 = vector.broadcast %41 : vector<1x32xf32> to vector<2x32xf32>
    %43 = arith.addf %40, %42 : vector<2x32xf32>
    %44 = arith.negf %43 : vector<2x32xf32>
    %45 = math.exp %44 : vector<2x32xf32>
    %cst_37 = arith.constant 1.000000e+00 : f32
    %46 = vector.broadcast %cst_37 : f32 to vector<2x32xf32>
    %47 = arith.addf %46, %45 : vector<2x32xf32>
    %48 = arith.divf %46, %47 : vector<2x32xf32>
    %c0_38 = arith.constant 0 : index
    %c0_39 = arith.constant 0 : index
    %49 = vector.load %arg14[%c0_38, %c0_39] : memref<32x512xf32, #tpu.memory_space<vmem>>, vector<32x512xf32>
    %cst_40 = arith.constant dense<0.000000e+00> : vector<2x512xf32>
    %50 = tpu.matmul %48, %49, %cst_40 {dimension_numbers = #tpu.dot_dimension_numbers<[1], [0], [0], [1], [0, 0, 1, 1], [], []>} : vector<2x32xf32>, vector<32x512xf32>, vector<2x512xf32> -> vector<2x512xf32>
    %51 = vector.shape_cast %27 : vector<32x512xf32> to vector<2x16x512xf32>
    %52 = vector.shape_cast %50 : vector<2x512xf32> to vector<2x1x512xf32>
    %53 = vector.broadcast %52 : vector<2x1x512xf32> to vector<2x16x512xf32>
    %54 = arith.mulf %51, %53 : vector<2x16x512xf32>
    %c0_41 = arith.constant 0 : index
    %c0_42 = arith.constant 0 : index
    %c0_43 = arith.constant 0 : index
    %55 = vector.load %arg1[%c0_41, %c0_42, %c0_43] : memref<2x16x512xf32, #tpu.memory_space<vmem>>, vector<2x16x512xf32>
    %56 = arith.addf %54, %55 : vector<2x16x512xf32>
    %c0_44 = arith.constant 0 : index
    %c0_45 = arith.constant 0 : index
    %c0_46 = arith.constant 0 : index
    %57 = vector.load %arg15[%c0_44, %c0_45, %c0_46] : memref<2x16x512xf32, #tpu.memory_space<vmem>>, vector<2x16x512xf32>
    tpu.vector_store %arg15[%c0_44, %c0_45, %c0_46], %56 {strides = array<i32>} : memref<2x16x512xf32, #tpu.memory_space<vmem>>, vector<2x16x512xf32>,
    return
  }
  func.func @transform_0(%arg0: i32) -> (i32, i32, i32) {
    %c0_i32 = arith.constant 0 : i32
    %c0_i32_0 = arith.constant 0 : i32
    %c0_i32_1 = arith.constant 0 : i32
    return %arg0, %c0_i32, %c0_i32_0 : i32, i32, i32
  }
  func.func @transform_1(%arg0: i32) -> (i32, i32) {
    %c0_i32 = arith.constant 0 : i32
    %c0_i32_0 = arith.constant 0 : i32
    %c0_i32_1 = arith.constant 0 : i32
    return %c0_i32, %c0_i32_0 : i32, i32
  }
  func.func @transform_2(%arg0: i32) -> (i32, i32) {
    %c0_i32 = arith.constant 0 : i32
    %c0_i32_0 = arith.constant 0 : i32
    %c0_i32_1 = arith.constant 0 : i32
    return %c0_i32, %c0_i32_0 : i32, i32
  }
  func.func @transform_3(%arg0: i32) -> (i32, i32) {
    %c0_i32 = arith.constant 0 : i32
    %c0_i32_0 = arith.constant 0 : i32
    %c0_i32_1 = arith.constant 0 : i32
    return %c0_i32, %c0_i32_0 : i32, i32
  }
  func.func @transform_4(%arg0: i32) -> (i32, i32) {
    %c0_i32 = arith.constant 0 : i32
    %c0_i32_0 = arith.constant 0 : i32
    %c0_i32_1 = arith.constant 0 : i32
    return %c0_i32, %c0_i32_0 : i32, i32
  }
  func.func @transform_6(%arg0: i32) -> (i32, i32) {
    %c0_i32 = arith.constant 0 : i32
    %c0_i32_0 = arith.constant 0 : i32
    %c0_i32_1 = arith.constant 0 : i32
    return %c0_i32, %c0_i32_0 : i32, i32
  }
  func.func @transform_7(%arg0: i32) -> (i32, i32) {
    %c0_i32 = arith.constant 0 : i32
    %c0_i32_0 = arith.constant 0 : i32
    %c0_i32_1 = arith.constant 0 : i32
    return %c0_i32, %c0_i32_0 : i32, i32
  }
  func.func @transform_8(%arg0: i32) -> (i32, i32) {
    %c0_i32 = arith.constant 0 : i32
    %c0_i32_0 = arith.constant 0 : i32
    %c0_i32_1 = arith.constant 0 : i32
    return %c0_i32, %c0_i32_0 : i32, i32
  }
  func.func @transform_9(%arg0: i32) -> (i32, i32) {
    %c0_i32 = arith.constant 0 : i32
    %c0_i32_0 = arith.constant 0 : i32
    %c0_i32_1 = arith.constant 0 : i32
    return %c0_i32, %c0_i32_0 : i32, i32
  }
  func.func @transform_10(%arg0: i32) -> (i32, i32) {
    %c0_i32 = arith.constant 0 : i32
    %c0_i32_0 = arith.constant 0 : i32
    %c0_i32_1 = arith.constant 0 : i32
    return %c0_i32, %c0_i32_0 : i32, i32
  }
  func.func @transform_11(%arg0: i32) -> (i32, i32) {
    %c0_i32 = arith.constant 0 : i32
    %c0_i32_0 = arith.constant 0 : i32
    %c0_i32_1 = arith.constant 0 : i32
    return %c0_i32, %c0_i32_0 : i32, i32
  }
  func.func @transform_12(%arg0: i32) -> (i32, i32) {
    %c0_i32 = arith.constant 0 : i32
    %c0_i32_0 = arith.constant 0 : i32
    %c0_i32_1 = arith.constant 0 : i32
    return %c0_i32, %c0_i32_0 : i32, i32
  }
  func.func @transform_13(%arg0: i32) -> (i32, i32) {
    %c0_i32 = arith.constant 0 : i32
    %c0_i32_0 = arith.constant 0 : i32
    %c0_i32_1 = arith.constant 0 : i32
    return %c0_i32, %c0_i32_0 : i32, i32
  }
  func.func @transform_14(%arg0: i32) -> (i32, i32, i32) {
    %c0_i32 = arith.constant 0 : i32
    %c0_i32_0 = arith.constant 0 : i32
    %c0_i32_1 = arith.constant 0 : i32
    return %arg0, %c0_i32, %c0_i32_0 : i32, i32, i32
  }
}

</mosaic_0001>

<bundles_post_ra>
// kernel: rcab_forward.1
= control target key start
LH: loop header
LB: loop body
LE: loop exit
PB: predicated region body
PF: predicated region fallthrough
CT: control target
= control target key end

     0   :  { %19 = vsyncpa [#allocation5], 0  ;;  %s10910_s0 = inlined_call_operand.vmem [shape: f32[2,16,512], index: 0, kind: input, shape index: {}]   ;;  %s10911_s1 = inlined_call_operand.hbm [shape: bf16[32,32], index: 1, kind: input, shape index: {}]   ;;  %s10912_s2 = inlined_call_operand.hbm [shape: bf16[32,32], index: 2, kind: input, shape index: {}]   ;;  %s10913_s3 = inlined_call_operand.hbm [shape: bf16[1536,512], index: 3, kind: input, shape index: {}]   ;;  %s10914_s4 = inlined_call_operand.hbm [shape: f32[1,512], index: 4, kind: input, shape index: {}]   ;;  %s10915_s5 = inlined_call_operand.hbm [shape: bf16[1536,512], index: 5, kind: input, shape index: {}]   ;;  %s10916_s6 = inlined_call_operand.hbm [shape: f32[1,512], index: 6, kind: input, shape index: {}]   ;;  %s10917_s7 = inlined_call_operand.vmem [shape: f32[32,8], index: 7, kind: input, shape index: {}]   ;;  %s10918_s8 = inlined_call_operand.hbm [shape: f32[1,8], index: 8, kind: input, shape index: {}]   ;;  %s10919_s9 = inlined_call_operand.hbm [shape: f32[8,32], index: 9, kind: input, shape index: {}]   ;;  %s10920_s10 = inlined_call_operand.hbm [shape: f32[1,32], index: 10, kind: input, shape index: {}]   ;;  %s10921_s11 = inlined_call_operand.hbm [shape: f32[2,32], index: 11, kind: input, shape index: {}]   ;;  %s10922_s12 = inlined_call_operand.vmem [shape: f32[512,32], index: 12, kind: input, shape index: {}]   ;;  %s10923_s13 = inlined_call_operand.hbm [shape: f32[32,512], index: 13, kind: input, shape index: {}]   ;;  %s10924_s14 = inlined_call_operand.vmem [shape: f32[2,16,512], index: 14, kind: output, shape index: {}]  }
   0x1   :  { %20 = vsyncpa [#allocation7], 0 }
   0x2   :  { %21 = vsyncpa [#allocation10], 0 }
   0x3   :  { %22 = vsyncpa [#allocation13], 0 }
   0x4   :  { %23 = vsyncpa [#allocation16], 0 }
   0x5   :  { %24 = vsyncpa [#allocation19], 0  ;;  %s9800_s29 = smov [#allocation6]   ;;  %s9801_s15 = smov [#allocation9]  }
   0x6   :  { %s44_s30 = sshll.u32 %s9800_s29, 4  ;;  %s69_s16 = sshll.u32 %s9801_s15, 4  ;;  %s45_s30 = int_to_ptr.vmem [resolvable:$true] %s44_s30  ;;  %s70_s16 = int_to_ptr.vmem [resolvable:$true] %s69_s16 }
   0x7   :  { %s9574_s17 = scalar_lea.vmem %s45_s30, 256  ;;  %p9579_p1 = scmp.lt.s32.totalorder %s45_s30, %s45_s30 }
   0x8   :  { %p9575_p0 = scmp.ne.s32.totalorder %s45_s30, %s9574_s17  ;;  %p9580_p2 = scmp.lt.s32.totalorder %s9574_s17, %s9574_s17 }
   0xa   :  { %p9581_p3 = por %p9580_p2, %p9579_p1 }
   0xc   :  { %p9582_p4 = pnand %p9581_p3, %p9575_p0 }
   0xe   :  { %9585 = shalt.err (!%p9582_p4)
}
   0xf   :  { %s9802_s18 = smov 64   ;;  %s9803_s19 = smov 4  }
  0x10   :  { %50 = dma.hbm_to_vmem [thread:$0]  %s10912_s2, 256, %s45_s30, [#allocation7], %s9802_s18, %s9802_s18, %s9803_s19  }
  0x11   :  { %s9594_s22 = scalar_lea.vmem %s70_s16, 64  ;;  %p9599_p6 = scmp.lt.s32.totalorder %s70_s16, %s70_s16 }
  0x12   :  { %p9595_p5 = scmp.ne.s32.totalorder %s70_s16, %s9594_s22  ;;  %p9600_p7 = scmp.lt.s32.totalorder %s9594_s22, %s9594_s22 }
  0x14   :  { %p9601_p8 = por %p9600_p7, %p9599_p6 }
  0x16   :  { %p9602_p9 = pnand %p9601_p8, %p9595_p5 }
  0x18   :  { %9605 = shalt.err (!%p9602_p9)
}
  0x19   :  { %72 = dma.hbm_to_vmem [thread:$0]  %s10914_s4, 64, %s70_s16, [#allocation10]  }
  0x1a   :  { %s9804_s25 = smov [#allocation12]   ;;  %s9805_s27 = smov [#allocation15]  }
  0x1b   :  { %s91_s26 = sshll.u32 %s9804_s25, 4  ;;  %s111_s28 = sshll.u32 %s9805_s27, 4  ;;  %s92_s26 = int_to_ptr.vmem [resolvable:$true] %s91_s26  ;;  %s112_s28 = int_to_ptr.vmem [resolvable:$true] %s111_s28 }
  0x1c   :  { %s9614_s29 = scalar_lea.vmem %s92_s26, 16  ;;  %s9618_s2 = scalar_lea.vmem %s92_s26, 32 }
  0x1d   :  { %p9615_p10 = scmp.ne.s32.totalorder %s92_s26, %s9614_s29  ;;  %p9619_p11 = scmp.lt.s32.totalorder %s92_s26, %s92_s26 }
  0x1e   :  { %p9620_p12 = scmp.lt.s32.totalorder %s9618_s2, %s9614_s29 }
  0x20   :  { %p9621_p13 = por %p9620_p12, %p9619_p11 }
  0x22   :  { %p9622_p0 = pnand %p9621_p13, %p9615_p10 }
  0x24   :  { %9625 = shalt.err (!%p9622_p0)
}
  0x25   :  { %94 = dma.hbm_to_vmem [thread:$0]  %s10918_s8, 16, %s92_s26, [#allocation13]  }
  0x26   :  { %s9634_s17 = scalar_lea.vmem %s112_s28, 16  ;;  %s9638_s4 = scalar_lea.vmem %s112_s28, 32 }
  0x27   :  { %p9635_p1 = scmp.ne.s32.totalorder %s112_s28, %s9634_s17  ;;  %p9639_p2 = scmp.lt.s32.totalorder %s112_s28, %s112_s28 }
  0x28   :  { %p9640_p3 = scmp.lt.s32.totalorder %s9638_s4, %s9634_s17 }
  0x2a   :  { %p9641_p4 = por %p9640_p3, %p9639_p2 }
  0x2c   :  { %p9642_p5 = pnand %p9641_p4, %p9635_p1 }
  0x2e   :  { %9645 = shalt.err (!%p9642_p5)
}
  0x2f   :  { %114 = dma.hbm_to_vmem [thread:$0]  %s10920_s10, 16, %s112_s28, [#allocation16]  }
  0x30   :  { %s9806_s21 = smov [#allocation4]   ;;  %s9807_s23 = smov [#allocation8]  }
  0x31   :  { %s32_s22 = sshll.u32 %s9806_s21, 4  ;;  %s56_s24 = sshll.u32 %s9807_s23, 4  ;;  %s33_s22 = int_to_ptr.vmem [resolvable:$true] %s32_s22  ;;  %s57_s24 = int_to_ptr.vmem [resolvable:$true] %s56_s24 }
  0x32   :  { %s9654_s25 = scalar_lea.vmem %s33_s22, 256  ;;  %p9659_p7 = scmp.lt.s32.totalorder %s33_s22, %s33_s22 }
  0x33   :  { %p9655_p6 = scmp.ne.s32.totalorder %s33_s22, %s9654_s25  ;;  %p9660_p8 = scmp.lt.s32.totalorder %s9654_s25, %s9654_s25 }
  0x35   :  { %p9661_p9 = por %p9660_p8, %p9659_p7 }
  0x37   :  { %p9662_p10 = pnand %p9661_p9, %p9655_p6 }
  0x39   :  { %9665 = shalt.err (!%p9662_p10)
}
  0x3a   :  { %38 = dma.hbm_to_vmem [thread:$0]  %s10911_s1, 256, %s33_s22, [#allocation5], %s9802_s18, %s9802_s18, %s9803_s19  }
  0x3b   :  { %s9674_s10 = scalar_lea.vmem %s57_s24, 49152  ;;  %p9679_p12 = scmp.lt.s32.totalorder %s57_s24, %s57_s24 }
  0x3c   :  { %p9675_p11 = scmp.ne.s32.totalorder %s57_s24, %s9674_s10  ;;  %p9680_p13 = scmp.lt.s32.totalorder %s9674_s10, %s9674_s10 }
  0x3e   :  { %p9681_p0 = por %p9680_p13, %p9679_p12 }
  0x40   :  { %p9682_p1 = pnand %p9681_p0, %p9675_p11 }
  0x42   :  { %9685 = shalt.err (!%p9682_p1)
}
  0x43   :  { %s9808_s27 = smov 256   ;;  %s9809_s28 = smov 16  }
  0x44   :  { %62 = dma.hbm_to_vmem [thread:$0]  %s10913_s3, 49152, %s57_s24, [#allocation7], %s9808_s27, %s9808_s27, %s9809_s28  }
  0x45   :  { %s9810_s30 = smov [#allocation11]   ;;  %s9811_s17 = smov [#allocation14]  }
  0x46   :  { %s79_s15 = sshll.u32 %s9810_s30, 4  ;;  %s101_s4 = sshll.u32 %s9811_s17, 4  ;;  %s80_s15 = int_to_ptr.vmem [resolvable:$true] %s79_s15  ;;  %s102_s4 = int_to_ptr.vmem [resolvable:$true] %s101_s4 }
  0x47   :  { %s9694_s1 = scalar_lea.vmem %s80_s15, 64  ;;  %p9699_p3 = scmp.lt.s32.totalorder %s80_s15, %s80_s15 }
  0x48   :  { %p9695_p2 = scmp.ne.s32.totalorder %s80_s15, %s9694_s1  ;;  %p9700_p4 = scmp.lt.s32.totalorder %s9694_s1, %s9694_s1 }
  0x4a   :  { %p9701_p5 = por %p9700_p4, %p9699_p3 }
  0x4c   :  { %p9702_p6 = pnand %p9701_p5, %p9695_p2 }
  0x4e   :  { %9705 = shalt.err (!%p9702_p6)
}
  0x4f   :  { %82 = dma.hbm_to_vmem [thread:$0]  %s10916_s6, 64, %s80_s15, [#allocation10]  }
  0x50   :  { %s9714_s16 = scalar_lea.vmem %s102_s4, 128  ;;  %p9719_p8 = scmp.lt.s32.totalorder %s102_s4, %s102_s4 }
  0x51   :  { %p9715_p7 = scmp.ne.s32.totalorder %s102_s4, %s9714_s16  ;;  %p9720_p9 = scmp.lt.s32.totalorder %s9714_s16, %s9714_s16 }
  0x53   :  { %p9721_p10 = por %p9720_p9, %p9719_p8 }
  0x55   :  { %p9722_p11 = pnand %p9721_p10, %p9715_p7 }
  0x57   :  { %9725 = shalt.err (!%p9722_p11)
}
  0x58   :  { %104 = dma.hbm_to_vmem [thread:$0]  %s10919_s9, 128, %s102_s4, [#allocation13]  }
  0x59   :  { %s9812_s21 = smov [#allocation17]   ;;  %s9813_s23 = smov [#allocation18]  }
  0x5a   :  { %s121_s22 = sshll.u32 %s9812_s21, 4  ;;  %s132_s24 = sshll.u32 %s9813_s23, 4  ;;  %s122_s22 = int_to_ptr.vmem [resolvable:$true] %s121_s22  ;;  %s133_s24 = int_to_ptr.vmem [resolvable:$true] %s132_s24 }
  0x5b   :  { %s9734_s25 = scalar_lea.vmem %s122_s22, 32  ;;  %p9739_p13 = scmp.lt.s32.totalorder %s122_s22, %s122_s22 }
  0x5c   :  { %p9735_p12 = scmp.ne.s32.totalorder %s122_s22, %s9734_s25  ;;  %p9740_p0 = scmp.lt.s32.totalorder %s9734_s25, %s9734_s25 }
  0x5e   :  { %p9741_p1 = por %p9740_p0, %p9739_p13 }
  0x60   :  { %p9742_p2 = pnand %p9741_p1, %p9735_p12 }
  0x62   :  { %9745 = shalt.err (!%p9742_p2)
}
  0x63   :  { %124 = dma.hbm_to_vmem [thread:$0]  %s10921_s11, 32, %s122_s22, [#allocation16]  }
  0x64   :  { %s9754_s26 = scalar_lea.vmem %s133_s24, 2048  ;;  %p9759_p4 = scmp.lt.s32.totalorder %s133_s24, %s133_s24 }
  0x65   :  { %p9755_p3 = scmp.ne.s32.totalorder %s133_s24, %s9754_s26  ;;  %p9760_p5 = scmp.lt.s32.totalorder %s9754_s26, %s9754_s26 }
  0x67   :  { %p9761_p6 = por %p9760_p5, %p9759_p4 }
  0x69   :  { %p9762_p7 = pnand %p9761_p6, %p9755_p3 }
  0x6b   :  { %9765 = shalt.err (!%p9762_p7)
}
  0x6c   :  { %s9814_s9 = smov 512   ;;  %s9815_s10 = smov 32  }
  0x6d   :  { %138 = dma.hbm_to_vmem [thread:$0]  %s10923_s13, 2048, %s133_s24, [#allocation19], %s9814_s9, %s9814_s9, %s9815_s10  }
  0x6e   :  { %9786 = dma.done.wait [#allocation5], 256  }
  0x6f   :  { %9787 = vsyncadd [#allocation5], 4294967040 }
  0x70   :  { %9788 = dma.done.wait [#allocation7], 49408  }
  0x71   :  { %9789 = vsyncadd [#allocation7], 4294917888 }
  0x72   :  { %9790 = dma.done.wait [#allocation10], 128  }
  0x73   :  { %9791 = vsyncadd [#allocation10], 4294967168 }
  0x74   :  { %9792 = dma.done.wait [#allocation13], 144  }
  0x75   :  { %9793 = vsyncadd [#allocation13], 4294967152 }
  0x76   :  { %9794 = dma.done.wait [#allocation16], 48  }
  0x77   :  { %9795 = vsyncadd [#allocation16], 4294967248 }
  0x78   :  { %9796 = dma.done.wait [#allocation19], 2048  }
  0x79   :  { %9797 = vsyncadd [#allocation19], 4294965248  ;;  %v10925_v0 = vmov 0   ;;  %v198_v1 = vld [vmem:[%s10910_s0 + $0x48] sm:$0xff]  ;;  %v200_v3 = vld [vmem:[%s10910_s0 + $0x58] sm:$0xff]  ;;  %vm608_vm0 = vcmask 261120  }
  0x7a   :  { %647 = vmatprep.mubr.bf16.mxu0 %v10925_v0  ;;  %700 = vmatprep.mubr.bf16.mxu1 %v10925_v0  ;;  %v202_v2 = vld [vmem:[%s10910_s0 + $0x68] sm:$0xff]  ;;  %v204_v5 = vld [vmem:[%s10910_s0 + $0x78] sm:$0xff]  ;;  %v197_v6 = vld [vmem:[%s10910_s0 + $0x40] sm:$0xff]  ;;  %s9817_s17 = smov [#allocation2]  }
  0x7b   :  { %v9943_v4 = vpack.c.bf16 %v202_v2, %v198_v1  ;;  %v201_v7 = vld [vmem:[%s10910_s0 + $0x60] sm:$0xff]  ;;  %v9954_v8 = vpack.c.bf16 %v204_v5, %v200_v3  ;;  %v199_v10 = vld [vmem:[%s10910_s0 + $0x50] sm:$0xff]  ;;  %v190_v12 = vld [vmem:[%s10910_s0 + $0x8] sm:$0xff]  ;;  %s177_s4 = sshll.u32 %s9817_s17, 4  ;;  %s178_s4 = int_to_ptr.vmem [resolvable:$true] %s177_s4 }
  0x7c   :  { %v9956_v9 = vpack.c.bf16 %v201_v7, %v197_v6  ;;  %v203_v11 = vld [vmem:[%s10910_s0 + $0x70] sm:$0xff]  ;;  %v194_v14 = vld [vmem:[%s10910_s0 + $0x28] sm:$0xff]  ;;  %v192_v15 = vld [vmem:[%s10910_s0 + $0x18] sm:$0xff]  ;;  %s9774_s1 = scalar_lea.vmem %s178_s4, 49152  ;;  %p9779_p9 = scmp.lt.s32.totalorder %s178_s4, %s178_s4 }
  0x7d   :  { %627 = vmatprep.subr.bf16.mxu0 %v9943_v4  ;;  %v9968_v13 = vpack.c.bf16 %v203_v11, %v199_v10  ;;  %v196_v16 = vld [vmem:[%s10910_s0 + $0x38] sm:$0xff]  ;;  %680 = vmatprep.subr.bf16.mxu1 %v9954_v8  ;;  %v9981_v17 = vpack.c.bf16 %v194_v14, %v190_v12  ;;  %v189_v19 = vld [vmem:[%s10910_s0] sm:$0xff]  ;;  %v191_v21 = vld [vmem:[%s10910_s0 + $0x10] sm:$0xff]  ;;  %p9775_p8 = scmp.ne.s32.totalorder %s178_s4, %s9774_s1  ;;  %p9780_p10 = scmp.lt.s32.totalorder %s9774_s1, %s9774_s1 }
  0x7e   :  { %628 = vmatpush1.bf16.msra.mxu0 %v9956_v9  ;;  %v9983_v18 = vpack.c.bf16 %v196_v16, %v192_v15  ;;  %v193_v20 = vld [vmem:[%s10910_s0 + $0x20] sm:$0xff]  ;;  %v195_v23 = vld [vmem:[%s10910_s0 + $0x30] sm:$0xff]  ;;  %v10019_v27 = vld [vmem:[#allocation4 + $0x8] sm:$0xff]  }
  0x7f   :  { %681 = vmatpush1.bf16.msra.mxu1 %v9968_v13  ;;  %v9995_v22 = vpack.c.bf16 %v193_v20, %v189_v19  ;;  %629 = vmatprep.subr.bf16.mxu0 %v9981_v17  ;;  %v10002_v24 = vpack.c.bf16 %v195_v23, %v191_v21  ;;  %v10004_v25 = vld [vmem:[#allocation4] sm:$0xff]   ;;  %v10030_v29 = vld [vmem:[#allocation6] sm:$0xff]   ;;  %v10038_v37 = vld [vmem:[#allocation6 + $0x8] sm:$0xff]   ;;  %p9781_p11 = por %p9780_p10, %p9779_p9 }
  0x80   :  { %682 = vmatprep.subr.bf16.mxu1 %v9983_v18  ;;  %v8412_v26 = vld [vmem:[#allocation8 + $0xe4] ss:$16 sps:$4 sm:$0xff]   ;;  %v8410_v30 = vld [vmem:[#allocation8 + $0xe0] ss:$16 sps:$4 sm:$0xff]  }
  0x81   :  { %v8415_v28 = vld [vmem:[#allocation8 + $0x2e4] ss:$16 sps:$4 sm:$0xff]   ;;  %v8413_v31 = vld [vmem:[#allocation8 + $0x2e0] ss:$16 sps:$4 sm:$0xff]   ;;  %p9782_p12 = pnand %p9781_p11, %p9775_p8 }
  0x82   :  { %630 = vmatpush1.bf16.msra.mxu0 %v9995_v22  ;;  %v8418_v32 = vld [vmem:[#allocation8 + $0xc4] ss:$16 sps:$4 sm:$0xff]   ;;  %v8416_v34 = vld [vmem:[#allocation8 + $0xc0] ss:$16 sps:$4 sm:$0xff]  }
  0x83   :  { %683 = vmatpush1.bf16.msra.mxu1 %v10002_v24  ;;  %757 = vmatprep.subr.bf16.mxu0 %v9943_v4  ;;  %v8421_v33 = vld [vmem:[#allocation8 + $0x2c4] ss:$16 sps:$4 sm:$0xff]   ;;  %v8419_v35 = vld [vmem:[#allocation8 + $0x2c0] ss:$16 sps:$4 sm:$0xff]  }
  0x84   :  { %810 = vmatprep.subr.bf16.mxu1 %v9954_v8  ;;  %v8424_v36 = vld [vmem:[#allocation8 + $0xa4] ss:$16 sps:$4 sm:$0xff]   ;;  %v8422_v39 = vld [vmem:[#allocation8 + $0xa0] ss:$16 sps:$4 sm:$0xff]  }
  0x85   :  { %7496 = vmatmul.mubr.msk.bf16.vlgmr.msra.gmra.mxu0 %vm608_vm0, %v10004_v25  ;;  %v8427_v38 = vld [vmem:[#allocation8 + $0x2a4] ss:$16 sps:$4 sm:$0xff]   ;;  %v8425_v40 = vld [vmem:[#allocation8 + $0x2a0] ss:$16 sps:$4 sm:$0xff]  }
  0x86   :  { %7498 = vmatmul.mubr.msk.bf16.vlgmr.msra.gmra.mxu1 %vm608_vm0, %v10004_v25  ;;  %657 = vmatprep.mubr.bf16.mxu0 %v10925_v0  ;;  %v8430_v41 = vld [vmem:[#allocation8 + $0x84] ss:$16 sps:$4 sm:$0xff]   ;;  %v8428_v43 = vld [vmem:[#allocation8 + $0x80] ss:$16 sps:$4 sm:$0xff]  }
  0x87   :  { %710 = vmatprep.mubr.bf16.mxu1 %v10925_v0  ;;  %758 = vmatpush1.bf16.msra.mxu0 %v9956_v9  ;;  %v8433_v42 = vld [vmem:[#allocation8 + $0x284] ss:$16 sps:$4 sm:$0xff]   ;;  %v8431_v44 = vld [vmem:[#allocation8 + $0x280] ss:$16 sps:$4 sm:$0xff]  }
  0x88   :  { %811 = vmatpush1.bf16.msra.mxu1 %v9968_v13  ;;  %759 = vmatprep.subr.bf16.mxu0 %v9981_v17  ;;  %v8436_v45 = vld [vmem:[#allocation8 + $0x64] ss:$16 sps:$4 sm:$0xff]   ;;  %v8434_v47 = vld [vmem:[#allocation8 + $0x60] ss:$16 sps:$4 sm:$0xff]  }
  0x89   :  { %812 = vmatprep.subr.bf16.mxu1 %v9983_v18  ;;  %v8439_v46 = vld [vmem:[#allocation8 + $0x264] ss:$16 sps:$4 sm:$0xff]   ;;  %v8437_v48 = vld [vmem:[#allocation8 + $0x260] ss:$16 sps:$4 sm:$0xff]  }
  0x8a   :  { %v8442_v49 = vld [vmem:[#allocation8 + $0x44] ss:$16 sps:$4 sm:$0xff]   ;;  %v8440_v51 = vld [vmem:[#allocation8 + $0x40] ss:$16 sps:$4 sm:$0xff]  }
  0x8b   :  { %760 = vmatpush1.bf16.msra.mxu0 %v9995_v22  ;;  %v8445_v50 = vld [vmem:[#allocation8 + $0x244] ss:$16 sps:$4 sm:$0xff]   ;;  %v8443_v52 = vld [vmem:[#allocation8 + $0x240] ss:$16 sps:$4 sm:$0xff]  }
  0x8c   :  { %813 = vmatpush1.bf16.msra.mxu1 %v10002_v24  ;;  %2800 = vmatprep.subr.bf16.mxu0 %v8412_v26  ;;  %v8448_v53 = vld [vmem:[#allocation8 + $0x24] ss:$16 sps:$4 sm:$0xff]   ;;  %v8446_v55 = vld [vmem:[#allocation8 + $0x20] ss:$16 sps:$4 sm:$0xff]  }
  0x8d   :  { %7497 = vmatmul.mubr.msk.bf16.gmra.mxu0 %vm608_vm0, %v10019_v27  ;;  %2853 = vmatprep.subr.bf16.mxu1 %v8415_v28  ;;  %v8451_v54 = vld [vmem:[#allocation8 + $0x224] ss:$16 sps:$4 sm:$0xff]   ;;  %v8449_v56 = vld [vmem:[#allocation8 + $0x220] ss:$16 sps:$4 sm:$0xff]  }
  0x8e   :  { %7499 = vmatmul.mubr.msk.bf16.gmra.mxu1 %vm608_vm0, %v10019_v27  ;;  %777 = vmatprep.mubr.bf16.mxu0 %v10925_v0  ;;  %v8454_v57 = vld [vmem:[#allocation8 + $0x4] ss:$16 sps:$4 sm:$0xff]   ;;  %v8452_v59 = vld [vmem:[#allocation8] ss:$16 sps:$4 sm:$0xff]  }
  0x8f   :  { %830 = vmatprep.mubr.bf16.mxu1 %v10925_v0  ;;  %v8457_v58 = vld [vmem:[#allocation8 + $0x204] ss:$16 sps:$4 sm:$0xff]   ;;  %v8455_v60 = vld [vmem:[#allocation8 + $0x200] ss:$16 sps:$4 sm:$0xff]  }
  0x90   :  { %v8460_v61 = vld [vmem:[#allocation8 + $0x1e4] ss:$16 sps:$4 sm:$0xff]   ;;  %v8458_v63 = vld [vmem:[#allocation8 + $0x1e0] ss:$16 sps:$4 sm:$0xff]  }
  0x91   :  { %v8463_v62 = vld [vmem:[#allocation8 + $0x3e4] ss:$16 sps:$4 sm:$0xff]   ;;  %v8461_v1 = vld [vmem:[#allocation8 + $0x3e0] ss:$16 sps:$4 sm:$0xff]  }
  0x92   :  { %v8466_v2 = vld [vmem:[#allocation8 + $0x1c4] ss:$16 sps:$4 sm:$0xff]   ;;  %v8464_v5 = vld [vmem:[#allocation8 + $0x1c0] ss:$16 sps:$4 sm:$0xff]  }
  0x93   :  { %v8469_v3 = vld [vmem:[#allocation8 + $0x3c4] ss:$16 sps:$4 sm:$0xff]   ;;  %v8467_v6 = vld [vmem:[#allocation8 + $0x3c0] ss:$16 sps:$4 sm:$0xff]  }
  0x94   :  { %v8472_v7 = vld [vmem:[#allocation8 + $0x1a4] ss:$16 sps:$4 sm:$0xff]   ;;  %v8470_v11 = vld [vmem:[#allocation8 + $0x1a0] ss:$16 sps:$4 sm:$0xff]  }
  0x95   :  { %7502 = vmatmul.mubr.msk.bf16.vlgmr.msra.gmra.mxu0 %vm608_vm0, %v10030_v29  ;;  %v8475_v10 = vld [vmem:[#allocation8 + $0x3a4] ss:$16 sps:$4 sm:$0xff]   ;;  %v8473_v12 = vld [vmem:[#allocation8 + $0x3a0] ss:$16 sps:$4 sm:$0xff]  }
  0x96   :  { %7504 = vmatmul.mubr.msk.bf16.vlgmr.msra.gmra.mxu1 %vm608_vm0, %v10030_v29  ;;  %787 = vmatprep.mubr.bf16.mxu0 %v10925_v0  ;;  %v8478_v14 = vld [vmem:[#allocation8 + $0x184] ss:$16 sps:$4 sm:$0xff]   ;;  %v8476_v16 = vld [vmem:[#allocation8 + $0x180] ss:$16 sps:$4 sm:$0xff]  }
  0x97   :  { %840 = vmatprep.mubr.bf16.mxu1 %v10925_v0  ;;  %2801 = vmatpush1.bf16.msra.mxu0 %v8410_v30  ;;  %v8481_v15 = vld [vmem:[#allocation8 + $0x384] ss:$16 sps:$4 sm:$0xff]   ;;  %v8479_v19 = vld [vmem:[#allocation8 + $0x380] ss:$16 sps:$4 sm:$0xff]  }
  0x98   :  { %2854 = vmatpush1.bf16.msra.mxu1 %v8413_v31  ;;  %2802 = vmatprep.subr.bf16.mxu0 %v8418_v32  ;;  %v8484_v20 = vld [vmem:[#allocation8 + $0x164] ss:$16 sps:$4 sm:$0xff]   ;;  %v8482_v23 = vld [vmem:[#allocation8 + $0x160] ss:$16 sps:$4 sm:$0xff]  }
  0x99   :  { %2855 = vmatprep.subr.bf16.mxu1 %v8421_v33  ;;  %v8487_v21 = vld [vmem:[#allocation8 + $0x364] ss:$16 sps:$4 sm:$0xff]   ;;  %v8485_v26 = vld [vmem:[#allocation8 + $0x360] ss:$16 sps:$4 sm:$0xff]  }
  0x9a   :  { %v8490_v28 = vld [vmem:[#allocation8 + $0x144] ss:$16 sps:$4 sm:$0xff]   ;;  %v8488_v30 = vld [vmem:[#allocation8 + $0x140] ss:$16 sps:$4 sm:$0xff]  }
  0x9b   :  { %2803 = vmatpush1.bf16.msra.mxu0 %v8416_v34  ;;  %v8493_v31 = vld [vmem:[#allocation8 + $0x344] ss:$16 sps:$4 sm:$0xff]   ;;  %v8491_v32 = vld [vmem:[#allocation8 + $0x340] ss:$16 sps:$4 sm:$0xff]  }
  0x9c   :  { %2856 = vmatpush1.bf16.msra.mxu1 %v8419_v35  ;;  %2804 = vmatprep.subr.bf16.mxu0 %v8424_v36  ;;  %v8496_v33 = vld [vmem:[#allocation8 + $0x124] ss:$16 sps:$4 sm:$0xff]   ;;  %v8494_v34 = vld [vmem:[#allocation8 + $0x120] ss:$16 sps:$4 sm:$0xff]  }
  0x9d   :  { %7503 = vmatmul.mubr.msk.bf16.gmra.mxu0 %vm608_vm0, %v10038_v37  ;;  %2857 = vmatprep.subr.bf16.mxu1 %v8427_v38  ;;  %v8499_v35 = vld [vmem:[#allocation8 + $0x324] ss:$16 sps:$4 sm:$0xff]   ;;  %v8497_v36 = vld [vmem:[#allocation8 + $0x320] ss:$16 sps:$4 sm:$0xff]  }
  0x9e   :  { %7505 = vmatmul.mubr.msk.bf16.gmra.mxu1 %vm608_vm0, %v10038_v37  ;;  %v8502_v38 = vld [vmem:[#allocation8 + $0x104] ss:$16 sps:$4 sm:$0xff]  }
  0x9f   :  { %2805 = vmatpush1.bf16.msra.mxu0 %v8422_v39  ;;  %v8500_v39 = vld [vmem:[#allocation8 + $0x100] ss:$16 sps:$4 sm:$0xff]  }
  0xa0   :  { %2858 = vmatpush1.bf16.msra.mxu1 %v8425_v40  ;;  %2806 = vmatprep.subr.bf16.mxu0 %v8430_v41  ;;  %v8505_v40 = vld [vmem:[#allocation8 + $0x304] ss:$16 sps:$4 sm:$0xff]   ;;  %v8503_v41 = vld [vmem:[#allocation8 + $0x300] ss:$16 sps:$4 sm:$0xff]  }
  0xa1   :  { %2859 = vmatprep.subr.bf16.mxu1 %v8433_v42  ;;  %v8508_v42 = vld [vmem:[#allocation8 + $0x4e4] ss:$16 sps:$4 sm:$0xff]  }
  0xa3   :  { %2807 = vmatpush1.bf16.msra.mxu0 %v8428_v43  ;;  %v8511_v43 = vld [vmem:[#allocation8 + $0x6e4] ss:$16 sps:$4 sm:$0xff]  }
  0xa4   :  { %2860 = vmatpush1.bf16.msra.mxu1 %v8431_v44  ;;  %2808 = vmatprep.subr.bf16.mxu0 %v8436_v45 }
  0xa5   :  { %2861 = vmatprep.subr.bf16.mxu1 %v8439_v46 }
  0xa7   :  { %2809 = vmatpush1.bf16.msra.mxu0 %v8434_v47 }
  0xa8   :  { %2862 = vmatpush1.bf16.msra.mxu1 %v8437_v48  ;;  %2810 = vmatprep.subr.bf16.mxu0 %v8442_v49 }
  0xa9   :  { %2863 = vmatprep.subr.bf16.mxu1 %v8445_v50 }
  0xab   :  { %2811 = vmatpush1.bf16.msra.mxu0 %v8440_v51 }
  0xac   :  { %2864 = vmatpush1.bf16.msra.mxu1 %v8443_v52  ;;  %2812 = vmatprep.subr.bf16.mxu0 %v8448_v53  ;;  %v8506_v53 = vld [vmem:[#allocation8 + $0x4e0] ss:$16 sps:$4 sm:$0xff]  }
  0xad   :  { %2865 = vmatprep.subr.bf16.mxu1 %v8451_v54 }
  0xaf   :  { %2813 = vmatpush1.bf16.msra.mxu0 %v8446_v55 }
  0xb0   :  { %2866 = vmatpush1.bf16.msra.mxu1 %v8449_v56  ;;  %2814 = vmatprep.subr.bf16.mxu0 %v8454_v57  ;;  %v8509_v56 = vld [vmem:[#allocation8 + $0x6e0] ss:$16 sps:$4 sm:$0xff]   ;;  %v8514_v57 = vld [vmem:[#allocation8 + $0x4c4] ss:$16 sps:$4 sm:$0xff]  }
  0xb1   :  { %2867 = vmatprep.subr.bf16.mxu1 %v8457_v58 }
  0xb3   :  { %2815 = vmatpush1.bf16.msra.mxu0 %v8452_v59 }
  0xb4   :  { %2868 = vmatpush1.bf16.msra.mxu1 %v8455_v60  ;;  %2816 = vmatprep.subr.bf16.mxu0 %v8460_v61  ;;  %v8517_v60 = vld [vmem:[#allocation8 + $0x6c4] ss:$16 sps:$4 sm:$0xff]  }
  0xb5   :  { %2869 = vmatprep.subr.bf16.mxu1 %v8463_v62 }
  0xb7   :  { %2817 = vmatpush2.bf16.msra.mxu0 %v8458_v63  ;;  %v8512_v63 = vld [vmem:[#allocation8 + $0x4c0] ss:$16 sps:$4 sm:$0xff]  }
  0xb8   :  { %2870 = vmatpush2.bf16.msra.mxu1 %v8461_v1  ;;  %2818 = vmatprep.subr.bf16.mxu0 %v8466_v2  ;;  %v8515_v2 = vld [vmem:[#allocation8 + $0x6c0] ss:$16 sps:$4 sm:$0xff]  }
  0xb9   :  { %2871 = vmatprep.subr.bf16.mxu1 %v8469_v3  ;;  %v8520_v3 = vld [vmem:[#allocation8 + $0x4a4] ss:$16 sps:$4 sm:$0xff]  }
  0xbb   :  { %2819 = vmatpush2.bf16.msra.mxu0 %v8464_v5 }
  0xbc   :  { %2872 = vmatpush2.bf16.msra.mxu1 %v8467_v6  ;;  %2820 = vmatprep.subr.bf16.mxu0 %v8472_v7  ;;  %v8523_v6 = vld [vmem:[#allocation8 + $0x6a4] ss:$16 sps:$4 sm:$0xff]  }
  0xbd   :  { %2873 = vmatprep.subr.bf16.mxu1 %v8475_v10 }
  0xbf   :  { %2821 = vmatpush2.bf16.msra.mxu0 %v8470_v11 }
  0xc0   :  { %2874 = vmatpush2.bf16.msra.mxu1 %v8473_v12  ;;  %2822 = vmatprep.subr.bf16.mxu0 %v8478_v14  ;;  %v8518_v12 = vld [vmem:[#allocation8 + $0x4a0] ss:$16 sps:$4 sm:$0xff]  }
  0xc1   :  { %2875 = vmatprep.subr.bf16.mxu1 %v8481_v15 }
  0xc3   :  { %2823 = vmatpush2.bf16.msra.mxu0 %v8476_v16 }
  0xc4   :  { %2876 = vmatpush2.bf16.msra.mxu1 %v8479_v19  ;;  %2824 = vmatprep.subr.bf16.mxu0 %v8484_v20  ;;  %v8521_v19 = vld [vmem:[#allocation8 + $0x6a0] ss:$16 sps:$4 sm:$0xff]   ;;  %v8526_v20 = vld [vmem:[#allocation8 + $0x484] ss:$16 sps:$4 sm:$0xff]  }
  0xc5   :  { %2877 = vmatprep.subr.bf16.mxu1 %v8487_v21 }
  0xc7   :  { %2825 = vmatpush2.bf16.msra.mxu0 %v8482_v23  ;;  %v8529_v23 = vld [vmem:[#allocation8 + $0x684] ss:$16 sps:$4 sm:$0xff]  }
  0xc8   :  { %2878 = vmatpush2.bf16.msra.mxu1 %v8485_v26  ;;  %2826 = vmatprep.subr.bf16.mxu0 %v8490_v28  ;;  %v8524_v26 = vld [vmem:[#allocation8 + $0x480] ss:$16 sps:$4 sm:$0xff]  }
  0xc9   :  { %2879 = vmatprep.subr.bf16.mxu1 %v8493_v31  ;;  %v8527_v28 = vld [vmem:[#allocation8 + $0x680] ss:$16 sps:$4 sm:$0xff]   ;;  %v8535_v31 = vld [vmem:[#allocation8 + $0x664] ss:$16 sps:$4 sm:$0xff]  }
  0xcb   :  { %2827 = vmatpush2.bf16.msra.mxu0 %v8488_v30  ;;  %v8532_v30 = vld [vmem:[#allocation8 + $0x464] ss:$16 sps:$4 sm:$0xff]  }
  0xcc   :  { %2880 = vmatpush2.bf16.msra.mxu1 %v8491_v32  ;;  %2828 = vmatprep.subr.bf16.mxu0 %v8496_v33  ;;  %v8530_v32 = vld [vmem:[#allocation8 + $0x460] ss:$16 sps:$4 sm:$0xff]  }
  0xcd   :  { %2881 = vmatprep.subr.bf16.mxu1 %v8499_v35  ;;  %v8533_v33 = vld [vmem:[#allocation8 + $0x660] ss:$16 sps:$4 sm:$0xff]   ;;  %v8541_v35 = vld [vmem:[#allocation8 + $0x644] ss:$16 sps:$4 sm:$0xff]  }
  0xcf   :  { %2829 = vmatpush2.bf16.msra.mxu0 %v8494_v34  ;;  %v8538_v34 = vld [vmem:[#allocation8 + $0x444] ss:$16 sps:$4 sm:$0xff]  }
  0xd0   :  { %2882 = vmatpush2.bf16.msra.mxu1 %v8497_v36  ;;  %2830 = vmatprep.subr.bf16.mxu0 %v8502_v38  ;;  %v8536_v36 = vld [vmem:[#allocation8 + $0x440] ss:$16 sps:$4 sm:$0xff]  }
  0xd1   :  { %2883 = vmatprep.subr.bf16.mxu1 %v8505_v40  ;;  %v8539_v38 = vld [vmem:[#allocation8 + $0x640] ss:$16 sps:$4 sm:$0xff]   ;;  %v8547_v40 = vld [vmem:[#allocation8 + $0x624] ss:$16 sps:$4 sm:$0xff]  }
  0xd3   :  { %2831 = vmatpush2.bf16.msra.mxu0 %v8500_v39  ;;  %v8544_v39 = vld [vmem:[#allocation8 + $0x424] ss:$16 sps:$4 sm:$0xff]  }
  0xd4   :  { %2884 = vmatpush2.bf16.msra.mxu1 %v8503_v41  ;;  %2906 = vmatprep.subr.bf16.mxu0 %v8508_v42  ;;  %v8542_v41 = vld [vmem:[#allocation8 + $0x420] ss:$16 sps:$4 sm:$0xff]  }
  0xd5   :  { %2959 = vmatprep.subr.bf16.mxu1 %v8511_v43  ;;  %v8545_v42 = vld [vmem:[#allocation8 + $0x620] ss:$16 sps:$4 sm:$0xff]   ;;  %v8550_v43 = vld [vmem:[#allocation8 + $0x404] ss:$16 sps:$4 sm:$0xff]  }
 0x145   :  { %v649_v44 = vpop.f32.mrf.mxu0 }
 0x146   :  { %v702_v45 = vpop.f32.mrf.mxu1 }
 0x147   :  { %v651_v46 = vpop.f32.mrf.mxu0 }
 0x148   :  { %v704_v47 = vpop.f32.mrf.mxu1 }
 0x149   :  { %v653_v48 = vpop.f32.mrf.mxu0 }
 0x14a   :  { %v706_v49 = vpop.f32.mrf.mxu1  ;;  %v10046_v54 = vpack.c.bf16 %v653_v48, %v649_v44  ;;  %v8553_v44 = vld [vmem:[#allocation8 + $0x604] ss:$16 sps:$4 sm:$0xff]  }
 0x14b   :  { %v655_v50 = vpop.f32.mrf.mxu0  ;;  %v10050_v59 = vpack.c.bf16 %v706_v49, %v702_v45  ;;  %v8548_v45 = vld [vmem:[#allocation8 + $0x400] ss:$16 sps:$4 sm:$0xff]   ;;  %v8559_v48 = vld [vmem:[#allocation8 + $0x7e4] ss:$16 sps:$4 sm:$0xff]  }
 0x14c   :  { %v10044_v51 = vpack.c.bf16 %v655_v50, %v651_v46  ;;  %v708_v52 = vpop.f32.mrf.mxu1  ;;  %v8551_v46 = vld [vmem:[#allocation8 + $0x600] ss:$16 sps:$4 sm:$0xff]  }
 0x14d   :  { %v10048_v55 = vpack.c.bf16 %v708_v52, %v704_v47  ;;  %v659_v58 = vpop.f32.mrf.mxu0  ;;  %v8556_v47 = vld [vmem:[#allocation8 + $0x5e4] ss:$16 sps:$4 sm:$0xff]   ;;  %v8554_v49 = vld [vmem:[#allocation8 + $0x5e0] ss:$16 sps:$4 sm:$0xff]  }
 0x14e   :  { %2832 = vmatprep.mubr.bf16.mxu0 %v10044_v51  ;;  %v712_v61 = vpop.f32.mrf.mxu1  ;;  %v8557_v50 = vld [vmem:[#allocation8 + $0x7e0] ss:$16 sps:$4 sm:$0xff]   ;;  %v8562_v52 = vld [vmem:[#allocation8 + $0x5c4] ss:$16 sps:$4 sm:$0xff]  }
 0x14f   :  { %2885 = vmatprep.mubr.bf16.mxu1 %v10048_v55  ;;  %2833 = vmatmul.mubr.bf16.vlgmr.msra.gmra.mxu0 %v10046_v54  ;;  %v661_v62 = vpop.f32.mrf.mxu0 }
 0x150   :  { %2886 = vmatmul.mubr.bf16.vlgmr.msra.gmra.mxu1 %v10050_v59  ;;  %2907 = vmatpush1.bf16.msra.mxu0 %v8506_v53  ;;  %v714_v1 = vpop.f32.mrf.mxu1  ;;  %v8565_v53 = vld [vmem:[#allocation8 + $0x7c4] ss:$16 sps:$4 sm:$0xff]  }
 0x151   :  { %2960 = vmatpush1.bf16.msra.mxu1 %v8509_v56  ;;  %2908 = vmatprep.subr.bf16.mxu0 %v8514_v57  ;;  %v663_v5 = vpop.f32.mrf.mxu0  ;;  %v8560_v56 = vld [vmem:[#allocation8 + $0x5c0] ss:$16 sps:$4 sm:$0xff]  }
 0x152   :  { %2961 = vmatprep.subr.bf16.mxu1 %v8517_v60  ;;  %v716_v7 = vpop.f32.mrf.mxu1  ;;  %v10056_v10 = vpack.c.bf16 %v663_v5, %v659_v58  ;;  %v8563_v57 = vld [vmem:[#allocation8 + $0x7c0] ss:$16 sps:$4 sm:$0xff]   ;;  %v8568_v58 = vld [vmem:[#allocation8 + $0x5a4] ss:$16 sps:$4 sm:$0xff]  }
 0x153   :  { %v665_v11 = vpop.f32.mrf.mxu0  ;;  %v10060_v15 = vpack.c.bf16 %v716_v7, %v712_v61  ;;  %v8571_v60 = vld [vmem:[#allocation8 + $0x7a4] ss:$16 sps:$4 sm:$0xff]   ;;  %v8566_v61 = vld [vmem:[#allocation8 + $0x5a0] ss:$16 sps:$4 sm:$0xff]  }
 0x154   :  { %2909 = vmatpush1.bf16.msra.mxu0 %v8512_v63  ;;  %v10058_v14 = vpack.c.bf16 %v665_v11, %v661_v62  ;;  %v718_v16 = vpop.f32.mrf.mxu1  ;;  %v8569_v62 = vld [vmem:[#allocation8 + $0x7a0] ss:$16 sps:$4 sm:$0xff]   ;;  %v8574_v63 = vld [vmem:[#allocation8 + $0x584] ss:$16 sps:$4 sm:$0xff]  }
 0x155   :  { %2962 = vmatpush1.bf16.msra.mxu1 %v8515_v2  ;;  %2910 = vmatprep.subr.bf16.mxu0 %v8520_v3  ;;  %v10062_v21 = vpack.c.bf16 %v718_v16, %v714_v1  ;;  %v8577_v1 = vld [vmem:[#allocation8 + $0x784] ss:$16 sps:$4 sm:$0xff]   ;;  %v8572_v2 = vld [vmem:[#allocation8 + $0x580] ss:$16 sps:$4 sm:$0xff]  }
 0x156   :  { %2963 = vmatprep.subr.bf16.mxu1 %v8523_v6  ;;  %2842 = vmatprep.mubr.bf16.mxu0 %v10058_v14  ;;  %v8575_v3 = vld [vmem:[#allocation8 + $0x780] ss:$16 sps:$4 sm:$0xff]   ;;  %v8580_v5 = vld [vmem:[#allocation8 + $0x564] ss:$16 sps:$4 sm:$0xff]  }
 0x157   :  { %2843 = vmatmul.mubr.bf16.gmra.mxu0 %v10056_v10  ;;  %2895 = vmatprep.mubr.bf16.mxu1 %v10062_v21  ;;  %v8583_v6 = vld [vmem:[#allocation8 + $0x764] ss:$16 sps:$4 sm:$0xff]   ;;  %v8578_v7 = vld [vmem:[#allocation8 + $0x560] ss:$16 sps:$4 sm:$0xff]  }
 0x158   :  { %2911 = vmatpush1.bf16.msra.mxu0 %v8518_v12  ;;  %2896 = vmatmul.mubr.bf16.gmra.mxu1 %v10060_v15  ;;  %v8581_v11 = vld [vmem:[#allocation8 + $0x760] ss:$16 sps:$4 sm:$0xff]   ;;  %v8586_v12 = vld [vmem:[#allocation8 + $0x544] ss:$16 sps:$4 sm:$0xff]  }
 0x159   :  { %2964 = vmatpush1.bf16.msra.mxu1 %v8521_v19  ;;  %2912 = vmatprep.subr.bf16.mxu0 %v8526_v20  ;;  %v8589_v16 = vld [vmem:[#allocation8 + $0x744] ss:$16 sps:$4 sm:$0xff]   ;;  %v8584_v19 = vld [vmem:[#allocation8 + $0x540] ss:$16 sps:$4 sm:$0xff]  }
 0x15a   :  { %2965 = vmatprep.subr.bf16.mxu1 %v8529_v23  ;;  %2938 = vmatprep.mubr.bf16.mxu0 %v9981_v17  ;;  %v8587_v20 = vld [vmem:[#allocation8 + $0x740] ss:$16 sps:$4 sm:$0xff]   ;;  %v8592_v23 = vld [vmem:[#allocation8 + $0x524] ss:$16 sps:$4 sm:$0xff]  }
 0x15b   :  { %2991 = vmatprep.mubr.bf16.mxu1 %v9983_v18 }
 0x15c   :  { %2913 = vmatpush1.bf16.msra.mxu0 %v8524_v26  ;;  %v8595_v26 = vld [vmem:[#allocation8 + $0x724] ss:$16 sps:$4 sm:$0xff]  }
 0x15d   :  { %2966 = vmatpush1.bf16.msra.mxu1 %v8527_v28  ;;  %2914 = vmatprep.subr.bf16.mxu0 %v8532_v30  ;;  %v8590_v28 = vld [vmem:[#allocation8 + $0x520] ss:$16 sps:$4 sm:$0xff]  }
 0x15e   :  { %2967 = vmatprep.subr.bf16.mxu1 %v8535_v31  ;;  %v8593_v30 = vld [vmem:[#allocation8 + $0x720] ss:$16 sps:$4 sm:$0xff]   ;;  %v8598_v31 = vld [vmem:[#allocation8 + $0x504] ss:$16 sps:$4 sm:$0xff]  }
 0x160   :  { %2915 = vmatpush1.bf16.msra.mxu0 %v8530_v32  ;;  %v8601_v32 = vld [vmem:[#allocation8 + $0x704] ss:$16 sps:$4 sm:$0xff]  }
 0x161   :  { %2968 = vmatpush1.bf16.msra.mxu1 %v8533_v33  ;;  %2916 = vmatprep.subr.bf16.mxu0 %v8538_v34  ;;  %v10070_v33 = vpop.f32.mrf.mxu0  ;;  %v8596_v34 = vld [vmem:[#allocation8 + $0x500] ss:$16 sps:$4 sm:$0xff]  }
 0x162   :  { %2969 = vmatprep.subr.bf16.mxu1 %v8541_v35  ;;  %v10072_v35 = vpop.f32.mrf.mxu1 }
 0x164   :  { %2917 = vmatpush1.bf16.msra.mxu0 %v8536_v36  ;;  %v8599_v36 = vld [vmem:[#allocation8 + $0x700] ss:$16 sps:$4 sm:$0xff]  }
 0x165   :  { %2970 = vmatpush1.bf16.msra.mxu1 %v8539_v38  ;;  %2918 = vmatprep.subr.bf16.mxu0 %v8544_v39  ;;  %v8604_v38 = vld [vmem:[#allocation8 + $0x8e4] ss:$16 sps:$4 sm:$0xff]  }
 0x166   :  { %2971 = vmatprep.subr.bf16.mxu1 %v8547_v40  ;;  %v8607_v39 = vld [vmem:[#allocation8 + $0xae4] ss:$16 sps:$4 sm:$0xff]   ;;  %v781_v40 = vpop.f32.mrf.mxu0 }
 0x168   :  { %2919 = vmatpush1.bf16.msra.mxu0 %v8542_v41  ;;  %v8602_v41 = vld [vmem:[#allocation8 + $0x8e0] ss:$16 sps:$4 sm:$0xff]  }
 0x169   :  { %2972 = vmatpush1.bf16.msra.mxu1 %v8545_v42  ;;  %2920 = vmatprep.subr.bf16.mxu0 %v8550_v43  ;;  %v834_v42 = vpop.f32.mrf.mxu1  ;;  %v8605_v43 = vld [vmem:[#allocation8 + $0xae0] ss:$16 sps:$4 sm:$0xff]  }
 0x16a   :  { %2973 = vmatprep.subr.bf16.mxu1 %v8553_v44  ;;  %v8610_v44 = vld [vmem:[#allocation8 + $0x8c4] ss:$16 sps:$4 sm:$0xff]  }
 0x16c   :  { %2921 = vmatpush1.bf16.msra.mxu0 %v8548_v45  ;;  %v8613_v45 = vld [vmem:[#allocation8 + $0xac4] ss:$16 sps:$4 sm:$0xff]  }
 0x16d   :  { %2974 = vmatpush1.bf16.msra.mxu1 %v8551_v46  ;;  %2922 = vmatprep.subr.bf16.mxu0 %v8556_v47  ;;  %v10075_v46 = vpop.f32.mrf.mxu0  ;;  %v8608_v47 = vld [vmem:[#allocation8 + $0x8c0] ss:$16 sps:$4 sm:$0xff]  }
 0x16e   :  { %2975 = vmatprep.subr.bf16.mxu1 %v8559_v48  ;;  %v10078_v48 = vpop.f32.mrf.mxu1 }
 0x170   :  { %2923 = vmatpush2.bf16.msra.mxu0 %v8554_v49  ;;  %v8611_v49 = vld [vmem:[#allocation8 + $0xac0] ss:$16 sps:$4 sm:$0xff]  }
 0x171   :  { %2976 = vmatpush2.bf16.msra.mxu1 %v8557_v50  ;;  %2924 = vmatprep.subr.bf16.mxu0 %v8562_v52  ;;  %v8616_v50 = vld [vmem:[#allocation8 + $0x8a4] ss:$16 sps:$4 sm:$0xff]  }
 0x172   :  { %2977 = vmatprep.subr.bf16.mxu1 %v8565_v53  ;;  %v8619_v52 = vld [vmem:[#allocation8 + $0xaa4] ss:$16 sps:$4 sm:$0xff]   ;;  %v785_v53 = vpop.f32.mrf.mxu0 }
 0x174   :  { %2925 = vmatpush2.bf16.msra.mxu0 %v8560_v56  ;;  %v8614_v56 = vld [vmem:[#allocation8 + $0x8a0] ss:$16 sps:$4 sm:$0xff]  }
 0x175   :  { %2978 = vmatpush2.bf16.msra.mxu1 %v8563_v57  ;;  %2926 = vmatprep.subr.bf16.mxu0 %v8568_v58  ;;  %v838_v57 = vpop.f32.mrf.mxu1  ;;  %v8617_v58 = vld [vmem:[#allocation8 + $0xaa0] ss:$16 sps:$4 sm:$0xff]  }
 0x176   :  { %2979 = vmatprep.subr.bf16.mxu1 %v8571_v60  ;;  %v8622_v60 = vld [vmem:[#allocation8 + $0x884] ss:$16 sps:$4 sm:$0xff]  }
 0x178   :  { %2927 = vmatpush2.bf16.msra.mxu0 %v8566_v61  ;;  %v8625_v61 = vld [vmem:[#allocation8 + $0xa84] ss:$16 sps:$4 sm:$0xff]  }
 0x179   :  { %2980 = vmatpush2.bf16.msra.mxu1 %v8569_v62  ;;  %2928 = vmatprep.subr.bf16.mxu0 %v8574_v63  ;;  %v10082_v62 = vpack.c.bf16 %v785_v53, %v781_v40  ;;  %v10085_v63 = vpack.c.bf16 %v838_v57, %v834_v42  ;;  %v8653_v40 = vld [vmem:[#allocation8 + $0xbe0] ss:$16 sps:$4 sm:$0xff]   ;;  %v8661_v42 = vld [vmem:[#allocation8 + $0xbc4] ss:$16 sps:$4 sm:$0xff]  }
 0x17a   :  { %2981 = vmatprep.subr.bf16.mxu1 %v8577_v1  ;;  %v8620_v1 = vld [vmem:[#allocation8 + $0x880] ss:$16 sps:$4 sm:$0xff]   ;;  %v8673_v53 = vld [vmem:[#allocation8 + $0xb84] ss:$16 sps:$4 sm:$0xff]  }
 0x17b   :  { %v8671_v57 = vld [vmem:[#allocation8 + $0xb80] ss:$16 sps:$4 sm:$0xff]  }
 0x17c   :  { %2929 = vmatpush2.bf16.msra.mxu0 %v8572_v2  ;;  %v8623_v2 = vld [vmem:[#allocation8 + $0xa80] ss:$16 sps:$4 sm:$0xff]  }
 0x17d   :  { %2982 = vmatpush2.bf16.msra.mxu1 %v8575_v3  ;;  %2930 = vmatprep.subr.bf16.mxu0 %v8580_v5  ;;  %v8628_v3 = vld [vmem:[#allocation8 + $0x864] ss:$16 sps:$4 sm:$0xff]  }
 0x17e   :  { %2983 = vmatprep.subr.bf16.mxu1 %v8583_v6  ;;  %v8631_v5 = vld [vmem:[#allocation8 + $0xa64] ss:$16 sps:$4 sm:$0xff]   ;;  %v8626_v6 = vld [vmem:[#allocation8 + $0x860] ss:$16 sps:$4 sm:$0xff]  }
 0x180   :  { %2931 = vmatpush2.bf16.msra.mxu0 %v8578_v7  ;;  %v8629_v7 = vld [vmem:[#allocation8 + $0xa60] ss:$16 sps:$4 sm:$0xff]  }
 0x181   :  { %2984 = vmatpush2.bf16.msra.mxu1 %v8581_v11  ;;  %2932 = vmatprep.subr.bf16.mxu0 %v8586_v12  ;;  %v8634_v11 = vld [vmem:[#allocation8 + $0x844] ss:$16 sps:$4 sm:$0xff]  }
 0x182   :  { %2985 = vmatprep.subr.bf16.mxu1 %v8589_v16  ;;  %v8637_v12 = vld [vmem:[#allocation8 + $0xa44] ss:$16 sps:$4 sm:$0xff]   ;;  %v8632_v16 = vld [vmem:[#allocation8 + $0x840] ss:$16 sps:$4 sm:$0xff]  }
 0x184   :  { %2933 = vmatpush2.bf16.msra.mxu0 %v8584_v19  ;;  %v8635_v19 = vld [vmem:[#allocation8 + $0xa40] ss:$16 sps:$4 sm:$0xff]  }
 0x185   :  { %2986 = vmatpush2.bf16.msra.mxu1 %v8587_v20  ;;  %2934 = vmatprep.subr.bf16.mxu0 %v8592_v23  ;;  %v8640_v20 = vld [vmem:[#allocation8 + $0x824] ss:$16 sps:$4 sm:$0xff]  }
 0x186   :  { %2987 = vmatprep.subr.bf16.mxu1 %v8595_v26  ;;  %v8643_v23 = vld [vmem:[#allocation8 + $0xa24] ss:$16 sps:$4 sm:$0xff]   ;;  %v8638_v26 = vld [vmem:[#allocation8 + $0x820] ss:$16 sps:$4 sm:$0xff]  }
 0x188   :  { %2935 = vmatpush2.bf16.msra.mxu0 %v8590_v28  ;;  %v8641_v28 = vld [vmem:[#allocation8 + $0xa20] ss:$16 sps:$4 sm:$0xff]  }
 0x189   :  { %2988 = vmatpush2.bf16.msra.mxu1 %v8593_v30  ;;  %2936 = vmatprep.subr.bf16.mxu0 %v8598_v31  ;;  %v8646_v30 = vld [vmem:[#allocation8 + $0x804] ss:$16 sps:$4 sm:$0xff]  }
 0x18a   :  { %2989 = vmatprep.subr.bf16.mxu1 %v8601_v32  ;;  %v8649_v31 = vld [vmem:[#allocation8 + $0xa04] ss:$16 sps:$4 sm:$0xff]   ;;  %v8644_v32 = vld [vmem:[#allocation8 + $0x800] ss:$16 sps:$4 sm:$0xff]  }
 0x18c   :  { %2937 = vmatpush2.bf16.msra.mxu0 %v8596_v34  ;;  %v8647_v34 = vld [vmem:[#allocation8 + $0xa00] ss:$16 sps:$4 sm:$0xff]  }
 0x18d   :  { %2990 = vmatpush2.bf16.msra.mxu1 %v8599_v36  ;;  %3012 = vmatprep.subr.bf16.mxu0 %v8604_v38  ;;  %v8652_v36 = vld [vmem:[#allocation8 + $0x9e4] ss:$16 sps:$4 sm:$0xff]  }
 0x18e   :  { %3065 = vmatprep.subr.bf16.mxu1 %v8607_v39  ;;  %v8655_v38 = vld [vmem:[#allocation8 + $0xbe4] ss:$16 sps:$4 sm:$0xff]   ;;  %v8650_v39 = vld [vmem:[#allocation8 + $0x9e0] ss:$16 sps:$4 sm:$0xff]  }
 0x18f   :  { %2939 = vmatmul.mubr.bf16.vlgmr.msra.gmra.mxu0 %v9995_v22 }
 0x190   :  { %2992 = vmatmul.mubr.bf16.vlgmr.msra.gmra.mxu1 %v10002_v24  ;;  %3013 = vmatpush1.bf16.msra.mxu0 %v8602_v41  ;;  %v8658_v41 = vld [vmem:[#allocation8 + $0x9c4] ss:$16 sps:$4 sm:$0xff]  }
 0x191   :  { %3066 = vmatpush1.bf16.msra.mxu1 %v8605_v43  ;;  %3014 = vmatprep.subr.bf16.mxu0 %v8610_v44  ;;  %v8656_v43 = vld [vmem:[#allocation8 + $0x9c0] ss:$16 sps:$4 sm:$0xff]  }
 0x192   :  { %3067 = vmatprep.subr.bf16.mxu1 %v8613_v45  ;;  %2948 = vmatprep.mubr.bf16.mxu0 %v9943_v4  ;;  %v8659_v44 = vld [vmem:[#allocation8 + $0xbc0] ss:$16 sps:$4 sm:$0xff]   ;;  %v8664_v45 = vld [vmem:[#allocation8 + $0x9a4] ss:$16 sps:$4 sm:$0xff]  }
 0x193   :  { %3001 = vmatprep.mubr.bf16.mxu1 %v9954_v8 }
 0x194   :  { %3015 = vmatpush1.bf16.msra.mxu0 %v8608_v47  ;;  %v8667_v47 = vld [vmem:[#allocation8 + $0xba4] ss:$16 sps:$4 sm:$0xff]  }
 0x195   :  { %3068 = vmatpush1.bf16.msra.mxu1 %v8611_v49  ;;  %3016 = vmatprep.subr.bf16.mxu0 %v8616_v50  ;;  %v8662_v49 = vld [vmem:[#allocation8 + $0x9a0] ss:$16 sps:$4 sm:$0xff]  }
 0x196   :  { %3069 = vmatprep.subr.bf16.mxu1 %v8619_v52  ;;  %v8665_v50 = vld [vmem:[#allocation8 + $0xba0] ss:$16 sps:$4 sm:$0xff]   ;;  %v8670_v52 = vld [vmem:[#allocation8 + $0x984] ss:$16 sps:$4 sm:$0xff]  }
 0x197   :  { %2949 = vmatmul.mubr.bf16.gmra.mxu0 %v9956_v9 }
 0x198   :  { %3017 = vmatpush1.bf16.msra.mxu0 %v8614_v56  ;;  %3002 = vmatmul.mubr.bf16.gmra.mxu1 %v9968_v13  ;;  %v8668_v56 = vld [vmem:[#allocation8 + $0x980] ss:$16 sps:$4 sm:$0xff]  }
 0x199   :  { %3070 = vmatpush1.bf16.msra.mxu1 %v8617_v58  ;;  %3018 = vmatprep.subr.bf16.mxu0 %v8622_v60  ;;  %v8676_v58 = vld [vmem:[#allocation8 + $0x964] ss:$16 sps:$4 sm:$0xff]  }
 0x19a   :  { %3071 = vmatprep.subr.bf16.mxu1 %v8625_v61  ;;  %3044 = vmatprep.mubr.bf16.mxu0 %v10082_v62  ;;  %v8679_v60 = vld [vmem:[#allocation8 + $0xb64] ss:$16 sps:$4 sm:$0xff]   ;;  %v8674_v61 = vld [vmem:[#allocation8 + $0x960] ss:$16 sps:$4 sm:$0xff]  }
 0x19b   :  { %3097 = vmatprep.mubr.bf16.mxu1 %v10085_v63 }
 0x19c   :  { %3019 = vmatpush1.bf16.msra.mxu0 %v8620_v1  ;;  %v8677_v1 = vld [vmem:[#allocation8 + $0xb60] ss:$16 sps:$4 sm:$0xff]  }
 0x19d   :  { %3072 = vmatpush1.bf16.msra.mxu1 %v8623_v2  ;;  %3020 = vmatprep.subr.bf16.mxu0 %v8628_v3  ;;  %v8682_v2 = vld [vmem:[#allocation8 + $0x944] ss:$16 sps:$4 sm:$0xff]  }
 0x19e   :  { %3073 = vmatprep.subr.bf16.mxu1 %v8631_v5  ;;  %v8685_v3 = vld [vmem:[#allocation8 + $0xb44] ss:$16 sps:$4 sm:$0xff]   ;;  %v789_v5 = vpop.f32.mrf.mxu0 }
 0x1a0   :  { %3021 = vmatpush1.bf16.msra.mxu0 %v8626_v6  ;;  %v8680_v6 = vld [vmem:[#allocation8 + $0x940] ss:$16 sps:$4 sm:$0xff]  }
 0x1a1   :  { %3074 = vmatpush1.bf16.msra.mxu1 %v8629_v7  ;;  %3022 = vmatprep.subr.bf16.mxu0 %v8634_v11  ;;  %v842_v7 = vpop.f32.mrf.mxu1  ;;  %v8683_v11 = vld [vmem:[#allocation8 + $0xb40] ss:$16 sps:$4 sm:$0xff]  }
 0x1a2   :  { %3075 = vmatprep.subr.bf16.mxu1 %v8637_v12  ;;  %v8688_v12 = vld [vmem:[#allocation8 + $0x924] ss:$16 sps:$4 sm:$0xff]  }
 0x1a4   :  { %3023 = vmatpush1.bf16.msra.mxu0 %v8632_v16  ;;  %v8691_v16 = vld [vmem:[#allocation8 + $0xb24] ss:$16 sps:$4 sm:$0xff]  }
 0x1a5   :  { %3076 = vmatpush1.bf16.msra.mxu1 %v8635_v19  ;;  %3024 = vmatprep.subr.bf16.mxu0 %v8640_v20  ;;  %v791_v19 = vpop.f32.mrf.mxu0  ;;  %v8686_v20 = vld [vmem:[#allocation8 + $0x920] ss:$16 sps:$4 sm:$0xff]  }
 0x1a6   :  { %3077 = vmatprep.subr.bf16.mxu1 %v8643_v23  ;;  %v844_v23 = vpop.f32.mrf.mxu1 }
 0x1a8   :  { %3025 = vmatpush1.bf16.msra.mxu0 %v8638_v26  ;;  %v8689_v26 = vld [vmem:[#allocation8 + $0xb20] ss:$16 sps:$4 sm:$0xff]  }
 0x1a9   :  { %3078 = vmatpush1.bf16.msra.mxu1 %v8641_v28  ;;  %3026 = vmatprep.subr.bf16.mxu0 %v8646_v30  ;;  %v8694_v28 = vld [vmem:[#allocation8 + $0x904] ss:$16 sps:$4 sm:$0xff]  }
 0x1aa   :  { %3079 = vmatprep.subr.bf16.mxu1 %v8649_v31  ;;  %v8697_v30 = vld [vmem:[#allocation8 + $0xb04] ss:$16 sps:$4 sm:$0xff]   ;;  %v793_v31 = vpop.f32.mrf.mxu0 }
 0x1ac   :  { %3027 = vmatpush1.bf16.msra.mxu0 %v8644_v32  ;;  %v8692_v32 = vld [vmem:[#allocation8 + $0x900] ss:$16 sps:$4 sm:$0xff]  }
 0x1ad   :  { %3080 = vmatpush1.bf16.msra.mxu1 %v8647_v34  ;;  %3028 = vmatprep.subr.bf16.mxu0 %v8652_v36  ;;  %v846_v34 = vpop.f32.mrf.mxu1  ;;  %v8695_v36 = vld [vmem:[#allocation8 + $0xb00] ss:$16 sps:$4 sm:$0xff]  }
 0x1ae   :  { %3081 = vmatprep.subr.bf16.mxu1 %v8655_v38  ;;  %v8700_v38 = vld [vmem:[#allocation8 + $0xec] ss:$16 sps:$4 sm:$0xff]  }
 0x1b0   :  { %3029 = vmatpush2.bf16.msra.mxu0 %v8650_v39  ;;  %v8703_v39 = vld [vmem:[#allocation8 + $0x2ec] ss:$16 sps:$4 sm:$0xff]  }
 0x1b1   :  { %3082 = vmatpush2.bf16.msra.mxu1 %v8653_v40  ;;  %3030 = vmatprep.subr.bf16.mxu0 %v8658_v41  ;;  %v795_v40 = vpop.f32.mrf.mxu0  ;;  %v8698_v41 = vld [vmem:[#allocation8 + $0xe8] ss:$16 sps:$4 sm:$0xff]  }
 0x1b2   :  { %3083 = vmatprep.subr.bf16.mxu1 %v8661_v42  ;;  %v848_v42 = vpop.f32.mrf.mxu1 }
 0x1b4   :  { %3031 = vmatpush2.bf16.msra.mxu0 %v8656_v43  ;;  %v10092_v43 = vpack.c.bf16 %v10075_v46, %v10070_v33  ;;  %v8704_v33 = vld [vmem:[#allocation8 + $0xc8] ss:$16 sps:$4 sm:$0xff]  }
 0x1b5   :  { %3084 = vmatpush2.bf16.msra.mxu1 %v8659_v44  ;;  %3032 = vmatprep.subr.bf16.mxu0 %v8664_v45  ;;  %v8701_v44 = vld [vmem:[#allocation8 + $0x2e8] ss:$16 sps:$4 sm:$0xff]   ;;  %v8706_v45 = vld [vmem:[#allocation8 + $0xcc] ss:$16 sps:$4 sm:$0xff]  }
 0x1b6   :  { %3085 = vmatprep.subr.bf16.mxu1 %v8667_v47  ;;  %v10096_v47 = vpack.c.bf16 %v10078_v48, %v10072_v35  ;;  %v8707_v46 = vld [vmem:[#allocation8 + $0x2c8] ss:$16 sps:$4 sm:$0xff]   ;;  %v8715_v35 = vld [vmem:[#allocation8 + $0x2ac] ss:$16 sps:$4 sm:$0xff]   ;;  %v10105_v48 = vpack.c.bf16 %v793_v31, %v789_v5 }
 0x1b7   :  { %v8727_v5 = vld [vmem:[#allocation8 + $0x26c] ss:$16 sps:$4 sm:$0xff]   ;;  %v8743_v31 = vld [vmem:[#allocation8 + $0x208] ss:$16 sps:$4 sm:$0xff]  }
 0x1b8   :  { %3033 = vmatpush2.bf16.msra.mxu0 %v8662_v49  ;;  %v10098_v49 = vpack.c.bf16 %v795_v40, %v791_v19  ;;  %v8736_v19 = vld [vmem:[#allocation8 + $0x2c] ss:$16 sps:$4 sm:$0xff]  }
 0x1b9   :  { %3086 = vmatpush2.bf16.msra.mxu1 %v8665_v50  ;;  %3034 = vmatprep.subr.bf16.mxu0 %v8670_v52  ;;  %v8709_v50 = vld [vmem:[#allocation8 + $0x2cc] ss:$16 sps:$4 sm:$0xff]   ;;  %v10101_v52 = vpack.c.bf16 %v848_v42, %v844_v23  ;;  %v8737_v23 = vld [vmem:[#allocation8 + $0x228] ss:$16 sps:$4 sm:$0xff]  }
 0x1ba   :  { %3087 = vmatprep.subr.bf16.mxu1 %v8673_v53  ;;  %v8712_v53 = vld [vmem:[#allocation8 + $0xac] ss:$16 sps:$4 sm:$0xff]   ;;  %v8755_v42 = vld [vmem:[#allocation8 + $0x3c8] ss:$16 sps:$4 sm:$0xff]  }
 0x1bb   :  { %v8757_v40 = vld [vmem:[#allocation8 + $0x3cc] ss:$16 sps:$4 sm:$0xff]  }
 0x1bc   :  { %3035 = vmatpush2.bf16.msra.mxu0 %v8668_v56  ;;  %v10108_v56 = vpack.c.bf16 %v846_v34, %v842_v7  ;;  %v8725_v7 = vld [vmem:[#allocation8 + $0x268] ss:$16 sps:$4 sm:$0xff]   ;;  %v8751_v34 = vld [vmem:[#allocation8 + $0x3ec] ss:$16 sps:$4 sm:$0xff]  }
 0x1bd   :  { %3088 = vmatpush2.bf16.msra.mxu1 %v8671_v57  ;;  %3036 = vmatprep.subr.bf16.mxu0 %v8676_v58  ;;  %v8710_v57 = vld [vmem:[#allocation8 + $0xa8] ss:$16 sps:$4 sm:$0xff]  }
 0x1be   :  { %3089 = vmatprep.subr.bf16.mxu1 %v8679_v60  ;;  %v8713_v58 = vld [vmem:[#allocation8 + $0x2a8] ss:$16 sps:$4 sm:$0xff]   ;;  %v8718_v60 = vld [vmem:[#allocation8 + $0x8c] ss:$16 sps:$4 sm:$0xff]  }
 0x1c0   :  { %3037 = vmatpush2.bf16.msra.mxu0 %v8674_v61  ;;  %v8721_v61 = vld [vmem:[#allocation8 + $0x28c] ss:$16 sps:$4 sm:$0xff]  }
 0x1c1   :  { %3090 = vmatpush2.bf16.msra.mxu1 %v8677_v1  ;;  %3038 = vmatprep.subr.bf16.mxu0 %v8682_v2  ;;  %v8716_v1 = vld [vmem:[#allocation8 + $0x88] ss:$16 sps:$4 sm:$0xff]  }
 0x1c2   :  { %3091 = vmatprep.subr.bf16.mxu1 %v8685_v3  ;;  %v8719_v2 = vld [vmem:[#allocation8 + $0x288] ss:$16 sps:$4 sm:$0xff]   ;;  %v8724_v3 = vld [vmem:[#allocation8 + $0x6c] ss:$16 sps:$4 sm:$0xff]  }
 0x1c4   :  { %3039 = vmatpush2.bf16.msra.mxu0 %v8680_v6  ;;  %v8722_v6 = vld [vmem:[#allocation8 + $0x68] ss:$16 sps:$4 sm:$0xff]  }
 0x1c5   :  { %3092 = vmatpush2.bf16.msra.mxu1 %v8683_v11  ;;  %3040 = vmatprep.subr.bf16.mxu0 %v8688_v12  ;;  %v8730_v11 = vld [vmem:[#allocation8 + $0x4c] ss:$16 sps:$4 sm:$0xff]  }
 0x1c6   :  { %3093 = vmatprep.subr.bf16.mxu1 %v8691_v16  ;;  %v8733_v12 = vld [vmem:[#allocation8 + $0x24c] ss:$16 sps:$4 sm:$0xff]   ;;  %v8728_v16 = vld [vmem:[#allocation8 + $0x48] ss:$16 sps:$4 sm:$0xff]  }
 0x1c8   :  { %3041 = vmatpush2.bf16.msra.mxu0 %v8686_v20  ;;  %v8739_v20 = vld [vmem:[#allocation8 + $0x22c] ss:$16 sps:$4 sm:$0xff]  }
 0x1c9   :  { %3094 = vmatpush2.bf16.msra.mxu1 %v8689_v26  ;;  %3042 = vmatprep.subr.bf16.mxu0 %v8694_v28  ;;  %v8742_v26 = vld [vmem:[#allocation8 + $0xc] ss:$16 sps:$4 sm:$0xff]  }
 0x1ca   :  { %3095 = vmatprep.subr.bf16.mxu1 %v8697_v30  ;;  %v8745_v28 = vld [vmem:[#allocation8 + $0x20c] ss:$16 sps:$4 sm:$0xff]   ;;  %v8740_v30 = vld [vmem:[#allocation8 + $0x8] ss:$16 sps:$4 sm:$0xff]  }
 0x1cc   :  { %3043 = vmatpush2.bf16.msra.mxu0 %v8692_v32  ;;  %v8748_v32 = vld [vmem:[#allocation8 + $0x1ec] ss:$16 sps:$4 sm:$0xff]  }
 0x1cd   :  { %3096 = vmatpush2.bf16.msra.mxu1 %v8695_v36  ;;  %3118 = vmatprep.subr.bf16.mxu0 %v8700_v38  ;;  %v8746_v36 = vld [vmem:[#allocation8 + $0x1e8] ss:$16 sps:$4 sm:$0xff]  }
 0x1ce   :  { %3171 = vmatprep.subr.bf16.mxu1 %v8703_v39  ;;  %v8749_v38 = vld [vmem:[#allocation8 + $0x3e8] ss:$16 sps:$4 sm:$0xff]   ;;  %v8754_v39 = vld [vmem:[#allocation8 + $0x1cc] ss:$16 sps:$4 sm:$0xff]  }
 0x1cf   :  { %3045 = vmatmul.mubr.bf16.vlgmr.msra.gmra.mxu0 %v10092_v43 }
 0x1d0   :  { %3098 = vmatmul.mubr.bf16.vlgmr.msra.gmra.mxu1 %v10096_v47  ;;  %3119 = vmatpush1.bf16.msra.mxu0 %v8698_v41  ;;  %v8752_v41 = vld [vmem:[#allocation8 + $0x1c8] ss:$16 sps:$4 sm:$0xff]  }
 0x1d1   :  { %3172 = vmatpush1.bf16.msra.mxu1 %v8701_v44  ;;  %3120 = vmatprep.subr.bf16.mxu0 %v8706_v45  ;;  %v8760_v44 = vld [vmem:[#allocation8 + $0x1ac] ss:$16 sps:$4 sm:$0xff]  }
 0x1d2   :  { %3173 = vmatprep.subr.bf16.mxu1 %v8709_v50  ;;  %3054 = vmatprep.mubr.bf16.mxu0 %v10098_v49  ;;  %v8763_v45 = vld [vmem:[#allocation8 + $0x3ac] ss:$16 sps:$4 sm:$0xff]   ;;  %v8758_v50 = vld [vmem:[#allocation8 + $0x1a8] ss:$16 sps:$4 sm:$0xff]  }
 0x1d3   :  { %3107 = vmatprep.mubr.bf16.mxu1 %v10101_v52 }
 0x1d4   :  { %3121 = vmatpush1.bf16.msra.mxu0 %v8704_v33  ;;  %v8761_v33 = vld [vmem:[#allocation8 + $0x3a8] ss:$16 sps:$4 sm:$0xff]  }
 0x1d5   :  { %3174 = vmatpush1.bf16.msra.mxu1 %v8707_v46  ;;  %3122 = vmatprep.subr.bf16.mxu0 %v8712_v53  ;;  %v8766_v46 = vld [vmem:[#allocation8 + $0x18c] ss:$16 sps:$4 sm:$0xff]  }
 0x1d6   :  { %3175 = vmatprep.subr.bf16.mxu1 %v8715_v35  ;;  %v8769_v53 = vld [vmem:[#allocation8 + $0x38c] ss:$16 sps:$4 sm:$0xff]   ;;  %v8764_v35 = vld [vmem:[#allocation8 + $0x188] ss:$16 sps:$4 sm:$0xff]  }
 0x1d7   :  { %3055 = vmatmul.mubr.bf16.gmra.mxu0 %v10105_v48 }
 0x1d8   :  { %3108 = vmatmul.mubr.bf16.gmra.mxu1 %v10108_v56  ;;  %3123 = vmatpush1.bf16.msra.mxu0 %v8710_v57  ;;  %v8767_v57 = vld [vmem:[#allocation8 + $0x388] ss:$16 sps:$4 sm:$0xff]  }
 0x1d9   :  { %3150 = vmatprep.mubr.bf16.mxu0 %v10044_v51  ;;  %3176 = vmatpush1.bf16.msra.mxu1 %v8713_v58  ;;  %v8731_v51 = vld [vmem:[#allocation8 + $0x248] ss:$16 sps:$4 sm:$0xff]   ;;  %v8772_v58 = vld [vmem:[#allocation8 + $0x16c] ss:$16 sps:$4 sm:$0xff]  }
 0x1da   :  { %3203 = vmatprep.mubr.bf16.mxu1 %v10048_v55  ;;  %3124 = vmatprep.subr.bf16.mxu0 %v8718_v60  ;;  %v8734_v55 = vld [vmem:[#allocation8 + $0x28] ss:$16 sps:$4 sm:$0xff]   ;;  %v8775_v60 = vld [vmem:[#allocation8 + $0x36c] ss:$16 sps:$4 sm:$0xff]  }
 0x1db   :  { %3177 = vmatprep.subr.bf16.mxu1 %v8721_v61  ;;  %v8770_v61 = vld [vmem:[#allocation8 + $0x168] ss:$16 sps:$4 sm:$0xff]  }
 0x1dc   :  { %3125 = vmatpush1.bf16.msra.mxu0 %v8716_v1  ;;  %v8773_v1 = vld [vmem:[#allocation8 + $0x368] ss:$16 sps:$4 sm:$0xff]  }
 0x1dd   :  { %3178 = vmatpush1.bf16.msra.mxu1 %v8719_v2  ;;  %3126 = vmatprep.subr.bf16.mxu0 %v8724_v3  ;;  %v8778_v2 = vld [vmem:[#allocation8 + $0x14c] ss:$16 sps:$4 sm:$0xff]  }
 0x1de   :  { %3179 = vmatprep.subr.bf16.mxu1 %v8727_v5  ;;  %v8781_v3 = vld [vmem:[#allocation8 + $0x34c] ss:$16 sps:$4 sm:$0xff]   ;;  %v8776_v5 = vld [vmem:[#allocation8 + $0x148] ss:$16 sps:$4 sm:$0xff]  }
 0x1e0   :  { %3127 = vmatpush1.bf16.msra.mxu0 %v8722_v6  ;;  %v860_v6 = vlaneseq }
 0x1e1   :  { %3180 = vmatpush1.bf16.msra.mxu1 %v8725_v7  ;;  %3128 = vmatprep.subr.bf16.mxu0 %v8730_v11  ;;  %v8779_v7 = vld [vmem:[#allocation8 + $0x348] ss:$16 sps:$4 sm:$0xff]   ;;  %v8784_v11 = vld [vmem:[#allocation8 + $0x12c] ss:$16 sps:$4 sm:$0xff]  }
 0x1e2   :  { %3181 = vmatprep.subr.bf16.mxu1 %v8733_v12  ;;  %v8787_v12 = vld [vmem:[#allocation8 + $0x32c] ss:$16 sps:$4 sm:$0xff]  }
 0x1e4   :  { %3129 = vmatpush1.bf16.msra.mxu0 %v8728_v16  ;;  %v8782_v16 = vld [vmem:[#allocation8 + $0x128] ss:$16 sps:$4 sm:$0xff]  }
 0x1e5   :  { %3182 = vmatpush1.bf16.msra.mxu1 %v8731_v51  ;;  %3130 = vmatprep.subr.bf16.mxu0 %v8736_v19  ;;  %v10114_v51 = vshrl.u32 %v860_v6, 7  ;;  %v8785_v19 = vld [vmem:[#allocation8 + $0x328] ss:$16 sps:$4 sm:$0xff]  }
 0x1e6   :  { %3183 = vmatprep.subr.bf16.mxu1 %v8739_v20  ;;  %v8790_v20 = vld [vmem:[#allocation8 + $0x10c] ss:$16 sps:$4 sm:$0xff]  }
 0x1e7   :  { %10942 = vst [vmem:[#allocation31_spill] sm:$0xff] %v10114_v51 }
 0x1e8   :  { %3131 = vmatpush1.bf16.msra.mxu0 %v8734_v55  ;;  %v8793_v55 = vld [vmem:[#allocation8 + $0x30c] ss:$16 sps:$4 sm:$0xff]  }
 0x1e9   :  { %3184 = vmatpush1.bf16.msra.mxu1 %v8737_v23  ;;  %3132 = vmatprep.subr.bf16.mxu0 %v8742_v26  ;;  %v8788_v23 = vld [vmem:[#allocation8 + $0x108] ss:$16 sps:$4 sm:$0xff]   ;;  %v10117_v26 = vsub.s32 0, %v10114_v51 }
 0x1ea   :  { %3185 = vmatprep.subr.bf16.mxu1 %v8745_v28  ;;  %v8791_v28 = vld [vmem:[#allocation8 + $0x308] ss:$16 sps:$4 sm:$0xff]  }
 0x1ec   :  { %3133 = vmatpush1.bf16.msra.mxu0 %v8740_v30  ;;  %v8796_v30 = vld [vmem:[#allocation8 + $0x4ec] ss:$16 sps:$4 sm:$0xff]  }
 0x1ed   :  { %3186 = vmatpush1.bf16.msra.mxu1 %v8743_v31  ;;  %3134 = vmatprep.subr.bf16.mxu0 %v8748_v32  ;;  %v10119_v31 = vld [vmem:[#allocation9] sm:$0xf]  ;;  %v8799_v32 = vld [vmem:[#allocation8 + $0x6ec] ss:$16 sps:$4 sm:$0xff]  }
 0x1ee   :  { %3187 = vmatprep.subr.bf16.mxu1 %v8751_v34  ;;  %v10122_v34 = vsub.s32 1, %v10114_v51 }
 0x1f0   :  { %3135 = vmatpush2.bf16.msra.mxu0 %v8746_v36  ;;  %v10126_v36 = vrot.slane %v10119_v31, %v10117_v26 }
 0x1f1   :  { %3188 = vmatpush2.bf16.msra.mxu1 %v8749_v38  ;;  %3136 = vmatprep.subr.bf16.mxu0 %v8754_v39  ;;  %v8794_v38 = vld [vmem:[#allocation8 + $0x4e8] ss:$16 sps:$4 sm:$0xff]  }
 0x1f2   :  { %3189 = vmatprep.subr.bf16.mxu1 %v8757_v40  ;;  %v8797_v39 = vld [vmem:[#allocation8 + $0x6e8] ss:$16 sps:$4 sm:$0xff]   ;;  %v10130_v40 = vrot.slane %v10119_v31, %v10122_v34 }
 0x1f4   :  { %3137 = vmatpush2.bf16.msra.mxu0 %v8752_v41  ;;  %v8802_v41 = vld [vmem:[#allocation8 + $0x4cc] ss:$16 sps:$4 sm:$0xff]  }
 0x1f5   :  { %3190 = vmatpush2.bf16.msra.mxu1 %v8755_v42  ;;  %3138 = vmatprep.subr.bf16.mxu0 %v8760_v44  ;;  %v8805_v44 = vld [vmem:[#allocation8 + $0x6cc] ss:$16 sps:$4 sm:$0xff]  }
 0x1f6   :  { %3191 = vmatprep.subr.bf16.mxu1 %v8763_v45 }
 0x1f8   :  { %3139 = vmatpush2.bf16.msra.mxu0 %v8758_v50 }
 0x1f9   :  { %3192 = vmatpush2.bf16.msra.mxu1 %v8761_v33  ;;  %3140 = vmatprep.subr.bf16.mxu0 %v8766_v46  ;;  %v8800_v46 = vld [vmem:[#allocation8 + $0x4c8] ss:$16 sps:$4 sm:$0xff]  }
 0x1fa   :  { %3193 = vmatprep.subr.bf16.mxu1 %v8769_v53 }
 0x1fc   :  { %3141 = vmatpush2.bf16.msra.mxu0 %v8764_v35 }
 0x1fd   :  { %3194 = vmatpush2.bf16.msra.mxu1 %v8767_v57  ;;  %3142 = vmatprep.subr.bf16.mxu0 %v8772_v58  ;;  %v8803_v57 = vld [vmem:[#allocation8 + $0x6c8] ss:$16 sps:$4 sm:$0xff]   ;;  %v8808_v58 = vld [vmem:[#allocation8 + $0x4ac] ss:$16 sps:$4 sm:$0xff]  }
 0x1fe   :  { %3195 = vmatprep.subr.bf16.mxu1 %v8775_v60  ;;  %v8811_v60 = vld [vmem:[#allocation8 + $0x6ac] ss:$16 sps:$4 sm:$0xff]  }
 0x200   :  { %3143 = vmatpush2.bf16.msra.mxu0 %v8770_v61 }
 0x201   :  { %3196 = vmatpush2.bf16.msra.mxu1 %v8773_v1  ;;  %3144 = vmatprep.subr.bf16.mxu0 %v8778_v2  ;;  %v8806_v2 = vld [vmem:[#allocation8 + $0x4a8] ss:$16 sps:$4 sm:$0xff]  }
 0x202   :  { %3197 = vmatprep.subr.bf16.mxu1 %v8781_v3 }
 0x204   :  { %3145 = vmatpush2.bf16.msra.mxu0 %v8776_v5 }
 0x205   :  { %3198 = vmatpush2.bf16.msra.mxu1 %v8779_v7  ;;  %3146 = vmatprep.subr.bf16.mxu0 %v8784_v11  ;;  %v8809_v7 = vld [vmem:[#allocation8 + $0x6a8] ss:$16 sps:$4 sm:$0xff]   ;;  %v8814_v11 = vld [vmem:[#allocation8 + $0x48c] ss:$16 sps:$4 sm:$0xff]  }
 0x206   :  { %3199 = vmatprep.subr.bf16.mxu1 %v8787_v12  ;;  %v8817_v12 = vld [vmem:[#allocation8 + $0x68c] ss:$16 sps:$4 sm:$0xff]  }
 0x208   :  { %3147 = vmatpush2.bf16.msra.mxu0 %v8782_v16 }
 0x209   :  { %3200 = vmatpush2.bf16.msra.mxu1 %v8785_v19  ;;  %3148 = vmatprep.subr.bf16.mxu0 %v8790_v20 }
 0x20a   :  { %3201 = vmatprep.subr.bf16.mxu1 %v8793_v55 }
 0x20c   :  { %3149 = vmatpush2.bf16.msra.mxu0 %v8788_v23  ;;  %v8812_v23 = vld [vmem:[#allocation8 + $0x488] ss:$16 sps:$4 sm:$0xff]  }
 0x20d   :  { %3202 = vmatpush2.bf16.msra.mxu1 %v8791_v28  ;;  %3224 = vmatprep.subr.bf16.mxu0 %v8796_v30  ;;  %v8820_v30 = vld [vmem:[#allocation8 + $0x46c] ss:$16 sps:$4 sm:$0xff]  }
 0x20e   :  { %3277 = vmatprep.subr.bf16.mxu1 %v8799_v32 }
 0x20f   :  { %3151 = vmatmul.mubr.bf16.vlgmr.msra.gmra.mxu0 %v10046_v54  ;;  %v2834_v42 = vpop.f32.mrf.mxu0 }
 0x210   :  { %3204 = vmatmul.mubr.bf16.vlgmr.msra.gmra.mxu1 %v10050_v59  ;;  %v2835_v45 = vadd.f32 %v2834_v42, %v10126_v36  ;;  %v2887_v50 = vpop.f32.mrf.mxu1  ;;  %3160 = vmatprep.mubr.bf16.mxu0 %v10058_v14 }
 0x211   :  { %3213 = vmatprep.mubr.bf16.mxu1 %v10062_v21  ;;  %3225 = vmatpush1.bf16.msra.mxu0 %v8794_v38  ;;  %v2836_v33 = vpop.f32.mrf.mxu0 }
 0x212   :  { %v10137_v53 = vadd.f32 %v2887_v50, %v2835_v45  ;;  %3278 = vmatpush1.bf16.msra.mxu1 %v8797_v39  ;;  %v2837_v35 = vadd.f32 %v2836_v33, %v10130_v40  ;;  %v2889_v54 = vpop.f32.mrf.mxu1  ;;  %3226 = vmatprep.subr.bf16.mxu0 %v8802_v41  ;;  %v8818_v45 = vld [vmem:[#allocation8 + $0x468] ss:$16 sps:$4 sm:$0xff]   ;;  %v8826_v33 = vld [vmem:[#allocation8 + $0x44c] ss:$16 sps:$4 sm:$0xff]  }
 0x213   :  { %3279 = vmatprep.subr.bf16.mxu1 %v8805_v44  ;;  %v2838_v59 = vpop.f32.mrf.mxu0  ;;  %v8821_v50 = vld [vmem:[#allocation8 + $0x668] ss:$16 sps:$4 sm:$0xff]  }
 0x214   :  { %v10140_v61 = vadd.f32 %v2889_v54, %v2837_v35  ;;  %v2839_v14 = vadd.f32 %v2838_v59, %v10126_v36  ;;  %v2891_v21 = vpop.f32.mrf.mxu1  ;;  %v8827_v59 = vld [vmem:[#allocation8 + $0x648] ss:$16 sps:$4 sm:$0xff]  }
 0x215   :  { %3227 = vmatpush1.bf16.msra.mxu0 %v8800_v46  ;;  %v2840_v1 = vpop.f32.mrf.mxu0 }
 0x216   :  { %v10143_v3 = vadd.f32 %v2891_v21, %v2839_v14  ;;  %3280 = vmatpush1.bf16.msra.mxu1 %v8803_v57  ;;  %v2841_v5 = vadd.f32 %v2840_v1, %v10130_v40  ;;  %v2893_v6 = vpop.f32.mrf.mxu1  ;;  %3228 = vmatprep.subr.bf16.mxu0 %v8808_v58  ;;  %v8829_v57 = vld [vmem:[#allocation8 + $0x64c] ss:$16 sps:$4 sm:$0xff]   ;;  %v8830_v21 = vld [vmem:[#allocation8 + $0x428] ss:$16 sps:$4 sm:$0xff]  }
 0x217   :  { %3161 = vmatmul.mubr.bf16.gmra.mxu0 %v10056_v10  ;;  %3281 = vmatprep.subr.bf16.mxu1 %v8811_v60  ;;  %v2844_v16 = vpop.f32.mrf.mxu0  ;;  %v8815_v10 = vld [vmem:[#allocation8 + $0x688] ss:$16 sps:$4 sm:$0xff]   ;;  %v8832_v60 = vld [vmem:[#allocation8 + $0x42c] ss:$16 sps:$4 sm:$0xff]  }
 0x218   :  { %v10147_v19 = vadd.f32 %v2893_v6, %v2841_v5  ;;  %3214 = vmatmul.mubr.bf16.gmra.mxu1 %v10060_v15  ;;  %v2845_v20 = vadd.f32 %v2844_v16, %v10126_v36  ;;  %v2897_v55 = vpop.f32.mrf.mxu1  ;;  %3256 = vmatprep.mubr.bf16.mxu0 %v9981_v17  ;;  %v8823_v15 = vld [vmem:[#allocation8 + $0x66c] ss:$16 sps:$4 sm:$0xff]   ;;  %v8836_v5 = vld [vmem:[#allocation8 + $0x408] ss:$16 sps:$4 sm:$0xff]  }
 0x219   :  { %3229 = vmatpush1.bf16.msra.mxu0 %v8806_v2  ;;  %v2846_v28 = vpop.f32.mrf.mxu0  ;;  %3309 = vmatprep.mubr.bf16.mxu1 %v9983_v18  ;;  %v8835_v14 = vld [vmem:[#allocation8 + $0x62c] ss:$16 sps:$4 sm:$0xff]   ;;  %v8839_v6 = vld [vmem:[#allocation8 + $0x608] ss:$16 sps:$4 sm:$0xff]  }
 0x21a   :  { %3282 = vmatpush1.bf16.msra.mxu1 %v8809_v7  ;;  %3230 = vmatprep.subr.bf16.mxu0 %v8814_v11  ;;  %v2847_v32 = vadd.f32 %v2846_v28, %v10130_v40  ;;  %v10154_v38 = vadd.f32 %v2897_v55, %v2845_v20  ;;  %v2899_v39 = vpop.f32.mrf.mxu1  ;;  %v8838_v1 = vld [vmem:[#allocation8 + $0x40c] ss:$16 sps:$4 sm:$0xff]   ;;  %v8845_v16 = vld [vmem:[#allocation8 + $0x7e8] ss:$16 sps:$4 sm:$0xff]  }
 0x21b   :  { %3283 = vmatprep.subr.bf16.mxu1 %v8817_v12  ;;  %v2848_v41 = vpop.f32.mrf.mxu0  ;;  %v8841_v2 = vld [vmem:[#allocation8 + $0x60c] ss:$16 sps:$4 sm:$0xff]   ;;  %v8842_v12 = vld [vmem:[#allocation8 + $0x5e8] ss:$16 sps:$4 sm:$0xff]  }
 0x21c   :  { %v2849_v42 = vadd.f32 %v2848_v41, %v10126_v36  ;;  %v10157_v17 = vadd.f32 %v2899_v39, %v2847_v32  ;;  %v2901_v44 = vpop.f32.mrf.mxu1  ;;  %v8824_v36 = vld [vmem:[#allocation8 + $0x448] ss:$16 sps:$4 sm:$0xff]   ;;  %v8844_v7 = vld [vmem:[#allocation8 + $0x5ec] ss:$16 sps:$4 sm:$0xff]  }
 0x21d   :  { %3231 = vmatpush1.bf16.msra.mxu0 %v8812_v23  ;;  %v2850_v18 = vpop.f32.mrf.mxu0  ;;  %v8847_v11 = vld [vmem:[#allocation8 + $0x7ec] ss:$16 sps:$4 sm:$0xff]   ;;  %v8848_v23 = vld [vmem:[#allocation8 + $0x5c8] ss:$16 sps:$4 sm:$0xff]  }
 0x21e   :  { %3284 = vmatpush1.bf16.msra.mxu1 %v8815_v10  ;;  %3232 = vmatprep.subr.bf16.mxu0 %v8820_v30  ;;  %v2851_v46 = vadd.f32 %v2850_v18, %v10130_v40  ;;  %v10160_v35 = vadd.f32 %v2901_v44, %v2849_v42  ;;  %v2903_v54 = vpop.f32.mrf.mxu1  ;;  %v8833_v40 = vld [vmem:[#allocation8 + $0x628] ss:$16 sps:$4 sm:$0xff]   ;;  %v8850_v20 = vld [vmem:[#allocation8 + $0x5cc] ss:$16 sps:$4 sm:$0xff]  }
 0x21f   :  { %3285 = vmatprep.subr.bf16.mxu1 %v8823_v15  ;;  %v8853_v55 = vld [vmem:[#allocation8 + $0x7cc] ss:$16 sps:$4 sm:$0xff]   ;;  %v8851_v28 = vld [vmem:[#allocation8 + $0x7c8] ss:$16 sps:$4 sm:$0xff]  }
 0x220   :  { %v10162_v58 = vadd.f32 %v2903_v54, %v2851_v46  ;;  %v8856_v10 = vld [vmem:[#allocation8 + $0x5ac] ss:$16 sps:$4 sm:$0xff]   ;;  %v8854_v32 = vld [vmem:[#allocation8 + $0x5a8] ss:$16 sps:$4 sm:$0xff]  }
 0x221   :  { %3233 = vmatpush1.bf16.msra.mxu0 %v8818_v45  ;;  %v8859_v30 = vld [vmem:[#allocation8 + $0x7ac] ss:$16 sps:$4 sm:$0xff]   ;;  %v8857_v39 = vld [vmem:[#allocation8 + $0x7a8] ss:$16 sps:$4 sm:$0xff]  }
 0x222   :  { %3286 = vmatpush1.bf16.msra.mxu1 %v8821_v50  ;;  %3234 = vmatprep.subr.bf16.mxu0 %v8826_v33  ;;  %v8862_v15 = vld [vmem:[#allocation8 + $0x58c] ss:$16 sps:$4 sm:$0xff]   ;;  %v8860_v42 = vld [vmem:[#allocation8 + $0x588] ss:$16 sps:$4 sm:$0xff]  }
 0x223   :  { %3287 = vmatprep.subr.bf16.mxu1 %v8829_v57  ;;  %v8865_v41 = vld [vmem:[#allocation8 + $0x78c] ss:$16 sps:$4 sm:$0xff]   ;;  %v8863_v44 = vld [vmem:[#allocation8 + $0x788] ss:$16 sps:$4 sm:$0xff]  }
 0x224   :  { %v8868_v45 = vld [vmem:[#allocation8 + $0x56c] ss:$16 sps:$4 sm:$0xff]   ;;  %v8866_v50 = vld [vmem:[#allocation8 + $0x568] ss:$16 sps:$4 sm:$0xff]  }
 0x225   :  { %3235 = vmatpush1.bf16.msra.mxu0 %v8824_v36  ;;  %v8871_v18 = vld [vmem:[#allocation8 + $0x76c] ss:$16 sps:$4 sm:$0xff]   ;;  %v8869_v33 = vld [vmem:[#allocation8 + $0x768] ss:$16 sps:$4 sm:$0xff]  }
 0x226   :  { %3288 = vmatpush1.bf16.msra.mxu1 %v8827_v59  ;;  %3236 = vmatprep.subr.bf16.mxu0 %v8832_v60  ;;  %v8874_v46 = vld [vmem:[#allocation8 + $0x54c] ss:$16 sps:$4 sm:$0xff]   ;;  %v8872_v57 = vld [vmem:[#allocation8 + $0x548] ss:$16 sps:$4 sm:$0xff]  }
 0x227   :  { %3289 = vmatprep.subr.bf16.mxu1 %v8835_v14  ;;  %v8877_v54 = vld [vmem:[#allocation8 + $0x74c] ss:$16 sps:$4 sm:$0xff]   ;;  %v8875_v36 = vld [vmem:[#allocation8 + $0x748] ss:$16 sps:$4 sm:$0xff]  }
 0x228   :  { %v8880_v59 = vld [vmem:[#allocation8 + $0x52c] ss:$16 sps:$4 sm:$0xff]   ;;  %v8878_v14 = vld [vmem:[#allocation8 + $0x528] ss:$16 sps:$4 sm:$0xff]  }
 0x229   :  { %3237 = vmatpush1.bf16.msra.mxu0 %v8830_v21  ;;  %v8883_v60 = vld [vmem:[#allocation8 + $0x72c] ss:$16 sps:$4 sm:$0xff]   ;;  %v8881_v21 = vld [vmem:[#allocation8 + $0x728] ss:$16 sps:$4 sm:$0xff]  }
 0x22a   :  { %3290 = vmatpush1.bf16.msra.mxu1 %v8833_v40  ;;  %3238 = vmatprep.subr.bf16.mxu0 %v8838_v1  ;;  %v8886_v40 = vld [vmem:[#allocation8 + $0x50c] ss:$16 sps:$4 sm:$0xff]  }
 0x22b   :  { %3291 = vmatprep.subr.bf16.mxu1 %v8841_v2  ;;  %v8889_v1 = vld [vmem:[#allocation8 + $0x70c] ss:$16 sps:$4 sm:$0xff]   ;;  %v8884_v2 = vld [vmem:[#allocation8 + $0x508] ss:$16 sps:$4 sm:$0xff]  }
 0x22d   :  { %3239 = vmatpush1.bf16.msra.mxu0 %v8836_v5  ;;  %v8887_v5 = vld [vmem:[#allocation8 + $0x708] ss:$16 sps:$4 sm:$0xff]  }
 0x22e   :  { %3292 = vmatpush1.bf16.msra.mxu1 %v8839_v6  ;;  %3240 = vmatprep.subr.bf16.mxu0 %v8844_v7  ;;  %v8892_v6 = vld [vmem:[#allocation8 + $0x8ec] ss:$16 sps:$4 sm:$0xff]  }
 0x22f   :  { %3293 = vmatprep.subr.bf16.mxu1 %v8847_v11  ;;  %v8895_v7 = vld [vmem:[#allocation8 + $0xaec] ss:$16 sps:$4 sm:$0xff]   ;;  %v8890_v11 = vld [vmem:[#allocation8 + $0x8e8] ss:$16 sps:$4 sm:$0xff]  }
 0x231   :  { %3241 = vmatpush2.bf16.msra.mxu0 %v8842_v12  ;;  %v8893_v12 = vld [vmem:[#allocation8 + $0xae8] ss:$16 sps:$4 sm:$0xff]  }
 0x232   :  { %3294 = vmatpush2.bf16.msra.mxu1 %v8845_v16  ;;  %3242 = vmatprep.subr.bf16.mxu0 %v8850_v20  ;;  %v8898_v16 = vld [vmem:[#allocation8 + $0x8cc] ss:$16 sps:$4 sm:$0xff]  }
 0x233   :  { %3295 = vmatprep.subr.bf16.mxu1 %v8853_v55  ;;  %v8901_v55 = vld [vmem:[#allocation8 + $0xacc] ss:$16 sps:$4 sm:$0xff]  }
 0x235   :  { %3243 = vmatpush2.bf16.msra.mxu0 %v8848_v23 }
 0x236   :  { %3296 = vmatpush2.bf16.msra.mxu1 %v8851_v28  ;;  %3244 = vmatprep.subr.bf16.mxu0 %v8856_v10 }
 0x237   :  { %3297 = vmatprep.subr.bf16.mxu1 %v8859_v30  ;;  %v8896_v30 = vld [vmem:[#allocation8 + $0x8c8] ss:$16 sps:$4 sm:$0xff]  }
 0x239   :  { %3245 = vmatpush2.bf16.msra.mxu0 %v8854_v32 }
 0x23a   :  { %3298 = vmatpush2.bf16.msra.mxu1 %v8857_v39  ;;  %3246 = vmatprep.subr.bf16.mxu0 %v8862_v15 }
 0x23b   :  { %3299 = vmatprep.subr.bf16.mxu1 %v8865_v41  ;;  %v8899_v41 = vld [vmem:[#allocation8 + $0xac8] ss:$16 sps:$4 sm:$0xff]  }
 0x23d   :  { %3247 = vmatpush2.bf16.msra.mxu0 %v8860_v42  ;;  %v8904_v42 = vld [vmem:[#allocation8 + $0x8ac] ss:$16 sps:$4 sm:$0xff]  }
 0x23e   :  { %3300 = vmatpush2.bf16.msra.mxu1 %v8863_v44  ;;  %3248 = vmatprep.subr.bf16.mxu0 %v8868_v45 }
 0x23f   :  { %3301 = vmatprep.subr.bf16.mxu1 %v8871_v18 }
 0x241   :  { %3249 = vmatpush2.bf16.msra.mxu0 %v8866_v50  ;;  %v8902_v50 = vld [vmem:[#allocation8 + $0x8a8] ss:$16 sps:$4 sm:$0xff]  }
 0x242   :  { %3302 = vmatpush2.bf16.msra.mxu1 %v8869_v33  ;;  %3250 = vmatprep.subr.bf16.mxu0 %v8874_v46 }
 0x243   :  { %3303 = vmatprep.subr.bf16.mxu1 %v8877_v54  ;;  %v8905_v54 = vld [vmem:[#allocation8 + $0xaa8] ss:$16 sps:$4 sm:$0xff]  }
 0x245   :  { %3251 = vmatpush2.bf16.msra.mxu0 %v8872_v57  ;;  %v8910_v57 = vld [vmem:[#allocation8 + $0x88c] ss:$16 sps:$4 sm:$0xff]  }
 0x246   :  { %3304 = vmatpush2.bf16.msra.mxu1 %v8875_v36  ;;  %3252 = vmatprep.subr.bf16.mxu0 %v8880_v59  ;;  %v8913_v59 = vld [vmem:[#allocation8 + $0xa8c] ss:$16 sps:$4 sm:$0xff]  }
 0x247   :  { %3305 = vmatprep.subr.bf16.mxu1 %v8883_v60 }
 0x249   :  { %3253 = vmatpush2.bf16.msra.mxu0 %v8878_v14  ;;  %v8908_v14 = vld [vmem:[#allocation8 + $0x888] ss:$16 sps:$4 sm:$0xff]  }
 0x24a   :  { %3306 = vmatpush2.bf16.msra.mxu1 %v8881_v21  ;;  %3254 = vmatprep.subr.bf16.mxu0 %v8886_v40 }
 0x24b   :  { %3307 = vmatprep.subr.bf16.mxu1 %v8889_v1  ;;  %v8911_v1 = vld [vmem:[#allocation8 + $0xa88] ss:$16 sps:$4 sm:$0xff]  }
 0x24d   :  { %3255 = vmatpush2.bf16.msra.mxu0 %v8884_v2  ;;  %v8916_v2 = vld [vmem:[#allocation8 + $0x86c] ss:$16 sps:$4 sm:$0xff]  }
 0x24e   :  { %3308 = vmatpush2.bf16.msra.mxu1 %v8887_v5  ;;  %3330 = vmatprep.subr.bf16.mxu0 %v8892_v6  ;;  %v8922_v5 = vld [vmem:[#allocation8 + $0x84c] ss:$16 sps:$4 sm:$0xff]   ;;  %v8920_v6 = vld [vmem:[#allocation8 + $0x848] ss:$16 sps:$4 sm:$0xff]  }
 0x24f   :  { %v2940_v20 = vpop.f32.mrf.mxu0  ;;  %3383 = vmatprep.subr.bf16.mxu1 %v8895_v7  ;;  %v8923_v7 = vld [vmem:[#allocation8 + $0xa48] ss:$16 sps:$4 sm:$0xff]  }
 0x250   :  { %v2941_v23 = vadd.f32 %v2940_v20, %v10137_v53  ;;  %v2993_v28 = vpop.f32.mrf.mxu1  ;;  %3257 = vmatmul.mubr.bf16.vlgmr.msra.gmra.mxu0 %v9995_v22  ;;  %v8907_v53 = vld [vmem:[#allocation8 + $0xaac] ss:$16 sps:$4 sm:$0xff]  }
 0x251   :  { %3310 = vmatmul.mubr.bf16.vlgmr.msra.gmra.mxu1 %v10002_v24  ;;  %3331 = vmatpush1.bf16.msra.mxu0 %v8890_v11  ;;  %v2942_v10 = vpop.f32.mrf.mxu0  ;;  %v8928_v11 = vld [vmem:[#allocation8 + $0x82c] ss:$16 sps:$4 sm:$0xff]  }
 0x252   :  { %v10167_v32 = vadd.f32 %v2993_v28, %v2941_v23  ;;  %3384 = vmatpush1.bf16.msra.mxu1 %v8893_v12  ;;  %v2943_v39 = vadd.f32 %v2942_v10, %v10140_v61  ;;  %v2995_v15 = vpop.f32.mrf.mxu1  ;;  %3332 = vmatprep.subr.bf16.mxu0 %v8898_v16  ;;  %v8926_v12 = vld [vmem:[#allocation8 + $0x828] ss:$16 sps:$4 sm:$0xff]   ;;  %v8934_v20 = vld [vmem:[#allocation8 + $0x80c] ss:$16 sps:$4 sm:$0xff]  }
 0x253   :  { %v2944_v44 = vpop.f32.mrf.mxu0  ;;  %3385 = vmatprep.subr.bf16.mxu1 %v8901_v55  ;;  %3266 = vmatprep.mubr.bf16.mxu0 %v9943_v4  ;;  %v8929_v16 = vld [vmem:[#allocation8 + $0xa28] ss:$16 sps:$4 sm:$0xff]   ;;  %v8937_v55 = vld [vmem:[#allocation8 + $0xa0c] ss:$16 sps:$4 sm:$0xff]  }
 0x254   :  { %v10171_v22 = vadd.f32 %v2995_v15, %v2943_v39  ;;  %v2945_v24 = vadd.f32 %v2944_v44, %v10143_v3  ;;  %v2997_v45 = vpop.f32.mrf.mxu1  ;;  %3319 = vmatprep.mubr.bf16.mxu1 %v9954_v8  ;;  %v8932_v23 = vld [vmem:[#allocation8 + $0x808] ss:$16 sps:$4 sm:$0xff]   ;;  %v8940_v10 = vld [vmem:[#allocation8 + $0x9ec] ss:$16 sps:$4 sm:$0xff]  }
 0x255   :  { %3333 = vmatpush1.bf16.msra.mxu0 %v8896_v30  ;;  %v2946_v18 = vpop.f32.mrf.mxu0  ;;  %v8935_v28 = vld [vmem:[#allocation8 + $0xa08] ss:$16 sps:$4 sm:$0xff]   ;;  %v8943_v30 = vld [vmem:[#allocation8 + $0xbec] ss:$16 sps:$4 sm:$0xff]  }
 0x256   :  { %v10175_v61 = vadd.f32 %v2997_v45, %v2945_v24  ;;  %3386 = vmatpush1.bf16.msra.mxu1 %v8899_v41  ;;  %v2947_v33 = vadd.f32 %v2946_v18, %v10147_v19  ;;  %v2999_v46 = vpop.f32.mrf.mxu1  ;;  %3334 = vmatprep.subr.bf16.mxu0 %v8904_v42  ;;  %v8938_v39 = vld [vmem:[#allocation8 + $0x9e8] ss:$16 sps:$4 sm:$0xff]   ;;  %v8946_v41 = vld [vmem:[#allocation8 + $0x9cc] ss:$16 sps:$4 sm:$0xff]  }
 0x257   :  { %v2950_v4 = vpop.f32.mrf.mxu0  ;;  %3387 = vmatprep.subr.bf16.mxu1 %v8907_v53  ;;  %v8941_v15 = vld [vmem:[#allocation8 + $0xbe8] ss:$16 sps:$4 sm:$0xff]   ;;  %v8949_v42 = vld [vmem:[#allocation8 + $0xbcc] ss:$16 sps:$4 sm:$0xff]  }
 0x258   :  { %v10178_v36 = vadd.f32 %v2999_v46, %v2947_v33  ;;  %v2951_v3 = vadd.f32 %v2950_v4, %v10154_v38  ;;  %3267 = vmatmul.mubr.bf16.gmra.mxu0 %v9956_v9  ;;  %v3003_v8 = vpop.f32.mrf.mxu1  ;;  %v8919_v9 = vld [vmem:[#allocation8 + $0xa6c] ss:$16 sps:$4 sm:$0xff]   ;;  %v8944_v44 = vld [vmem:[#allocation8 + $0x9c8] ss:$16 sps:$4 sm:$0xff]  }
 0x259   :  { %3320 = vmatmul.mubr.bf16.gmra.mxu1 %v9968_v13  ;;  %3335 = vmatpush1.bf16.msra.mxu0 %v8902_v50  ;;  %v2952_v60 = vpop.f32.mrf.mxu0  ;;  %v8914_v13 = vld [vmem:[#allocation8 + $0x868] ss:$16 sps:$4 sm:$0xff]   ;;  %v8952_v24 = vld [vmem:[#allocation8 + $0x9ac] ss:$16 sps:$4 sm:$0xff]  }
 0x25a   :  { %3362 = vmatprep.mubr.bf16.mxu0 %v10082_v62  ;;  %3388 = vmatpush1.bf16.msra.mxu1 %v8905_v54  ;;  %v2953_v19 = vadd.f32 %v2952_v60, %v10157_v17  ;;  %v10185_v21 = vadd.f32 %v3003_v8, %v2951_v3  ;;  %v3005_v40 = vpop.f32.mrf.mxu1  ;;  %v8917_v62 = vld [vmem:[#allocation8 + $0xa68] ss:$16 sps:$4 sm:$0xff]   ;;  %v8925_v17 = vld [vmem:[#allocation8 + $0xa4c] ss:$16 sps:$4 sm:$0xff]  }
 0x25b   :  { %3415 = vmatprep.mubr.bf16.mxu1 %v10085_v63  ;;  %3336 = vmatprep.subr.bf16.mxu0 %v8910_v57  ;;  %v8931_v63 = vld [vmem:[#allocation8 + $0xa2c] ss:$16 sps:$4 sm:$0xff]   ;;  %v8947_v53 = vld [vmem:[#allocation8 + $0xbc8] ss:$16 sps:$4 sm:$0xff]  }
 0x25c   :  { %v10188_v38 = vadd.f32 %v3005_v40, %v2953_v19  ;;  %3389 = vmatprep.subr.bf16.mxu1 %v8913_v59  ;;  %v8955_v45 = vld [vmem:[#allocation8 + $0xbac] ss:$16 sps:$4 sm:$0xff]   ;;  %v8950_v18 = vld [vmem:[#allocation8 + $0x9a8] ss:$16 sps:$4 sm:$0xff]  }
 0x25d   :  { %3337 = vmatpush1.bf16.msra.mxu0 %v8908_v14  ;;  %v8953_v50 = vld [vmem:[#allocation8 + $0xba8] ss:$16 sps:$4 sm:$0xff]   ;;  %v8958_v33 = vld [vmem:[#allocation8 + $0x98c] ss:$16 sps:$4 sm:$0xff]  }
 0x25e   :  { %3390 = vmatpush1.bf16.msra.mxu1 %v8911_v1  ;;  %3338 = vmatprep.subr.bf16.mxu0 %v8916_v2  ;;  %v8961_v46 = vld [vmem:[#allocation8 + $0xb8c] ss:$16 sps:$4 sm:$0xff]   ;;  %v8956_v54 = vld [vmem:[#allocation8 + $0x988] ss:$16 sps:$4 sm:$0xff]  }
 0x25f   :  { %3391 = vmatprep.subr.bf16.mxu1 %v8919_v9  ;;  %v8959_v4 = vld [vmem:[#allocation8 + $0xb88] ss:$16 sps:$4 sm:$0xff]   ;;  %v8964_v57 = vld [vmem:[#allocation8 + $0x96c] ss:$16 sps:$4 sm:$0xff]  }
 0x260   :  { %v8967_v3 = vld [vmem:[#allocation8 + $0xb6c] ss:$16 sps:$4 sm:$0xff]   ;;  %v8962_v8 = vld [vmem:[#allocation8 + $0x968] ss:$16 sps:$4 sm:$0xff]  }
 0x261   :  { %3339 = vmatpush1.bf16.msra.mxu0 %v8914_v13  ;;  %v8965_v59 = vld [vmem:[#allocation8 + $0xb68] ss:$16 sps:$4 sm:$0xff]   ;;  %v8970_v60 = vld [vmem:[#allocation8 + $0x94c] ss:$16 sps:$4 sm:$0xff]  }
 0x262   :  { %3392 = vmatpush1.bf16.msra.mxu1 %v8917_v62  ;;  %3340 = vmatprep.subr.bf16.mxu0 %v8922_v5  ;;  %v8973_v14 = vld [vmem:[#allocation8 + $0xb4c] ss:$16 sps:$4 sm:$0xff]   ;;  %v8968_v19 = vld [vmem:[#allocation8 + $0x948] ss:$16 sps:$4 sm:$0xff]  }
 0x263   :  { %3393 = vmatprep.subr.bf16.mxu1 %v8925_v17  ;;  %v8971_v40 = vld [vmem:[#allocation8 + $0xb48] ss:$16 sps:$4 sm:$0xff]   ;;  %v8976_v1 = vld [vmem:[#allocation8 + $0x92c] ss:$16 sps:$4 sm:$0xff]   ;;  %v2954_v17 = vpop.f32.mrf.mxu0 }
 0x264   :  { %v8979_v2 = vld [vmem:[#allocation8 + $0xb2c] ss:$16 sps:$4 sm:$0xff]   ;;  %v8974_v9 = vld [vmem:[#allocation8 + $0x928] ss:$16 sps:$4 sm:$0xff]  }
 0x265   :  { %3341 = vmatpush1.bf16.msra.mxu0 %v8920_v6  ;;  %v8977_v13 = vld [vmem:[#allocation8 + $0xb28] ss:$16 sps:$4 sm:$0xff]   ;;  %v8982_v62 = vld [vmem:[#allocation8 + $0x90c] ss:$16 sps:$4 sm:$0xff]  }
 0x266   :  { %3394 = vmatpush1.bf16.msra.mxu1 %v8923_v7  ;;  %3342 = vmatprep.subr.bf16.mxu0 %v8928_v11  ;;  %v8985_v5 = vld [vmem:[#allocation8 + $0xb0c] ss:$16 sps:$4 sm:$0xff]   ;;  %v8980_v6 = vld [vmem:[#allocation8 + $0x908] ss:$16 sps:$4 sm:$0xff]   ;;  %v3007_v7 = vpop.f32.mrf.mxu1 }
 0x267   :  { %3395 = vmatprep.subr.bf16.mxu1 %v8931_v63  ;;  %v8983_v11 = vld [vmem:[#allocation8 + $0xb08] ss:$16 sps:$4 sm:$0xff]   ;;  %v2956_v63 = vpop.f32.mrf.mxu0 }
 0x269   :  { %3343 = vmatpush1.bf16.msra.mxu0 %v8926_v12  ;;  %v3009_v12 = vpop.f32.mrf.mxu1 }
 0x26a   :  { %3396 = vmatpush1.bf16.msra.mxu1 %v8929_v16  ;;  %3344 = vmatprep.subr.bf16.mxu0 %v8934_v20 }
 0x26b   :  { %3397 = vmatprep.subr.bf16.mxu1 %v8937_v55 }
 0x26d   :  { %3345 = vmatpush1.bf16.msra.mxu0 %v8932_v23 }
 0x26e   :  { %3398 = vmatpush1.bf16.msra.mxu1 %v8935_v28  ;;  %3346 = vmatprep.subr.bf16.mxu0 %v8940_v10 }
 0x26f   :  { %3399 = vmatprep.subr.bf16.mxu1 %v8943_v30 }
 0x271   :  { %3347 = vmatpush2.bf16.msra.mxu0 %v8938_v39 }
 0x272   :  { %3400 = vmatpush2.bf16.msra.mxu1 %v8941_v15  ;;  %3348 = vmatprep.subr.bf16.mxu0 %v8946_v41 }
 0x273   :  { %3401 = vmatprep.subr.bf16.mxu1 %v8949_v42 }
 0x275   :  { %3349 = vmatpush2.bf16.msra.mxu0 %v8944_v44 }
 0x276   :  { %3402 = vmatpush2.bf16.msra.mxu1 %v8947_v53  ;;  %3350 = vmatprep.subr.bf16.mxu0 %v8952_v24  ;;  %v2957_v24 = vadd.f32 %v2956_v63, %v10162_v58 }
 0x277   :  { %3403 = vmatprep.subr.bf16.mxu1 %v8955_v45 }
 0x279   :  { %3351 = vmatpush2.bf16.msra.mxu0 %v8950_v18 }
 0x27a   :  { %3404 = vmatpush2.bf16.msra.mxu1 %v8953_v50  ;;  %3352 = vmatprep.subr.bf16.mxu0 %v8958_v33 }
 0x27b   :  { %3405 = vmatprep.subr.bf16.mxu1 %v8961_v46 }
 0x27d   :  { %3353 = vmatpush2.bf16.msra.mxu0 %v8956_v54 }
 0x27e   :  { %3406 = vmatpush2.bf16.msra.mxu1 %v8959_v4  ;;  %3354 = vmatprep.subr.bf16.mxu0 %v8964_v57  ;;  %v3010_v57 = vadd.f32 %v3009_v12, %v2957_v24 }
 0x27f   :  { %3407 = vmatprep.subr.bf16.mxu1 %v8967_v3 }
 0x281   :  { %3355 = vmatpush2.bf16.msra.mxu0 %v8962_v8 }
 0x282   :  { %3408 = vmatpush2.bf16.msra.mxu1 %v8965_v59  ;;  %3356 = vmatprep.subr.bf16.mxu0 %v8970_v60 }
 0x283   :  { %3409 = vmatprep.subr.bf16.mxu1 %v8973_v14 }
 0x285   :  { %3357 = vmatpush2.bf16.msra.mxu0 %v8968_v19 }
 0x286   :  { %3410 = vmatpush2.bf16.msra.mxu1 %v8971_v40  ;;  %3358 = vmatprep.subr.bf16.mxu0 %v8976_v1 }
 0x287   :  { %3411 = vmatprep.subr.bf16.mxu1 %v8979_v2 }
 0x289   :  { %3359 = vmatpush2.bf16.msra.mxu0 %v8974_v9 }
 0x28a   :  { %3412 = vmatpush2.bf16.msra.mxu1 %v8977_v13  ;;  %3360 = vmatprep.subr.bf16.mxu0 %v8982_v62 }
 0x28b   :  { %3413 = vmatprep.subr.bf16.mxu1 %v8985_v5 }
 0x28d   :  { %3361 = vmatpush2.bf16.msra.mxu0 %v8980_v6 }
 0x28e   :  { %3414 = vmatpush2.bf16.msra.mxu1 %v8983_v11 }
 0x28f   :  { %v3046_v16 = vpop.f32.mrf.mxu0 }
 0x290   :  { %v3047_v20 = vadd.f32 %v3046_v16, %v10167_v32  ;;  %v3099_v55 = vpop.f32.mrf.mxu1  ;;  %3363 = vmatmul.mubr.bf16.vlgmr.msra.gmra.mxu0 %v10092_v43 }
 0x291   :  { %3416 = vmatmul.mubr.bf16.vlgmr.msra.gmra.mxu1 %v10096_v47  ;;  %3372 = vmatprep.mubr.bf16.mxu0 %v10098_v49  ;;  %v3048_v23 = vpop.f32.mrf.mxu0  ;;  %v2955_v47 = vadd.f32 %v2954_v17, %v10160_v35 }
 0x292   :  { %v10194_v28 = vadd.f32 %v3099_v55, %v3047_v20  ;;  %3425 = vmatprep.mubr.bf16.mxu1 %v10101_v52  ;;  %v3049_v10 = vadd.f32 %v3048_v23, %v10171_v22  ;;  %v3101_v30 = vpop.f32.mrf.mxu1 }
 0x293   :  { %v3050_v39 = vpop.f32.mrf.mxu0  ;;  %v3008_v33 = vadd.f32 %v3007_v7, %v2955_v47 }
 0x294   :  { %v10199_v41 = vadd.f32 %v3101_v30, %v3049_v10  ;;  %v3051_v32 = vadd.f32 %v3050_v39, %v10175_v61  ;;  %v3103_v43 = vpop.f32.mrf.mxu1 }
 0x295   :  { %v3052_v42 = vpop.f32.mrf.mxu0 }
 0x296   :  { %v10204_v44 = vadd.f32 %v3103_v43, %v3051_v32  ;;  %v3053_v52 = vadd.f32 %v3052_v42, %v10178_v36  ;;  %v3105_v53 = vpop.f32.mrf.mxu1 }
 0x297   :  { %v3056_v22 = vpop.f32.mrf.mxu0 }
 0x298   :  { %v10209_v18 = vadd.f32 %v3105_v53, %v3053_v52  ;;  %v3057_v61 = vadd.f32 %v3056_v22, %v10185_v21  ;;  %3373 = vmatmul.mubr.bf16.gmra.mxu0 %v10105_v48  ;;  %v3109_v50 = vpop.f32.mrf.mxu1 }
 0x299   :  { %3426 = vmatmul.mubr.bf16.gmra.mxu1 %v10108_v56  ;;  %v3058_v35 = vpop.f32.mrf.mxu0 }
 0x29a   :  { %v3059_v36 = vadd.f32 %v3058_v35, %v10188_v38  ;;  %v10216_v54 = vadd.f32 %v3109_v50, %v3057_v61  ;;  %v3111_v58 = vpop.f32.mrf.mxu1 }
 0x29b   :  { %v3060_v4 = vpop.f32.mrf.mxu0 }
 0x29c   :  { %v3061_v8 = vadd.f32 %v3060_v4, %v3008_v33  ;;  %v10219_v21 = vadd.f32 %v3111_v58, %v3059_v36  ;;  %v3113_v48 = vpop.f32.mrf.mxu1 }
 0x29d   :  { %v3062_v59 = vpop.f32.mrf.mxu0 }
 0x29e   :  { %v3063_v60 = vadd.f32 %v3062_v59, %v3010_v57  ;;  %v10222_v14 = vadd.f32 %v3113_v48, %v3061_v8  ;;  %v3115_v19 = vpop.f32.mrf.mxu1 }
 0x2a0   :  { %v10225_v40 = vadd.f32 %v3115_v19, %v3063_v60 }
 0x2a1   :  { %9785 = shalt.err (!%p9782_p12)  }
 0x2a2   :  { %180 = dma.hbm_to_vmem [thread:$0]  %s10915_s5, 49152, %s178_s4, [#allocation3]  ;;  %v10232_v47 = vsub.s32 2, %v10114_v51  ;;  %v10235_v22 = vsub.s32 3, %v10114_v51 }
 0x2a4   :  { %10943 = vst [vmem:[#allocation32_spill] sm:$0xff] %v10232_v47  ;;  %10944 = vst [vmem:[#allocation33_spill] sm:$0xff] %v10235_v22  ;;  %v871_v24 = vrot.slane %v10119_v31, %v10232_v47  ;;  %v875_v35 = vrot.slane %v10119_v31, %v10235_v22 }
 0x2cf   :  { %v3152_v2 = vpop.f32.mrf.mxu0 }
 0x2d0   :  { %v3205_v9 = vpop.f32.mrf.mxu1  ;;  %v3153_v36 = vadd.f32 %v3152_v2, %v871_v24 }
 0x2d1   :  { %v3154_v13 = vpop.f32.mrf.mxu0 }
 0x2d2   :  { %v3207_v62 = vpop.f32.mrf.mxu1  ;;  %v3155_v4 = vadd.f32 %v3154_v13, %v875_v35  ;;  %v3206_v8 = vadd.f32 %v3205_v9, %v3153_v36 }
 0x2d3   :  { %v3156_v5 = vpop.f32.mrf.mxu0 }
 0x2d4   :  { %v3209_v17 = vpop.f32.mrf.mxu1  ;;  %v3157_v48 = vadd.f32 %v3156_v5, %v871_v24  ;;  %v3208_v60 = vadd.f32 %v3207_v62, %v3155_v4 }
 0x2d5   :  { %v3158_v6 = vpop.f32.mrf.mxu0 }
 0x2d6   :  { %v3211_v7 = vpop.f32.mrf.mxu1  ;;  %v3159_v19 = vadd.f32 %v3158_v6, %v875_v35  ;;  %v3210_v49 = vadd.f32 %v3209_v17, %v3157_v48 }
 0x2d7   :  { %v3162_v11 = vpop.f32.mrf.mxu0 }
 0x2d8   :  { %v3215_v63 = vpop.f32.mrf.mxu1  ;;  %v3163_v46 = vadd.f32 %v3162_v11, %v871_v24  ;;  %v3212_v1 = vadd.f32 %v3211_v7, %v3159_v19 }
 0x2d9   :  { %v3164_v12 = vpop.f32.mrf.mxu0 }
 0x2da   :  { %v3217_v16 = vpop.f32.mrf.mxu1  ;;  %v3165_v38 = vadd.f32 %v3164_v12, %v875_v35  ;;  %v3216_v2 = vadd.f32 %v3215_v63, %v3163_v46 }
 0x2db   :  { %v3166_v20 = vpop.f32.mrf.mxu0 }
 0x2dc   :  { %v3219_v55 = vpop.f32.mrf.mxu1  ;;  %v3167_v22 = vadd.f32 %v3166_v20, %v871_v24  ;;  %v3218_v62 = vadd.f32 %v3217_v16, %v3165_v38 }
 0x2dd   :  { %v3168_v23 = vpop.f32.mrf.mxu0 }
 0x2de   :  { %v3221_v30 = vpop.f32.mrf.mxu1  ;;  %v3169_v6 = vadd.f32 %v3168_v23, %v875_v35 }
 0x310   :  { %v3258_v10 = vpop.f32.mrf.mxu0 }
 0x311   :  { %v3311_v39 = vpop.f32.mrf.mxu1  ;;  %v3259_v45 = vadd.f32 %v3258_v10, %v3206_v8  ;;  %v3220_v8 = vadd.f32 %v3219_v55, %v3167_v22 }
 0x312   :  { %v3260_v32 = vpop.f32.mrf.mxu0 }
 0x313   :  { %v3313_v43 = vpop.f32.mrf.mxu1  ;;  %v3261_v0 = vadd.f32 %v3260_v32, %v3208_v60  ;;  %v3312_v56 = vadd.f32 %v3311_v39, %v3259_v45 }
 0x314   :  { %v3262_v42 = vpop.f32.mrf.mxu0 }
 0x315   :  { %v3315_v52 = vpop.f32.mrf.mxu1  ;;  %v3263_v31 = vadd.f32 %v3262_v42, %v3210_v49  ;;  %v3314_v47 = vadd.f32 %v3313_v43, %v3261_v0  ;;  %v3222_v0 = vadd.f32 %v3221_v30, %v3169_v6 }
 0x316   :  { %v3264_v53 = vpop.f32.mrf.mxu0 }
 0x317   :  { %v3317_v61 = vpop.f32.mrf.mxu1  ;;  %v3265_v9 = vadd.f32 %v3264_v53, %v3212_v1  ;;  %v3316_v11 = vadd.f32 %v3315_v52, %v3263_v31 }
 0x318   :  { %v3268_v50 = vpop.f32.mrf.mxu0 }
 0x319   :  { %v3321_v33 = vpop.f32.mrf.mxu1  ;;  %v3269_v10 = vadd.f32 %v3268_v50, %v3216_v2  ;;  %v3318_v49 = vadd.f32 %v3317_v61, %v3265_v9 }
 0x31a   :  { %v3270_v58 = vpop.f32.mrf.mxu0 }
 0x31b   :  { %v3323_v57 = vpop.f32.mrf.mxu1  ;;  %v3271_v7 = vadd.f32 %v3270_v58, %v3218_v62  ;;  %v3322_v1 = vadd.f32 %v3321_v33, %v3269_v10 }
 0x31c   :  { %v3272_v59 = vpop.f32.mrf.mxu0 }
 0x31d   :  { %v3325_v15 = vpop.f32.mrf.mxu1  ;;  %v3273_v43 = vadd.f32 %v3272_v59, %v3220_v8  ;;  %v3324_v52 = vadd.f32 %v3323_v57, %v3271_v7  ;;  %v10949_v7 = vmov 0  }
 0x31e   :  { %v3274_v3 = vpop.f32.mrf.mxu0  ;;  %3881 = vmatprep.mubr.bf16.mxu0 %v10949_v7 }
 0x31f   :  { %v3327_v51 = vpop.f32.mrf.mxu1  ;;  %v3326_v35 = vadd.f32 %v3325_v15, %v3273_v43  ;;  %v10945_v15 = vmax.f32 %v10219_v21, 0.0 }
 0x350   :  { %v3364_v13 = vpop.f32.mrf.mxu0 }
 0x351   :  { %v3365_v5 = vadd.f32 %v3364_v13, %v3312_v56  ;;  %v3417_v36 = vpop.f32.mrf.mxu1 }
 0x352   :  { %v3366_v4 = vpop.f32.mrf.mxu0 }
 0x353   :  { %v3418_v17 = vadd.f32 %v3417_v36, %v3365_v5  ;;  %v3367_v32 = vadd.f32 %v3366_v4, %v3314_v47  ;;  %v3419_v12 = vpop.f32.mrf.mxu1  ;;  %v3275_v47 = vadd.f32 %v3274_v3, %v3222_v0  ;;  %v10946_v4 = vmax.f32 %v10225_v40, 0.0 }
 0x354   :  { %v3368_v45 = vpop.f32.mrf.mxu0 }
 0x355   :  { %v3438_v39 = vmax.f32 %v3418_v17, 0.0  ;;  %v3420_v46 = vadd.f32 %v3419_v12, %v3367_v32  ;;  %v3369_v63 = vadd.f32 %v3368_v45, %v3316_v11  ;;  %v3421_v20 = vpop.f32.mrf.mxu1  ;;  %v3328_v19 = vadd.f32 %v3327_v51, %v3275_v47 }
 0x356   :  { %v3370_v56 = vpop.f32.mrf.mxu0  ;;  %v10245_v11 = vpack.c.bf16 %v10946_v4, %v10945_v15  ;;  %v10947_v51 = vmax.f32 %v10216_v54, 0.0  ;;  %v10948_v32 = vmax.f32 %v10222_v14, 0.0 }
 0x357   :  { %v3439_v38 = vmax.f32 %v3420_v46, 0.0  ;;  %v3422_v16 = vadd.f32 %v3421_v20, %v3369_v63  ;;  %v3371_v23 = vadd.f32 %v3370_v56, %v3318_v49  ;;  %v3423_v42 = vpop.f32.mrf.mxu1 }
 0x358   :  { %v3374_v53 = vpop.f32.mrf.mxu0  ;;  %v10253_v12 = vpack.c.bf16 %v10948_v32, %v10947_v51 }
 0x359   :  { %v3442_v24 = vmax.f32 %v3422_v16, 0.0  ;;  %v3424_v55 = vadd.f32 %v3423_v42, %v3371_v23  ;;  %v3375_v22 = vadd.f32 %v3374_v53, %v3322_v1  ;;  %v3427_v50 = vpop.f32.mrf.mxu1 }
 0x35a   :  { %v3376_v61 = vpop.f32.mrf.mxu0 }
 0x35b   :  { %v3443_v58 = vmax.f32 %v3424_v55, 0.0  ;;  %v3428_v48 = vadd.f32 %v3427_v50, %v3375_v22  ;;  %v3377_v60 = vadd.f32 %v3376_v61, %v3324_v52  ;;  %v3429_v30 = vpop.f32.mrf.mxu1 }
 0x35c   :  { %v3378_v33 = vpop.f32.mrf.mxu0 }
 0x35d   :  { %v3446_v59 = vmax.f32 %v3428_v48, 0.0  ;;  %v3430_v31 = vadd.f32 %v3429_v30, %v3377_v60  ;;  %v3379_v2 = vadd.f32 %v3378_v33, %v3326_v35  ;;  %v3431_v13 = vpop.f32.mrf.mxu1 }
 0x35e   :  { %v3380_v9 = vpop.f32.mrf.mxu0 }
 0x35f   :  { %v3447_v57 = vmax.f32 %v3430_v31, 0.0  ;;  %v3432_v5 = vadd.f32 %v3431_v13, %v3379_v2  ;;  %v3381_v3 = vadd.f32 %v3380_v9, %v3328_v19  ;;  %v3433_v36 = vpop.f32.mrf.mxu1 }
 0x361   :  { %v3450_v62 = vmax.f32 %v3432_v5, 0.0  ;;  %v3434_v6 = vadd.f32 %v3433_v36, %v3381_v3 }
 0x363   :  { %v3451_v10 = vmax.f32 %v3434_v6, 0.0  ;;  %v10255_v8 = vpack.c.bf16 %v3450_v62, %v3446_v59 }
 0x365   :  { %v10247_v17 = vpack.c.bf16 %v3451_v10, %v3447_v57 }
 0x366   :  { %9798 = dma.done.wait [#allocation3], 49152 }
 0x367   :  { %9799 = vsyncadd [#allocation3], 4294918144  ;;  %v10950_v21 = vmax.f32 %v10199_v41, 0.0  ;;  %v10951_v40 = vmax.f32 %v10209_v18, 0.0  ;;  %v10264_v49 = vpack.c.bf16 %v3443_v58, %v3439_v38  ;;  %3934 = vmatprep.mubr.bf16.mxu1 %v10949_v7  ;;  %3861 = vmatprep.subr.bf16.mxu0 %v10245_v11  ;;  %v10952_v54 = vmax.f32 %v10194_v28, 0.0 }
 0x368   :  { %3914 = vmatprep.subr.bf16.mxu1 %v10247_v17  ;;  %3862 = vmatpush1.bf16.msra.mxu0 %v10253_v12  ;;  %v10953_v41 = vmax.f32 %v10204_v44, 0.0  ;;  %v10277_v18 = vpack.c.bf16 %v3442_v24, %v3438_v39  ;;  %v8988_v28 = vld [vmem:[#allocation2 + $0xe4] ss:$16 sps:$4 sm:$0xff]   ;;  %v8989_v39 = vld [vmem:[#allocation2 + $0x2e0] ss:$16 sps:$4 sm:$0xff]   ;;  %vm9819_vm1 = vmmov 0  }
 0x369   :  { %v10262_v45 = vpack.c.bf16 %v10951_v40, %v10950_v21  ;;  %3915 = vmatpush1.bf16.msra.mxu1 %v10255_v8  ;;  %v8991_v44 = vld [vmem:[#allocation2 + $0x2e4] ss:$16 sps:$4 sm:$0xff]   ;;  %v8992_v20 = vld [vmem:[#allocation2 + $0xc0] ss:$16 sps:$4 sm:$0xff]   ;;  %vm7097_vm2 = vcmask 64512  }
 0x36a   :  { %v10275_v14 = vpack.c.bf16 %v10953_v41, %v10952_v54  ;;  %3916 = vmatprep.subr.bf16.mxu1 %v10264_v49  ;;  %v8994_v46 = vld [vmem:[#allocation2 + $0xc4] ss:$16 sps:$4 sm:$0xff]   ;;  %v8998_v56 = vld [vmem:[#allocation2 + $0xa0] ss:$16 sps:$4 sm:$0xff]  }
 0x36b   :  { %3863 = vmatprep.subr.bf16.mxu0 %v10262_v45  ;;  %v8997_v63 = vld [vmem:[#allocation2 + $0x2c4] ss:$16 sps:$4 sm:$0xff]   ;;  %v9001_v43 = vld [vmem:[#allocation2 + $0x2a0] ss:$16 sps:$4 sm:$0xff]  }
 0x36c   :  { %3864 = vmatpush1.bf16.msra.mxu0 %v10275_v14  ;;  %v9000_v0 = vld [vmem:[#allocation2 + $0xa4] ss:$16 sps:$4 sm:$0xff]   ;;  %v9004_v16 = vld [vmem:[#allocation2 + $0x80] ss:$16 sps:$4 sm:$0xff]  }
 0x36d   :  { %3917 = vmatpush1.bf16.msra.mxu1 %v10277_v18  ;;  %3975 = vmatprep.subr.bf16.mxu0 %v10245_v11  ;;  %v9003_v1 = vld [vmem:[#allocation2 + $0x2a4] ss:$16 sps:$4 sm:$0xff]   ;;  %v9007_v23 = vld [vmem:[#allocation2 + $0x280] ss:$16 sps:$4 sm:$0xff]  }
 0x36e   :  { %4028 = vmatprep.subr.bf16.mxu1 %v10247_v17  ;;  %v9006_v38 = vld [vmem:[#allocation2 + $0x84] ss:$16 sps:$4 sm:$0xff]   ;;  %v9010_v53 = vld [vmem:[#allocation2 + $0x60] ss:$16 sps:$4 sm:$0xff]  }
 0x36f   :  { %7890 = vmatmul.mubr.msk.bf16.vlgmr.msra.gmra.mxu0 %vm608_vm0, %v10004_v25  ;;  %v9012_v42 = vld [vmem:[#allocation2 + $0x64] ss:$16 sps:$4 sm:$0xff]   ;;  %v9013_v47 = vld [vmem:[#allocation2 + $0x260] ss:$16 sps:$4 sm:$0xff]  }
 0x370   :  { %7892 = vmatmul.mubr.msk.bf16.vlgmr.msra.gmra.mxu1 %vm608_vm0, %v10004_v25  ;;  %3891 = vmatprep.mubr.bf16.mxu0 %v10949_v7  ;;  %v8986_v25 = vld [vmem:[#allocation2 + $0xe0] ss:$16 sps:$4 sm:$0xff]   ;;  %v9015_v52 = vld [vmem:[#allocation2 + $0x264] ss:$16 sps:$4 sm:$0xff]  }
 0x371   :  { %3944 = vmatprep.mubr.bf16.mxu1 %v10949_v7  ;;  %3976 = vmatpush1.bf16.msra.mxu0 %v10253_v12  ;;  %v9018_v24 = vld [vmem:[#allocation2 + $0x44] ss:$16 sps:$4 sm:$0xff]   ;;  %v9016_v22 = vld [vmem:[#allocation2 + $0x40] ss:$16 sps:$4 sm:$0xff]  }
 0x372   :  { %4029 = vmatpush1.bf16.msra.mxu1 %v10255_v8  ;;  %3977 = vmatprep.subr.bf16.mxu0 %v10262_v45  ;;  %v9021_v55 = vld [vmem:[#allocation2 + $0x244] ss:$16 sps:$4 sm:$0xff]   ;;  %v9019_v50 = vld [vmem:[#allocation2 + $0x240] ss:$16 sps:$4 sm:$0xff]  }
 0x373   :  { %4030 = vmatprep.subr.bf16.mxu1 %v10264_v49  ;;  %v9024_v61 = vld [vmem:[#allocation2 + $0x24] ss:$16 sps:$4 sm:$0xff]   ;;  %v9022_v35 = vld [vmem:[#allocation2 + $0x20] ss:$16 sps:$4 sm:$0xff]  }
 0x374   :  { %v9025_v58 = vld [vmem:[#allocation2 + $0x220] ss:$16 sps:$4 sm:$0xff]   ;;  %v9030_v48 = vld [vmem:[#allocation2 + $0x4] ss:$16 sps:$4 sm:$0xff]  }
 0x375   :  { %3978 = vmatpush1.bf16.msra.mxu0 %v10275_v14  ;;  %v9033_v60 = vld [vmem:[#allocation2 + $0x204] ss:$16 sps:$4 sm:$0xff]   ;;  %v9028_v30 = vld [vmem:[#allocation2] ss:$16 sps:$4 sm:$0xff]  }
 0x376   :  { %4031 = vmatpush1.bf16.msra.mxu1 %v10277_v18  ;;  %6018 = vmatprep.subr.bf16.mxu0 %v8988_v28  ;;  %v9031_v33 = vld [vmem:[#allocation2 + $0x200] ss:$16 sps:$4 sm:$0xff]   ;;  %v9036_v19 = vld [vmem:[#allocation2 + $0x1e4] ss:$16 sps:$4 sm:$0xff]  }
 0x377   :  { %6071 = vmatprep.subr.bf16.mxu1 %v8991_v44  ;;  %7891 = vmatmul.mubr.msk.bf16.gmra.mxu0 %vm608_vm0, %v10019_v27  ;;  %v9039_v59 = vld [vmem:[#allocation2 + $0x3e4] ss:$16 sps:$4 sm:$0xff]   ;;  %v9034_v31 = vld [vmem:[#allocation2 + $0x1e0] ss:$16 sps:$4 sm:$0xff]  }
 0x378   :  { %7893 = vmatmul.mubr.msk.bf16.gmra.mxu1 %vm608_vm0, %v10019_v27  ;;  %3995 = vmatprep.mubr.bf16.mxu0 %v10949_v7  ;;  %v8995_v27 = vld [vmem:[#allocation2 + $0x2c0] ss:$16 sps:$4 sm:$0xff]   ;;  %v9042_v13 = vld [vmem:[#allocation2 + $0x1c4] ss:$16 sps:$4 sm:$0xff]  }
 0x379   :  { %4048 = vmatprep.mubr.bf16.mxu1 %v10949_v7  ;;  %v9037_v2 = vld [vmem:[#allocation2 + $0x3e0] ss:$16 sps:$4 sm:$0xff]   ;;  %v9045_v9 = vld [vmem:[#allocation2 + $0x3c4] ss:$16 sps:$4 sm:$0xff]  }
 0x37a   :  { %v9040_v57 = vld [vmem:[#allocation2 + $0x1c0] ss:$16 sps:$4 sm:$0xff]   ;;  %v9048_v3 = vld [vmem:[#allocation2 + $0x1a4] ss:$16 sps:$4 sm:$0xff]  }
 0x37b   :  { %v9043_v5 = vld [vmem:[#allocation2 + $0x3c0] ss:$16 sps:$4 sm:$0xff]   ;;  %v9051_v36 = vld [vmem:[#allocation2 + $0x3a4] ss:$16 sps:$4 sm:$0xff]  }
 0x37c   :  { %v9046_v62 = vld [vmem:[#allocation2 + $0x1a0] ss:$16 sps:$4 sm:$0xff]   ;;  %v9054_v10 = vld [vmem:[#allocation2 + $0x184] ss:$16 sps:$4 sm:$0xff]  }
 0x37d   :  { %v9049_v6 = vld [vmem:[#allocation2 + $0x3a0] ss:$16 sps:$4 sm:$0xff]   ;;  %v9057_v15 = vld [vmem:[#allocation2 + $0x384] ss:$16 sps:$4 sm:$0xff]  }
 0x37e   :  { %v9052_v4 = vld [vmem:[#allocation2 + $0x180] ss:$16 sps:$4 sm:$0xff]   ;;  %v9060_v32 = vld [vmem:[#allocation2 + $0x164] ss:$16 sps:$4 sm:$0xff]  }
 0x37f   :  { %7894 = vmatmul.mubr.msk.bf16.vlgmr.msra.gmra.mxu0 %vm608_vm0, %v10030_v29  ;;  %v9055_v51 = vld [vmem:[#allocation2 + $0x380] ss:$16 sps:$4 sm:$0xff]   ;;  %v9066_v54 = vld [vmem:[#allocation2 + $0x144] ss:$16 sps:$4 sm:$0xff]  }
 0x380   :  { %7896 = vmatmul.mubr.msk.bf16.vlgmr.msra.gmra.mxu1 %vm608_vm0, %v10030_v29  ;;  %4005 = vmatprep.mubr.bf16.mxu0 %v10949_v7  ;;  %v9009_v29 = vld [vmem:[#allocation2 + $0x284] ss:$16 sps:$4 sm:$0xff]   ;;  %v9058_v21 = vld [vmem:[#allocation2 + $0x160] ss:$16 sps:$4 sm:$0xff]  }
 0x381   :  { %4058 = vmatprep.mubr.bf16.mxu1 %v10949_v7  ;;  %6019 = vmatpush1.bf16.msra.mxu0 %v8986_v25  ;;  %v9063_v7 = vld [vmem:[#allocation2 + $0x364] ss:$16 sps:$4 sm:$0xff]   ;;  %v9061_v40 = vld [vmem:[#allocation2 + $0x360] ss:$16 sps:$4 sm:$0xff]  }
 0x382   :  { %6072 = vmatpush1.bf16.msra.mxu1 %v8989_v39  ;;  %6020 = vmatprep.subr.bf16.mxu0 %v8994_v46  ;;  %v9069_v41 = vld [vmem:[#allocation2 + $0x344] ss:$16 sps:$4 sm:$0xff]   ;;  %v9064_v28 = vld [vmem:[#allocation2 + $0x140] ss:$16 sps:$4 sm:$0xff]  }
 0x383   :  { %6073 = vmatprep.subr.bf16.mxu1 %v8997_v63  ;;  %v9067_v44 = vld [vmem:[#allocation2 + $0x340] ss:$16 sps:$4 sm:$0xff]   ;;  %v9072_v25 = vld [vmem:[#allocation2 + $0x124] ss:$16 sps:$4 sm:$0xff]  }
 0x384   :  { %v9075_v39 = vld [vmem:[#allocation2 + $0x324] ss:$16 sps:$4 sm:$0xff]   ;;  %v9070_v46 = vld [vmem:[#allocation2 + $0x120] ss:$16 sps:$4 sm:$0xff]  }
 0x385   :  { %6021 = vmatpush1.bf16.msra.mxu0 %v8992_v20  ;;  %v9073_v63 = vld [vmem:[#allocation2 + $0x320] ss:$16 sps:$4 sm:$0xff]   ;;  %v9078_v20 = vld [vmem:[#allocation2 + $0x104] ss:$16 sps:$4 sm:$0xff]  }
 0x386   :  { %6074 = vmatpush1.bf16.msra.mxu1 %v8995_v27  ;;  %6022 = vmatprep.subr.bf16.mxu0 %v9000_v0  ;;  %v9081_v27 = vld [vmem:[#allocation2 + $0x304] ss:$16 sps:$4 sm:$0xff]   ;;  %v9076_v0 = vld [vmem:[#allocation2 + $0x100] ss:$16 sps:$4 sm:$0xff]  }
 0x387   :  { %6075 = vmatprep.subr.bf16.mxu1 %v9003_v1  ;;  %7895 = vmatmul.mubr.msk.bf16.gmra.mxu0 %vm608_vm0, %v10038_v37  ;;  %v9079_v1 = vld [vmem:[#allocation2 + $0x300] ss:$16 sps:$4 sm:$0xff]  }
 0x388   :  { %7897 = vmatmul.mubr.msk.bf16.gmra.mxu1 %vm608_vm0, %v10038_v37  ;;  %v9027_v37 = vld [vmem:[#allocation2 + $0x224] ss:$16 sps:$4 sm:$0xff]  }
 0x389   :  { %6023 = vmatpush1.bf16.msra.mxu0 %v8998_v56  ;;  %v9084_v56 = vld [vmem:[#allocation2 + $0x4e4] ss:$16 sps:$4 sm:$0xff]  }
 0x38a   :  { %6076 = vmatpush1.bf16.msra.mxu1 %v9001_v43  ;;  %6024 = vmatprep.subr.bf16.mxu0 %v9006_v38  ;;  %v9087_v43 = vld [vmem:[#allocation2 + $0x6e4] ss:$16 sps:$4 sm:$0xff]  }
 0x38b   :  { %6077 = vmatprep.subr.bf16.mxu1 %v9009_v29 }
 0x38d   :  { %6025 = vmatpush1.bf16.msra.mxu0 %v9004_v16 }
 0x38e   :  { %6078 = vmatpush1.bf16.msra.mxu1 %v9007_v23  ;;  %6026 = vmatprep.subr.bf16.mxu0 %v9012_v42 }
 0x38f   :  { %6079 = vmatprep.subr.bf16.mxu1 %v9015_v52 }
 0x391   :  { %6027 = vmatpush1.bf16.msra.mxu0 %v9010_v53 }
 0x392   :  { %6080 = vmatpush1.bf16.msra.mxu1 %v9013_v47  ;;  %6028 = vmatprep.subr.bf16.mxu0 %v9018_v24 }
 0x393   :  { %6081 = vmatprep.subr.bf16.mxu1 %v9021_v55 }
 0x395   :  { %6029 = vmatpush1.bf16.msra.mxu0 %v9016_v22  ;;  %v9082_v22 = vld [vmem:[#allocation2 + $0x4e0] ss:$16 sps:$4 sm:$0xff]  }
 0x396   :  { %6082 = vmatpush1.bf16.msra.mxu1 %v9019_v50  ;;  %6030 = vmatprep.subr.bf16.mxu0 %v9024_v61  ;;  %v9085_v50 = vld [vmem:[#allocation2 + $0x6e0] ss:$16 sps:$4 sm:$0xff]  }
 0x397   :  { %6083 = vmatprep.subr.bf16.mxu1 %v9027_v37 }
 0x399   :  { %6031 = vmatpush1.bf16.msra.mxu0 %v9022_v35  ;;  %v9090_v35 = vld [vmem:[#allocation2 + $0x4c4] ss:$16 sps:$4 sm:$0xff]  }
 0x39a   :  { %6084 = vmatpush1.bf16.msra.mxu1 %v9025_v58  ;;  %6032 = vmatprep.subr.bf16.mxu0 %v9030_v48  ;;  %v9093_v58 = vld [vmem:[#allocation2 + $0x6c4] ss:$16 sps:$4 sm:$0xff]  }
 0x39b   :  { %6085 = vmatprep.subr.bf16.mxu1 %v9033_v60 }
 0x39d   :  { %6033 = vmatpush1.bf16.msra.mxu0 %v9028_v30 }
 0x39e   :  { %6086 = vmatpush1.bf16.msra.mxu1 %v9031_v33  ;;  %6034 = vmatprep.subr.bf16.mxu0 %v9036_v19  ;;  %v9088_v19 = vld [vmem:[#allocation2 + $0x4c0] ss:$16 sps:$4 sm:$0xff]  }
 0x39f   :  { %6087 = vmatprep.subr.bf16.mxu1 %v9039_v59  ;;  %v9091_v59 = vld [vmem:[#allocation2 + $0x6c0] ss:$16 sps:$4 sm:$0xff]  }
 0x3a1   :  { %6035 = vmatpush2.bf16.msra.mxu0 %v9034_v31  ;;  %v9096_v31 = vld [vmem:[#allocation2 + $0x4a4] ss:$16 sps:$4 sm:$0xff]  }
 0x3a2   :  { %6088 = vmatpush2.bf16.msra.mxu1 %v9037_v2  ;;  %6036 = vmatprep.subr.bf16.mxu0 %v9042_v13  ;;  %v9099_v2 = vld [vmem:[#allocation2 + $0x6a4] ss:$16 sps:$4 sm:$0xff]  }
 0x3a3   :  { %6089 = vmatprep.subr.bf16.mxu1 %v9045_v9 }
 0x3a5   :  { %6037 = vmatpush2.bf16.msra.mxu0 %v9040_v57 }
 0x3a6   :  { %6090 = vmatpush2.bf16.msra.mxu1 %v9043_v5  ;;  %6038 = vmatprep.subr.bf16.mxu0 %v9048_v3 }
 0x3a7   :  { %6091 = vmatprep.subr.bf16.mxu1 %v9051_v36 }
 0x3a9   :  { %6039 = vmatpush2.bf16.msra.mxu0 %v9046_v62  ;;  %v9094_v62 = vld [vmem:[#allocation2 + $0x4a0] ss:$16 sps:$4 sm:$0xff]  }
 0x3aa   :  { %6092 = vmatpush2.bf16.msra.mxu1 %v9049_v6  ;;  %6040 = vmatprep.subr.bf16.mxu0 %v9054_v10  ;;  %v9097_v6 = vld [vmem:[#allocation2 + $0x6a0] ss:$16 sps:$4 sm:$0xff]  }
 0x3ab   :  { %6093 = vmatprep.subr.bf16.mxu1 %v9057_v15 }
 0x3ad   :  { %6041 = vmatpush2.bf16.msra.mxu0 %v9052_v4  ;;  %v9102_v4 = vld [vmem:[#allocation2 + $0x484] ss:$16 sps:$4 sm:$0xff]  }
 0x3ae   :  { %6094 = vmatpush2.bf16.msra.mxu1 %v9055_v51  ;;  %6042 = vmatprep.subr.bf16.mxu0 %v9060_v32  ;;  %v9105_v51 = vld [vmem:[#allocation2 + $0x684] ss:$16 sps:$4 sm:$0xff]   ;;  %v9100_v32 = vld [vmem:[#allocation2 + $0x480] ss:$16 sps:$4 sm:$0xff]  }
 0x3af   :  { %6095 = vmatprep.subr.bf16.mxu1 %v9063_v7  ;;  %v9103_v7 = vld [vmem:[#allocation2 + $0x680] ss:$16 sps:$4 sm:$0xff]  }
 0x3b1   :  { %6043 = vmatpush2.bf16.msra.mxu0 %v9058_v21  ;;  %v9108_v21 = vld [vmem:[#allocation2 + $0x464] ss:$16 sps:$4 sm:$0xff]  }
 0x3b2   :  { %6096 = vmatpush2.bf16.msra.mxu1 %v9061_v40  ;;  %6044 = vmatprep.subr.bf16.mxu0 %v9066_v54  ;;  %v9111_v40 = vld [vmem:[#allocation2 + $0x664] ss:$16 sps:$4 sm:$0xff]   ;;  %v9106_v54 = vld [vmem:[#allocation2 + $0x460] ss:$16 sps:$4 sm:$0xff]  }
 0x3b3   :  { %6097 = vmatprep.subr.bf16.mxu1 %v9069_v41  ;;  %v9109_v41 = vld [vmem:[#allocation2 + $0x660] ss:$16 sps:$4 sm:$0xff]  }
 0x3b5   :  { %6045 = vmatpush2.bf16.msra.mxu0 %v9064_v28  ;;  %v9114_v28 = vld [vmem:[#allocation2 + $0x444] ss:$16 sps:$4 sm:$0xff]  }
 0x3b6   :  { %6098 = vmatpush2.bf16.msra.mxu1 %v9067_v44  ;;  %6046 = vmatprep.subr.bf16.mxu0 %v9072_v25  ;;  %v9117_v44 = vld [vmem:[#allocation2 + $0x644] ss:$16 sps:$4 sm:$0xff]   ;;  %v9112_v25 = vld [vmem:[#allocation2 + $0x440] ss:$16 sps:$4 sm:$0xff]  }
 0x3b7   :  { %6099 = vmatprep.subr.bf16.mxu1 %v9075_v39  ;;  %v9115_v39 = vld [vmem:[#allocation2 + $0x640] ss:$16 sps:$4 sm:$0xff]  }
 0x3b9   :  { %6047 = vmatpush2.bf16.msra.mxu0 %v9070_v46  ;;  %v9120_v46 = vld [vmem:[#allocation2 + $0x424] ss:$16 sps:$4 sm:$0xff]  }
 0x3ba   :  { %6100 = vmatpush2.bf16.msra.mxu1 %v9073_v63  ;;  %6048 = vmatprep.subr.bf16.mxu0 %v9078_v20  ;;  %v9123_v63 = vld [vmem:[#allocation2 + $0x624] ss:$16 sps:$4 sm:$0xff]   ;;  %v9118_v20 = vld [vmem:[#allocation2 + $0x420] ss:$16 sps:$4 sm:$0xff]  }
 0x3bb   :  { %6101 = vmatprep.subr.bf16.mxu1 %v9081_v27  ;;  %v9121_v27 = vld [vmem:[#allocation2 + $0x620] ss:$16 sps:$4 sm:$0xff]  }
 0x3bd   :  { %6049 = vmatpush2.bf16.msra.mxu0 %v9076_v0  ;;  %v9126_v0 = vld [vmem:[#allocation2 + $0x404] ss:$16 sps:$4 sm:$0xff]  }
 0x3be   :  { %6102 = vmatpush2.bf16.msra.mxu1 %v9079_v1  ;;  %6124 = vmatprep.subr.bf16.mxu0 %v9084_v56  ;;  %v9129_v1 = vld [vmem:[#allocation2 + $0x604] ss:$16 sps:$4 sm:$0xff]   ;;  %v9124_v56 = vld [vmem:[#allocation2 + $0x400] ss:$16 sps:$4 sm:$0xff]  }
 0x3bf   :  { %6177 = vmatprep.subr.bf16.mxu1 %v9087_v43  ;;  %v9127_v43 = vld [vmem:[#allocation2 + $0x600] ss:$16 sps:$4 sm:$0xff]  }
 0x42f   :  { %v3883_v38 = vpop.f32.mrf.mxu0 }
 0x430   :  { %v3936_v29 = vpop.f32.mrf.mxu1 }
 0x431   :  { %v3885_v16 = vpop.f32.mrf.mxu0 }
 0x432   :  { %v3938_v23 = vpop.f32.mrf.mxu1 }
 0x433   :  { %v3887_v42 = vpop.f32.mrf.mxu0 }
 0x434   :  { %v3940_v52 = vpop.f32.mrf.mxu1  ;;  %v10317_v61 = vpack.c.bf16 %v3887_v42, %v3883_v38  ;;  %v9132_v38 = vld [vmem:[#allocation2 + $0x5e4] ss:$16 sps:$4 sm:$0xff]  }
 0x435   :  { %v3889_v53 = vpop.f32.mrf.mxu0  ;;  %v10319_v37 = vpack.c.bf16 %v3940_v52, %v3936_v29  ;;  %v9135_v29 = vld [vmem:[#allocation2 + $0x7e4] ss:$16 sps:$4 sm:$0xff]  }
 0x436   :  { %v3942_v47 = vpop.f32.mrf.mxu1  ;;  %v10313_v24 = vpack.c.bf16 %v3889_v53, %v3885_v16  ;;  %v9130_v16 = vld [vmem:[#allocation2 + $0x5e0] ss:$16 sps:$4 sm:$0xff]   ;;  %v9138_v42 = vld [vmem:[#allocation2 + $0x5c4] ss:$16 sps:$4 sm:$0xff]  }
 0x437   :  { %v10315_v55 = vpack.c.bf16 %v3942_v47, %v3938_v23  ;;  %v3893_v48 = vpop.f32.mrf.mxu0  ;;  %v9133_v23 = vld [vmem:[#allocation2 + $0x7e0] ss:$16 sps:$4 sm:$0xff]   ;;  %v9141_v52 = vld [vmem:[#allocation2 + $0x7c4] ss:$16 sps:$4 sm:$0xff]  }
 0x438   :  { %v3946_v60 = vpop.f32.mrf.mxu1  ;;  %6050 = vmatprep.mubr.bf16.mxu0 %v10313_v24  ;;  %v9136_v53 = vld [vmem:[#allocation2 + $0x5c0] ss:$16 sps:$4 sm:$0xff]  }
 0x439   :  { %6103 = vmatprep.mubr.bf16.mxu1 %v10315_v55  ;;  %6051 = vmatmul.mubr.bf16.vlgmr.msra.gmra.mxu0 %v10317_v61  ;;  %v3895_v30 = vpop.f32.mrf.mxu0  ;;  %v9139_v47 = vld [vmem:[#allocation2 + $0x7c0] ss:$16 sps:$4 sm:$0xff]  }
 0x43a   :  { %6104 = vmatmul.mubr.bf16.vlgmr.msra.gmra.mxu1 %v10319_v37  ;;  %v3948_v33 = vpop.f32.mrf.mxu1  ;;  %6125 = vmatpush1.bf16.msra.mxu0 %v9082_v22  ;;  %v9144_v22 = vld [vmem:[#allocation2 + $0x5a4] ss:$16 sps:$4 sm:$0xff]  }
 0x43b   :  { %6178 = vmatpush1.bf16.msra.mxu1 %v9085_v50  ;;  %6126 = vmatprep.subr.bf16.mxu0 %v9090_v35  ;;  %v3897_v13 = vpop.f32.mrf.mxu0  ;;  %v9147_v50 = vld [vmem:[#allocation2 + $0x7a4] ss:$16 sps:$4 sm:$0xff]   ;;  %v9142_v35 = vld [vmem:[#allocation2 + $0x5a0] ss:$16 sps:$4 sm:$0xff]  }
 0x43c   :  { %6179 = vmatprep.subr.bf16.mxu1 %v9093_v58  ;;  %v3950_v9 = vpop.f32.mrf.mxu1  ;;  %v10325_v57 = vpack.c.bf16 %v3897_v13, %v3893_v48  ;;  %v9145_v58 = vld [vmem:[#allocation2 + $0x7a0] ss:$16 sps:$4 sm:$0xff]   ;;  %v9150_v48 = vld [vmem:[#allocation2 + $0x584] ss:$16 sps:$4 sm:$0xff]  }
 0x43d   :  { %v3899_v5 = vpop.f32.mrf.mxu0  ;;  %v10327_v3 = vpack.c.bf16 %v3950_v9, %v3946_v60  ;;  %v9153_v60 = vld [vmem:[#allocation2 + $0x784] ss:$16 sps:$4 sm:$0xff]  }
 0x43e   :  { %v3952_v36 = vpop.f32.mrf.mxu1  ;;  %6127 = vmatpush1.bf16.msra.mxu0 %v9088_v19  ;;  %v10329_v10 = vpack.c.bf16 %v3899_v5, %v3895_v30  ;;  %v9148_v30 = vld [vmem:[#allocation2 + $0x580] ss:$16 sps:$4 sm:$0xff]   ;;  %v9156_v19 = vld [vmem:[#allocation2 + $0x564] ss:$16 sps:$4 sm:$0xff]  }
 0x43f   :  { %6180 = vmatpush1.bf16.msra.mxu1 %v9091_v59  ;;  %v10331_v15 = vpack.c.bf16 %v3952_v36, %v3948_v33  ;;  %6128 = vmatprep.subr.bf16.mxu0 %v9096_v31  ;;  %v9151_v33 = vld [vmem:[#allocation2 + $0x780] ss:$16 sps:$4 sm:$0xff]   ;;  %v9159_v59 = vld [vmem:[#allocation2 + $0x764] ss:$16 sps:$4 sm:$0xff]  }
 0x440   :  { %6181 = vmatprep.subr.bf16.mxu1 %v9099_v2  ;;  %6060 = vmatprep.mubr.bf16.mxu0 %v10329_v10  ;;  %v9154_v31 = vld [vmem:[#allocation2 + $0x560] ss:$16 sps:$4 sm:$0xff]   ;;  %v9162_v13 = vld [vmem:[#allocation2 + $0x544] ss:$16 sps:$4 sm:$0xff]  }
 0x441   :  { %6113 = vmatprep.mubr.bf16.mxu1 %v10331_v15  ;;  %6061 = vmatmul.mubr.bf16.gmra.mxu0 %v10325_v57  ;;  %v9157_v2 = vld [vmem:[#allocation2 + $0x760] ss:$16 sps:$4 sm:$0xff]   ;;  %v9165_v9 = vld [vmem:[#allocation2 + $0x744] ss:$16 sps:$4 sm:$0xff]  }
 0x442   :  { %6114 = vmatmul.mubr.bf16.gmra.mxu1 %v10327_v3  ;;  %6129 = vmatpush1.bf16.msra.mxu0 %v9094_v62  ;;  %v9160_v5 = vld [vmem:[#allocation2 + $0x540] ss:$16 sps:$4 sm:$0xff]   ;;  %v9168_v62 = vld [vmem:[#allocation2 + $0x524] ss:$16 sps:$4 sm:$0xff]  }
 0x443   :  { %6182 = vmatpush1.bf16.msra.mxu1 %v9097_v6  ;;  %6130 = vmatprep.subr.bf16.mxu0 %v9102_v4  ;;  %v9163_v36 = vld [vmem:[#allocation2 + $0x740] ss:$16 sps:$4 sm:$0xff]   ;;  %v9171_v6 = vld [vmem:[#allocation2 + $0x724] ss:$16 sps:$4 sm:$0xff]  }
 0x444   :  { %6183 = vmatprep.subr.bf16.mxu1 %v9105_v51  ;;  %6156 = vmatprep.mubr.bf16.mxu0 %v10262_v45  ;;  %v9166_v4 = vld [vmem:[#allocation2 + $0x520] ss:$16 sps:$4 sm:$0xff]  }
 0x445   :  { %6209 = vmatprep.mubr.bf16.mxu1 %v10264_v49  ;;  %v9169_v51 = vld [vmem:[#allocation2 + $0x720] ss:$16 sps:$4 sm:$0xff]  }
 0x446   :  { %6131 = vmatpush1.bf16.msra.mxu0 %v9100_v32  ;;  %v9174_v32 = vld [vmem:[#allocation2 + $0x504] ss:$16 sps:$4 sm:$0xff]  }
 0x447   :  { %6184 = vmatpush1.bf16.msra.mxu1 %v9103_v7  ;;  %6132 = vmatprep.subr.bf16.mxu0 %v9108_v21  ;;  %v9177_v7 = vld [vmem:[#allocation2 + $0x704] ss:$16 sps:$4 sm:$0xff]   ;;  %v10339_v21 = vpop.f32.mrf.mxu0 }
 0x448   :  { %6185 = vmatprep.subr.bf16.mxu1 %v9111_v40  ;;  %v10341_v40 = vpop.f32.mrf.mxu1 }
 0x44a   :  { %6133 = vmatpush1.bf16.msra.mxu0 %v9106_v54  ;;  %v9172_v54 = vld [vmem:[#allocation2 + $0x500] ss:$16 sps:$4 sm:$0xff]  }
 0x44b   :  { %6186 = vmatpush1.bf16.msra.mxu1 %v9109_v41  ;;  %6134 = vmatprep.subr.bf16.mxu0 %v9114_v28  ;;  %v9175_v41 = vld [vmem:[#allocation2 + $0x700] ss:$16 sps:$4 sm:$0xff]   ;;  %v9180_v28 = vld [vmem:[#allocation2 + $0x8e4] ss:$16 sps:$4 sm:$0xff]  }
 0x44c   :  { %6187 = vmatprep.subr.bf16.mxu1 %v9117_v44  ;;  %v9183_v44 = vld [vmem:[#allocation2 + $0xae4] ss:$16 sps:$4 sm:$0xff]  }
 0x44e   :  { %6135 = vmatpush1.bf16.msra.mxu0 %v9112_v25  ;;  %v3999_v25 = vpop.f32.mrf.mxu0 }
 0x44f   :  { %6188 = vmatpush1.bf16.msra.mxu1 %v9115_v39  ;;  %6136 = vmatprep.subr.bf16.mxu0 %v9120_v46  ;;  %v4052_v39 = vpop.f32.mrf.mxu1  ;;  %v9178_v46 = vld [vmem:[#allocation2 + $0x8e0] ss:$16 sps:$4 sm:$0xff]  }
 0x450   :  { %6189 = vmatprep.subr.bf16.mxu1 %v9123_v63  ;;  %v9181_v63 = vld [vmem:[#allocation2 + $0xae0] ss:$16 sps:$4 sm:$0xff]  }
 0x452   :  { %6137 = vmatpush1.bf16.msra.mxu0 %v9118_v20  ;;  %v9186_v20 = vld [vmem:[#allocation2 + $0x8c4] ss:$16 sps:$4 sm:$0xff]  }
 0x453   :  { %6190 = vmatpush1.bf16.msra.mxu1 %v9121_v27  ;;  %6138 = vmatprep.subr.bf16.mxu0 %v9126_v0  ;;  %v9189_v27 = vld [vmem:[#allocation2 + $0xac4] ss:$16 sps:$4 sm:$0xff]   ;;  %v10345_v0 = vpop.f32.mrf.mxu0 }
 0x454   :  { %6191 = vmatprep.subr.bf16.mxu1 %v9129_v1  ;;  %v10347_v1 = vpop.f32.mrf.mxu1 }
 0x456   :  { %6139 = vmatpush1.bf16.msra.mxu0 %v9124_v56  ;;  %v9184_v56 = vld [vmem:[#allocation2 + $0x8c0] ss:$16 sps:$4 sm:$0xff]  }
 0x457   :  { %6192 = vmatpush1.bf16.msra.mxu1 %v9127_v43  ;;  %6140 = vmatprep.subr.bf16.mxu0 %v9132_v38  ;;  %v9187_v43 = vld [vmem:[#allocation2 + $0xac0] ss:$16 sps:$4 sm:$0xff]   ;;  %v9192_v38 = vld [vmem:[#allocation2 + $0x8a4] ss:$16 sps:$4 sm:$0xff]  }
 0x458   :  { %6193 = vmatprep.subr.bf16.mxu1 %v9135_v29  ;;  %v9195_v29 = vld [vmem:[#allocation2 + $0xaa4] ss:$16 sps:$4 sm:$0xff]  }
 0x45a   :  { %6141 = vmatpush2.bf16.msra.mxu0 %v9130_v16  ;;  %v4003_v16 = vpop.f32.mrf.mxu0 }
 0x45b   :  { %6194 = vmatpush2.bf16.msra.mxu1 %v9133_v23  ;;  %6142 = vmatprep.subr.bf16.mxu0 %v9138_v42  ;;  %v4056_v23 = vpop.f32.mrf.mxu1  ;;  %v9190_v42 = vld [vmem:[#allocation2 + $0x8a0] ss:$16 sps:$4 sm:$0xff]  }
 0x45c   :  { %6195 = vmatprep.subr.bf16.mxu1 %v9141_v52  ;;  %v9193_v52 = vld [vmem:[#allocation2 + $0xaa0] ss:$16 sps:$4 sm:$0xff]  }
 0x45e   :  { %6143 = vmatpush2.bf16.msra.mxu0 %v9136_v53  ;;  %v9198_v53 = vld [vmem:[#allocation2 + $0x884] ss:$16 sps:$4 sm:$0xff]  }
 0x45f   :  { %6196 = vmatpush2.bf16.msra.mxu1 %v9139_v47  ;;  %6144 = vmatprep.subr.bf16.mxu0 %v9144_v22  ;;  %v9201_v47 = vld [vmem:[#allocation2 + $0xa84] ss:$16 sps:$4 sm:$0xff]   ;;  %v10351_v22 = vpack.c.bf16 %v4003_v16, %v3999_v25  ;;  %v9232_v25 = vld [vmem:[#allocation2 + $0x9c0] ss:$16 sps:$4 sm:$0xff]  }
 0x460   :  { %6197 = vmatprep.subr.bf16.mxu1 %v9147_v50  ;;  %v10353_v50 = vpack.c.bf16 %v4056_v23, %v4052_v39  ;;  %v9235_v39 = vld [vmem:[#allocation2 + $0xbc0] ss:$16 sps:$4 sm:$0xff]   ;;  %v9252_v16 = vld [vmem:[#allocation2 + $0x964] ss:$16 sps:$4 sm:$0xff]  }
 0x461   :  { %v9255_v23 = vld [vmem:[#allocation2 + $0xb64] ss:$16 sps:$4 sm:$0xff]  }
 0x462   :  { %6145 = vmatpush2.bf16.msra.mxu0 %v9142_v35  ;;  %v9196_v35 = vld [vmem:[#allocation2 + $0x880] ss:$16 sps:$4 sm:$0xff]  }
 0x463   :  { %6198 = vmatpush2.bf16.msra.mxu1 %v9145_v58  ;;  %6146 = vmatprep.subr.bf16.mxu0 %v9150_v48  ;;  %v9199_v58 = vld [vmem:[#allocation2 + $0xa80] ss:$16 sps:$4 sm:$0xff]   ;;  %v9204_v48 = vld [vmem:[#allocation2 + $0x864] ss:$16 sps:$4 sm:$0xff]  }
 0x464   :  { %6199 = vmatprep.subr.bf16.mxu1 %v9153_v60  ;;  %v9207_v60 = vld [vmem:[#allocation2 + $0xa64] ss:$16 sps:$4 sm:$0xff]  }
 0x466   :  { %6147 = vmatpush2.bf16.msra.mxu0 %v9148_v30  ;;  %v9202_v30 = vld [vmem:[#allocation2 + $0x860] ss:$16 sps:$4 sm:$0xff]  }
 0x467   :  { %6200 = vmatpush2.bf16.msra.mxu1 %v9151_v33  ;;  %6148 = vmatprep.subr.bf16.mxu0 %v9156_v19  ;;  %v9205_v33 = vld [vmem:[#allocation2 + $0xa60] ss:$16 sps:$4 sm:$0xff]   ;;  %v9210_v19 = vld [vmem:[#allocation2 + $0x844] ss:$16 sps:$4 sm:$0xff]  }
 0x468   :  { %6201 = vmatprep.subr.bf16.mxu1 %v9159_v59  ;;  %v9213_v59 = vld [vmem:[#allocation2 + $0xa44] ss:$16 sps:$4 sm:$0xff]  }
 0x46a   :  { %6149 = vmatpush2.bf16.msra.mxu0 %v9154_v31  ;;  %v9208_v31 = vld [vmem:[#allocation2 + $0x840] ss:$16 sps:$4 sm:$0xff]  }
 0x46b   :  { %6202 = vmatpush2.bf16.msra.mxu1 %v9157_v2  ;;  %6150 = vmatprep.subr.bf16.mxu0 %v9162_v13  ;;  %v9211_v2 = vld [vmem:[#allocation2 + $0xa40] ss:$16 sps:$4 sm:$0xff]   ;;  %v9216_v13 = vld [vmem:[#allocation2 + $0x824] ss:$16 sps:$4 sm:$0xff]  }
 0x46c   :  { %6203 = vmatprep.subr.bf16.mxu1 %v9165_v9  ;;  %v9219_v9 = vld [vmem:[#allocation2 + $0xa24] ss:$16 sps:$4 sm:$0xff]  }
 0x46e   :  { %6151 = vmatpush2.bf16.msra.mxu0 %v9160_v5  ;;  %v9214_v5 = vld [vmem:[#allocation2 + $0x820] ss:$16 sps:$4 sm:$0xff]  }
 0x46f   :  { %6204 = vmatpush2.bf16.msra.mxu1 %v9163_v36  ;;  %6152 = vmatprep.subr.bf16.mxu0 %v9168_v62  ;;  %v9217_v36 = vld [vmem:[#allocation2 + $0xa20] ss:$16 sps:$4 sm:$0xff]   ;;  %v9222_v62 = vld [vmem:[#allocation2 + $0x804] ss:$16 sps:$4 sm:$0xff]  }
 0x470   :  { %6205 = vmatprep.subr.bf16.mxu1 %v9171_v6  ;;  %v9225_v6 = vld [vmem:[#allocation2 + $0xa04] ss:$16 sps:$4 sm:$0xff]  }
 0x472   :  { %6153 = vmatpush2.bf16.msra.mxu0 %v9166_v4  ;;  %v9220_v4 = vld [vmem:[#allocation2 + $0x800] ss:$16 sps:$4 sm:$0xff]  }
 0x473   :  { %6206 = vmatpush2.bf16.msra.mxu1 %v9169_v51  ;;  %6154 = vmatprep.subr.bf16.mxu0 %v9174_v32  ;;  %v9223_v51 = vld [vmem:[#allocation2 + $0xa00] ss:$16 sps:$4 sm:$0xff]   ;;  %v9228_v32 = vld [vmem:[#allocation2 + $0x9e4] ss:$16 sps:$4 sm:$0xff]  }
 0x474   :  { %6207 = vmatprep.subr.bf16.mxu1 %v9177_v7  ;;  %v9231_v7 = vld [vmem:[#allocation2 + $0xbe4] ss:$16 sps:$4 sm:$0xff]  }
 0x476   :  { %6155 = vmatpush2.bf16.msra.mxu0 %v9172_v54  ;;  %v9226_v54 = vld [vmem:[#allocation2 + $0x9e0] ss:$16 sps:$4 sm:$0xff]  }
 0x477   :  { %6208 = vmatpush2.bf16.msra.mxu1 %v9175_v41  ;;  %6230 = vmatprep.subr.bf16.mxu0 %v9180_v28  ;;  %v9229_v41 = vld [vmem:[#allocation2 + $0xbe0] ss:$16 sps:$4 sm:$0xff]   ;;  %v9234_v28 = vld [vmem:[#allocation2 + $0x9c4] ss:$16 sps:$4 sm:$0xff]  }
 0x478   :  { %6283 = vmatprep.subr.bf16.mxu1 %v9183_v44  ;;  %v9237_v44 = vld [vmem:[#allocation2 + $0xbc4] ss:$16 sps:$4 sm:$0xff]  }
 0x479   :  { %6157 = vmatmul.mubr.bf16.vlgmr.msra.gmra.mxu0 %v10275_v14 }
 0x47a   :  { %6210 = vmatmul.mubr.bf16.vlgmr.msra.gmra.mxu1 %v10277_v18  ;;  %6231 = vmatpush1.bf16.msra.mxu0 %v9178_v46  ;;  %v9240_v46 = vld [vmem:[#allocation2 + $0x9a4] ss:$16 sps:$4 sm:$0xff]  }
 0x47b   :  { %6284 = vmatpush1.bf16.msra.mxu1 %v9181_v63  ;;  %6232 = vmatprep.subr.bf16.mxu0 %v9186_v20  ;;  %v9243_v63 = vld [vmem:[#allocation2 + $0xba4] ss:$16 sps:$4 sm:$0xff]   ;;  %v9238_v20 = vld [vmem:[#allocation2 + $0x9a0] ss:$16 sps:$4 sm:$0xff]  }
 0x47c   :  { %6285 = vmatprep.subr.bf16.mxu1 %v9189_v27  ;;  %6166 = vmatprep.mubr.bf16.mxu0 %v10245_v11  ;;  %v9241_v27 = vld [vmem:[#allocation2 + $0xba0] ss:$16 sps:$4 sm:$0xff]  }
 0x47d   :  { %6219 = vmatprep.mubr.bf16.mxu1 %v10247_v17 }
 0x47e   :  { %6233 = vmatpush1.bf16.msra.mxu0 %v9184_v56  ;;  %v9246_v56 = vld [vmem:[#allocation2 + $0x984] ss:$16 sps:$4 sm:$0xff]  }
 0x47f   :  { %6286 = vmatpush1.bf16.msra.mxu1 %v9187_v43  ;;  %6234 = vmatprep.subr.bf16.mxu0 %v9192_v38  ;;  %v9249_v43 = vld [vmem:[#allocation2 + $0xb84] ss:$16 sps:$4 sm:$0xff]   ;;  %v9244_v38 = vld [vmem:[#allocation2 + $0x980] ss:$16 sps:$4 sm:$0xff]  }
 0x480   :  { %6287 = vmatprep.subr.bf16.mxu1 %v9195_v29  ;;  %v9247_v29 = vld [vmem:[#allocation2 + $0xb80] ss:$16 sps:$4 sm:$0xff]  }
 0x481   :  { %6167 = vmatmul.mubr.bf16.gmra.mxu0 %v10253_v12 }
 0x482   :  { %6220 = vmatmul.mubr.bf16.gmra.mxu1 %v10255_v8  ;;  %6235 = vmatpush1.bf16.msra.mxu0 %v9190_v42  ;;  %v9250_v42 = vld [vmem:[#allocation2 + $0x960] ss:$16 sps:$4 sm:$0xff]  }
 0x483   :  { %6288 = vmatpush1.bf16.msra.mxu1 %v9193_v52  ;;  %6236 = vmatprep.subr.bf16.mxu0 %v9198_v53  ;;  %v9253_v52 = vld [vmem:[#allocation2 + $0xb60] ss:$16 sps:$4 sm:$0xff]   ;;  %v9258_v53 = vld [vmem:[#allocation2 + $0x944] ss:$16 sps:$4 sm:$0xff]  }
 0x484   :  { %6289 = vmatprep.subr.bf16.mxu1 %v9201_v47  ;;  %6262 = vmatprep.mubr.bf16.mxu0 %v10351_v22  ;;  %v9261_v47 = vld [vmem:[#allocation2 + $0xb44] ss:$16 sps:$4 sm:$0xff]  }
 0x485   :  { %6315 = vmatprep.mubr.bf16.mxu1 %v10353_v50 }
 0x486   :  { %6237 = vmatpush1.bf16.msra.mxu0 %v9196_v35  ;;  %v4007_v35 = vpop.f32.mrf.mxu0 }
 0x487   :  { %6290 = vmatpush1.bf16.msra.mxu1 %v9199_v58  ;;  %6238 = vmatprep.subr.bf16.mxu0 %v9204_v48  ;;  %v4060_v58 = vpop.f32.mrf.mxu1  ;;  %v9256_v48 = vld [vmem:[#allocation2 + $0x940] ss:$16 sps:$4 sm:$0xff]  }
 0x488   :  { %6291 = vmatprep.subr.bf16.mxu1 %v9207_v60  ;;  %v9259_v60 = vld [vmem:[#allocation2 + $0xb40] ss:$16 sps:$4 sm:$0xff]  }
 0x48a   :  { %6239 = vmatpush1.bf16.msra.mxu0 %v9202_v30  ;;  %v9264_v30 = vld [vmem:[#allocation2 + $0x924] ss:$16 sps:$4 sm:$0xff]  }
 0x48b   :  { %6292 = vmatpush1.bf16.msra.mxu1 %v9205_v33  ;;  %6240 = vmatprep.subr.bf16.mxu0 %v9210_v19  ;;  %v9267_v33 = vld [vmem:[#allocation2 + $0xb24] ss:$16 sps:$4 sm:$0xff]   ;;  %v4009_v19 = vpop.f32.mrf.mxu0 }
 0x48c   :  { %6293 = vmatprep.subr.bf16.mxu1 %v9213_v59  ;;  %v4062_v59 = vpop.f32.mrf.mxu1 }
 0x48e   :  { %6241 = vmatpush1.bf16.msra.mxu0 %v9208_v31  ;;  %v9262_v31 = vld [vmem:[#allocation2 + $0x920] ss:$16 sps:$4 sm:$0xff]  }
 0x48f   :  { %6294 = vmatpush1.bf16.msra.mxu1 %v9211_v2  ;;  %6242 = vmatprep.subr.bf16.mxu0 %v9216_v13  ;;  %v9265_v2 = vld [vmem:[#allocation2 + $0xb20] ss:$16 sps:$4 sm:$0xff]   ;;  %v9270_v13 = vld [vmem:[#allocation2 + $0x904] ss:$16 sps:$4 sm:$0xff]  }
 0x490   :  { %6295 = vmatprep.subr.bf16.mxu1 %v9219_v9  ;;  %v9273_v9 = vld [vmem:[#allocation2 + $0xb04] ss:$16 sps:$4 sm:$0xff]  }
 0x492   :  { %6243 = vmatpush1.bf16.msra.mxu0 %v9214_v5  ;;  %v4011_v5 = vpop.f32.mrf.mxu0 }
 0x493   :  { %6296 = vmatpush1.bf16.msra.mxu1 %v9217_v36  ;;  %6244 = vmatprep.subr.bf16.mxu0 %v9222_v62  ;;  %v4064_v36 = vpop.f32.mrf.mxu1  ;;  %v9268_v62 = vld [vmem:[#allocation2 + $0x900] ss:$16 sps:$4 sm:$0xff]  }
 0x494   :  { %6297 = vmatprep.subr.bf16.mxu1 %v9225_v6  ;;  %v9271_v6 = vld [vmem:[#allocation2 + $0xb00] ss:$16 sps:$4 sm:$0xff]  }
 0x496   :  { %6245 = vmatpush1.bf16.msra.mxu0 %v9220_v4  ;;  %v9276_v4 = vld [vmem:[#allocation2 + $0xec] ss:$16 sps:$4 sm:$0xff]  }
 0x497   :  { %6298 = vmatpush1.bf16.msra.mxu1 %v9223_v51  ;;  %6246 = vmatprep.subr.bf16.mxu0 %v9228_v32  ;;  %v9279_v51 = vld [vmem:[#allocation2 + $0x2ec] ss:$16 sps:$4 sm:$0xff]   ;;  %v4013_v32 = vpop.f32.mrf.mxu0 }
 0x498   :  { %6299 = vmatprep.subr.bf16.mxu1 %v9231_v7  ;;  %v4066_v7 = vpop.f32.mrf.mxu1 }
 0x49a   :  { %6247 = vmatpush2.bf16.msra.mxu0 %v9226_v54  ;;  %v9274_v54 = vld [vmem:[#allocation2 + $0xe8] ss:$16 sps:$4 sm:$0xff]  }
 0x49b   :  { %6300 = vmatpush2.bf16.msra.mxu1 %v9229_v41  ;;  %6248 = vmatprep.subr.bf16.mxu0 %v9234_v28  ;;  %v9277_v41 = vld [vmem:[#allocation2 + $0x2e8] ss:$16 sps:$4 sm:$0xff]   ;;  %v10361_v28 = vpack.c.bf16 %v10345_v0, %v10339_v21 }
 0x49c   :  { %6301 = vmatprep.subr.bf16.mxu1 %v9237_v44  ;;  %v10365_v44 = vpack.c.bf16 %v10347_v1, %v10341_v40  ;;  %v9280_v21 = vld [vmem:[#allocation2 + $0xc8] ss:$16 sps:$4 sm:$0xff]   ;;  %v9288_v40 = vld [vmem:[#allocation2 + $0xac] ss:$16 sps:$4 sm:$0xff]  }
 0x49d   :  { %v9283_v0 = vld [vmem:[#allocation2 + $0x2c8] ss:$16 sps:$4 sm:$0xff]   ;;  %v9291_v1 = vld [vmem:[#allocation2 + $0x2ac] ss:$16 sps:$4 sm:$0xff]  }
 0x49e   :  { %6249 = vmatpush2.bf16.msra.mxu0 %v9232_v25  ;;  %v9282_v25 = vld [vmem:[#allocation2 + $0xcc] ss:$16 sps:$4 sm:$0xff]  }
 0x49f   :  { %6302 = vmatpush2.bf16.msra.mxu1 %v9235_v39  ;;  %6250 = vmatprep.subr.bf16.mxu0 %v9240_v46  ;;  %v9285_v39 = vld [vmem:[#allocation2 + $0x2cc] ss:$16 sps:$4 sm:$0xff]   ;;  %v10367_v46 = vpack.c.bf16 %v4013_v32, %v4009_v19 }
 0x4a0   :  { %6303 = vmatprep.subr.bf16.mxu1 %v9243_v63  ;;  %v10369_v63 = vpack.c.bf16 %v4066_v7, %v4062_v59  ;;  %v9318_v19 = vld [vmem:[#allocation2 + $0xc] ss:$16 sps:$4 sm:$0xff]  }
 0x4a1   :  { %v9321_v59 = vld [vmem:[#allocation2 + $0x20c] ss:$16 sps:$4 sm:$0xff]  }
 0x4a2   :  { %6251 = vmatpush2.bf16.msra.mxu0 %v9238_v20  ;;  %v10375_v20 = vpack.c.bf16 %v4011_v5, %v4007_v35  ;;  %v9306_v35 = vld [vmem:[#allocation2 + $0x4c] ss:$16 sps:$4 sm:$0xff]   ;;  %v9322_v5 = vld [vmem:[#allocation2 + $0x1e8] ss:$16 sps:$4 sm:$0xff]  }
 0x4a3   :  { %6304 = vmatpush2.bf16.msra.mxu1 %v9241_v27  ;;  %6252 = vmatprep.subr.bf16.mxu0 %v9246_v56  ;;  %v10377_v27 = vpack.c.bf16 %v4064_v36, %v4060_v58  ;;  %v9286_v56 = vld [vmem:[#allocation2 + $0xa8] ss:$16 sps:$4 sm:$0xff]   ;;  %v9309_v58 = vld [vmem:[#allocation2 + $0x24c] ss:$16 sps:$4 sm:$0xff]  }
 0x4a4   :  { %6305 = vmatprep.subr.bf16.mxu1 %v9249_v43  ;;  %v9289_v43 = vld [vmem:[#allocation2 + $0x2a8] ss:$16 sps:$4 sm:$0xff]   ;;  %v9336_v32 = vld [vmem:[#allocation2 + $0x1ac] ss:$16 sps:$4 sm:$0xff]  }
 0x4a5   :  { %v9325_v36 = vld [vmem:[#allocation2 + $0x3e8] ss:$16 sps:$4 sm:$0xff]   ;;  %v9339_v7 = vld [vmem:[#allocation2 + $0x3ac] ss:$16 sps:$4 sm:$0xff]  }
 0x4a6   :  { %6253 = vmatpush2.bf16.msra.mxu0 %v9244_v38  ;;  %v9294_v38 = vld [vmem:[#allocation2 + $0x8c] ss:$16 sps:$4 sm:$0xff]  }
 0x4a7   :  { %6306 = vmatpush2.bf16.msra.mxu1 %v9247_v29  ;;  %6254 = vmatprep.subr.bf16.mxu0 %v9252_v16  ;;  %v9297_v29 = vld [vmem:[#allocation2 + $0x28c] ss:$16 sps:$4 sm:$0xff]   ;;  %v9292_v16 = vld [vmem:[#allocation2 + $0x88] ss:$16 sps:$4 sm:$0xff]  }
 0x4a8   :  { %6307 = vmatprep.subr.bf16.mxu1 %v9255_v23  ;;  %v9295_v23 = vld [vmem:[#allocation2 + $0x288] ss:$16 sps:$4 sm:$0xff]  }
 0x4aa   :  { %6255 = vmatpush2.bf16.msra.mxu0 %v9250_v42  ;;  %v9300_v42 = vld [vmem:[#allocation2 + $0x6c] ss:$16 sps:$4 sm:$0xff]  }
 0x4ab   :  { %6308 = vmatpush2.bf16.msra.mxu1 %v9253_v52  ;;  %6256 = vmatprep.subr.bf16.mxu0 %v9258_v53  ;;  %v9303_v52 = vld [vmem:[#allocation2 + $0x26c] ss:$16 sps:$4 sm:$0xff]   ;;  %v9298_v53 = vld [vmem:[#allocation2 + $0x68] ss:$16 sps:$4 sm:$0xff]  }
 0x4ac   :  { %6309 = vmatprep.subr.bf16.mxu1 %v9261_v47  ;;  %v9301_v47 = vld [vmem:[#allocation2 + $0x268] ss:$16 sps:$4 sm:$0xff]  }
 0x4ae   :  { %6257 = vmatpush2.bf16.msra.mxu0 %v9256_v48  ;;  %v9304_v48 = vld [vmem:[#allocation2 + $0x48] ss:$16 sps:$4 sm:$0xff]  }
 0x4af   :  { %6310 = vmatpush2.bf16.msra.mxu1 %v9259_v60  ;;  %6258 = vmatprep.subr.bf16.mxu0 %v9264_v30  ;;  %v9312_v60 = vld [vmem:[#allocation2 + $0x2c] ss:$16 sps:$4 sm:$0xff]   ;;  %v9310_v30 = vld [vmem:[#allocation2 + $0x28] ss:$16 sps:$4 sm:$0xff]  }
 0x4b0   :  { %6311 = vmatprep.subr.bf16.mxu1 %v9267_v33  ;;  %v9313_v33 = vld [vmem:[#allocation2 + $0x228] ss:$16 sps:$4 sm:$0xff]  }
 0x4b2   :  { %6259 = vmatpush2.bf16.msra.mxu0 %v9262_v31  ;;  %v9316_v31 = vld [vmem:[#allocation2 + $0x8] ss:$16 sps:$4 sm:$0xff]  }
 0x4b3   :  { %6312 = vmatpush2.bf16.msra.mxu1 %v9265_v2  ;;  %6260 = vmatprep.subr.bf16.mxu0 %v9270_v13  ;;  %v9319_v2 = vld [vmem:[#allocation2 + $0x208] ss:$16 sps:$4 sm:$0xff]   ;;  %v9324_v13 = vld [vmem:[#allocation2 + $0x1ec] ss:$16 sps:$4 sm:$0xff]  }
 0x4b4   :  { %6313 = vmatprep.subr.bf16.mxu1 %v9273_v9  ;;  %v9327_v9 = vld [vmem:[#allocation2 + $0x3ec] ss:$16 sps:$4 sm:$0xff]  }
 0x4b6   :  { %6261 = vmatpush2.bf16.msra.mxu0 %v9268_v62  ;;  %v9330_v62 = vld [vmem:[#allocation2 + $0x1cc] ss:$16 sps:$4 sm:$0xff]  }
 0x4b7   :  { %6314 = vmatpush2.bf16.msra.mxu1 %v9271_v6  ;;  %6336 = vmatprep.subr.bf16.mxu0 %v9276_v4  ;;  %v9333_v6 = vld [vmem:[#allocation2 + $0x3cc] ss:$16 sps:$4 sm:$0xff]   ;;  %v9328_v4 = vld [vmem:[#allocation2 + $0x1c8] ss:$16 sps:$4 sm:$0xff]  }
 0x4b8   :  { %6389 = vmatprep.subr.bf16.mxu1 %v9279_v51  ;;  %v9331_v51 = vld [vmem:[#allocation2 + $0x3c8] ss:$16 sps:$4 sm:$0xff]  }
 0x4b9   :  { %6263 = vmatmul.mubr.bf16.vlgmr.msra.gmra.mxu0 %v10361_v28 }
 0x4ba   :  { %6316 = vmatmul.mubr.bf16.vlgmr.msra.gmra.mxu1 %v10365_v44  ;;  %6337 = vmatpush1.bf16.msra.mxu0 %v9274_v54  ;;  %v9334_v54 = vld [vmem:[#allocation2 + $0x1a8] ss:$16 sps:$4 sm:$0xff]  }
 0x4bb   :  { %6390 = vmatpush1.bf16.msra.mxu1 %v9277_v41  ;;  %6338 = vmatprep.subr.bf16.mxu0 %v9282_v25  ;;  %v9337_v41 = vld [vmem:[#allocation2 + $0x3a8] ss:$16 sps:$4 sm:$0xff]   ;;  %v9342_v25 = vld [vmem:[#allocation2 + $0x18c] ss:$16 sps:$4 sm:$0xff]  }
 0x4bc   :  { %6391 = vmatprep.subr.bf16.mxu1 %v9285_v39  ;;  %6272 = vmatprep.mubr.bf16.mxu0 %v10367_v46  ;;  %v9345_v39 = vld [vmem:[#allocation2 + $0x38c] ss:$16 sps:$4 sm:$0xff]  }
 0x4bd   :  { %6325 = vmatprep.mubr.bf16.mxu1 %v10369_v63 }
 0x4be   :  { %6339 = vmatpush1.bf16.msra.mxu0 %v9280_v21  ;;  %v9340_v21 = vld [vmem:[#allocation2 + $0x188] ss:$16 sps:$4 sm:$0xff]  }
 0x4bf   :  { %6392 = vmatpush1.bf16.msra.mxu1 %v9283_v0  ;;  %6340 = vmatprep.subr.bf16.mxu0 %v9288_v40  ;;  %v9343_v0 = vld [vmem:[#allocation2 + $0x388] ss:$16 sps:$4 sm:$0xff]   ;;  %v9348_v40 = vld [vmem:[#allocation2 + $0x16c] ss:$16 sps:$4 sm:$0xff]  }
 0x4c0   :  { %6393 = vmatprep.subr.bf16.mxu1 %v9291_v1  ;;  %v9351_v1 = vld [vmem:[#allocation2 + $0x36c] ss:$16 sps:$4 sm:$0xff]  }
 0x4c1   :  { %6273 = vmatmul.mubr.bf16.gmra.mxu0 %v10375_v20 }
 0x4c2   :  { %6326 = vmatmul.mubr.bf16.gmra.mxu1 %v10377_v27  ;;  %6341 = vmatpush1.bf16.msra.mxu0 %v9286_v56  ;;  %v9346_v56 = vld [vmem:[#allocation2 + $0x168] ss:$16 sps:$4 sm:$0xff]  }
 0x4c3   :  { %6368 = vmatprep.mubr.bf16.mxu0 %v10313_v24  ;;  %6394 = vmatpush1.bf16.msra.mxu1 %v9289_v43  ;;  %v9307_v24 = vld [vmem:[#allocation2 + $0x248] ss:$16 sps:$4 sm:$0xff]  }
 0x4c4   :  { %6421 = vmatprep.mubr.bf16.mxu1 %v10315_v55  ;;  %6342 = vmatprep.subr.bf16.mxu0 %v9294_v38  ;;  %v9315_v55 = vld [vmem:[#allocation2 + $0x22c] ss:$16 sps:$4 sm:$0xff]   ;;  %v9349_v43 = vld [vmem:[#allocation2 + $0x368] ss:$16 sps:$4 sm:$0xff]  }
 0x4c5   :  { %6395 = vmatprep.subr.bf16.mxu1 %v9297_v29  ;;  %v9354_v38 = vld [vmem:[#allocation2 + $0x14c] ss:$16 sps:$4 sm:$0xff]  }
 0x4c6   :  { %6343 = vmatpush1.bf16.msra.mxu0 %v9292_v16  ;;  %v9357_v29 = vld [vmem:[#allocation2 + $0x34c] ss:$16 sps:$4 sm:$0xff]   ;;  %v9352_v16 = vld [vmem:[#allocation2 + $0x148] ss:$16 sps:$4 sm:$0xff]  }
 0x4c7   :  { %6396 = vmatpush1.bf16.msra.mxu1 %v9295_v23  ;;  %6344 = vmatprep.subr.bf16.mxu0 %v9300_v42  ;;  %v9355_v23 = vld [vmem:[#allocation2 + $0x348] ss:$16 sps:$4 sm:$0xff]   ;;  %v9360_v42 = vld [vmem:[#allocation2 + $0x12c] ss:$16 sps:$4 sm:$0xff]  }
 0x4c8   :  { %6397 = vmatprep.subr.bf16.mxu1 %v9303_v52  ;;  %v9363_v52 = vld [vmem:[#allocation2 + $0x32c] ss:$16 sps:$4 sm:$0xff]  }
 0x4ca   :  { %6345 = vmatpush1.bf16.msra.mxu0 %v9298_v53  ;;  %v9358_v53 = vld [vmem:[#allocation2 + $0x128] ss:$16 sps:$4 sm:$0xff]  }
 0x4cb   :  { %6398 = vmatpush1.bf16.msra.mxu1 %v9301_v47  ;;  %6346 = vmatprep.subr.bf16.mxu0 %v9306_v35  ;;  %v9361_v47 = vld [vmem:[#allocation2 + $0x328] ss:$16 sps:$4 sm:$0xff]   ;;  %v9366_v35 = vld [vmem:[#allocation2 + $0x10c] ss:$16 sps:$4 sm:$0xff]  }
 0x4cc   :  { %6399 = vmatprep.subr.bf16.mxu1 %v9309_v58  ;;  %v9369_v58 = vld [vmem:[#allocation2 + $0x30c] ss:$16 sps:$4 sm:$0xff]  }
 0x4ce   :  { %6347 = vmatpush1.bf16.msra.mxu0 %v9304_v48  ;;  %v9364_v48 = vld [vmem:[#allocation2 + $0x108] ss:$16 sps:$4 sm:$0xff]  }
 0x4cf   :  { %6400 = vmatpush1.bf16.msra.mxu1 %v9307_v24  ;;  %6348 = vmatprep.subr.bf16.mxu0 %v9312_v60  ;;  %v9367_v24 = vld [vmem:[#allocation2 + $0x308] ss:$16 sps:$4 sm:$0xff]   ;;  %v9372_v60 = vld [vmem:[#allocation2 + $0x4ec] ss:$16 sps:$4 sm:$0xff]  }
 0x4d0   :  { %6401 = vmatprep.subr.bf16.mxu1 %v9315_v55  ;;  %v9375_v55 = vld [vmem:[#allocation2 + $0x6ec] ss:$16 sps:$4 sm:$0xff]  }
 0x4d2   :  { %6349 = vmatpush1.bf16.msra.mxu0 %v9310_v30  ;;  %v9370_v30 = vld [vmem:[#allocation2 + $0x4e8] ss:$16 sps:$4 sm:$0xff]  }
 0x4d3   :  { %6402 = vmatpush1.bf16.msra.mxu1 %v9313_v33  ;;  %6350 = vmatprep.subr.bf16.mxu0 %v9318_v19  ;;  %v9373_v33 = vld [vmem:[#allocation2 + $0x6e8] ss:$16 sps:$4 sm:$0xff]   ;;  %v9378_v19 = vld [vmem:[#allocation2 + $0x4cc] ss:$16 sps:$4 sm:$0xff]  }
 0x4d4   :  { %6403 = vmatprep.subr.bf16.mxu1 %v9321_v59  ;;  %v9381_v59 = vld [vmem:[#allocation2 + $0x6cc] ss:$16 sps:$4 sm:$0xff]  }
 0x4d6   :  { %6351 = vmatpush1.bf16.msra.mxu0 %v9316_v31  ;;  %v9376_v31 = vld [vmem:[#allocation2 + $0x4c8] ss:$16 sps:$4 sm:$0xff]  }
 0x4d7   :  { %6404 = vmatpush1.bf16.msra.mxu1 %v9319_v2  ;;  %6352 = vmatprep.subr.bf16.mxu0 %v9324_v13  ;;  %v9379_v2 = vld [vmem:[#allocation2 + $0x6c8] ss:$16 sps:$4 sm:$0xff]   ;;  %v9384_v13 = vld [vmem:[#allocation2 + $0x4ac] ss:$16 sps:$4 sm:$0xff]  }
 0x4d8   :  { %6405 = vmatprep.subr.bf16.mxu1 %v9327_v9  ;;  %v9387_v9 = vld [vmem:[#allocation2 + $0x6ac] ss:$16 sps:$4 sm:$0xff]  }
 0x4da   :  { %6353 = vmatpush2.bf16.msra.mxu0 %v9322_v5  ;;  %v9382_v5 = vld [vmem:[#allocation2 + $0x4a8] ss:$16 sps:$4 sm:$0xff]  }
 0x4db   :  { %6406 = vmatpush2.bf16.msra.mxu1 %v9325_v36  ;;  %6354 = vmatprep.subr.bf16.mxu0 %v9330_v62  ;;  %v9390_v36 = vld [vmem:[#allocation2 + $0x48c] ss:$16 sps:$4 sm:$0xff]  }
 0x4dc   :  { %6407 = vmatprep.subr.bf16.mxu1 %v9333_v6  ;;  %v9396_v62 = vld [vmem:[#allocation2 + $0x46c] ss:$16 sps:$4 sm:$0xff]  }
 0x4dd   :  { %v9399_v6 = vld [vmem:[#allocation2 + $0x66c] ss:$16 sps:$4 sm:$0xff]  }
 0x4de   :  { %6355 = vmatpush2.bf16.msra.mxu0 %v9328_v4  ;;  %v9394_v4 = vld [vmem:[#allocation2 + $0x468] ss:$16 sps:$4 sm:$0xff]  }
 0x4df   :  { %6408 = vmatpush2.bf16.msra.mxu1 %v9331_v51  ;;  %6356 = vmatprep.subr.bf16.mxu0 %v9336_v32  ;;  %v9402_v51 = vld [vmem:[#allocation2 + $0x44c] ss:$16 sps:$4 sm:$0xff]   ;;  %v9403_v32 = vld [vmem:[#allocation2 + $0x648] ss:$16 sps:$4 sm:$0xff]  }
 0x4e0   :  { %6409 = vmatprep.subr.bf16.mxu1 %v9339_v7  ;;  %v9411_v7 = vld [vmem:[#allocation2 + $0x62c] ss:$16 sps:$4 sm:$0xff]  }
 0x4e2   :  { %6357 = vmatpush2.bf16.msra.mxu0 %v9334_v54  ;;  %v9406_v54 = vld [vmem:[#allocation2 + $0x428] ss:$16 sps:$4 sm:$0xff]  }
 0x4e3   :  { %6410 = vmatpush2.bf16.msra.mxu1 %v9337_v41  ;;  %6358 = vmatprep.subr.bf16.mxu0 %v9342_v25  ;;  %v9409_v41 = vld [vmem:[#allocation2 + $0x628] ss:$16 sps:$4 sm:$0xff]   ;;  %v9414_v25 = vld [vmem:[#allocation2 + $0x40c] ss:$16 sps:$4 sm:$0xff]  }
 0x4e4   :  { %6411 = vmatprep.subr.bf16.mxu1 %v9345_v39  ;;  %v9417_v39 = vld [vmem:[#allocation2 + $0x60c] ss:$16 sps:$4 sm:$0xff]  }
 0x4e6   :  { %6359 = vmatpush2.bf16.msra.mxu0 %v9340_v21  ;;  %v9412_v21 = vld [vmem:[#allocation2 + $0x408] ss:$16 sps:$4 sm:$0xff]  }
 0x4e7   :  { %6412 = vmatpush2.bf16.msra.mxu1 %v9343_v0  ;;  %6360 = vmatprep.subr.bf16.mxu0 %v9348_v40  ;;  %v9415_v0 = vld [vmem:[#allocation2 + $0x608] ss:$16 sps:$4 sm:$0xff]   ;;  %v9420_v40 = vld [vmem:[#allocation2 + $0x5ec] ss:$16 sps:$4 sm:$0xff]  }
 0x4e8   :  { %6413 = vmatprep.subr.bf16.mxu1 %v9351_v1  ;;  %v9423_v1 = vld [vmem:[#allocation2 + $0x7ec] ss:$16 sps:$4 sm:$0xff]  }
 0x4ea   :  { %6361 = vmatpush2.bf16.msra.mxu0 %v9346_v56  ;;  %v9418_v56 = vld [vmem:[#allocation2 + $0x5e8] ss:$16 sps:$4 sm:$0xff]  }
 0x4eb   :  { %6414 = vmatpush2.bf16.msra.mxu1 %v9349_v43  ;;  %6362 = vmatprep.subr.bf16.mxu0 %v9354_v38  ;;  %v9421_v43 = vld [vmem:[#allocation2 + $0x7e8] ss:$16 sps:$4 sm:$0xff]   ;;  %v9426_v38 = vld [vmem:[#allocation2 + $0x5cc] ss:$16 sps:$4 sm:$0xff]  }
 0x4ec   :  { %6415 = vmatprep.subr.bf16.mxu1 %v9357_v29  ;;  %v9429_v29 = vld [vmem:[#allocation2 + $0x7cc] ss:$16 sps:$4 sm:$0xff]  }
 0x4ee   :  { %6363 = vmatpush2.bf16.msra.mxu0 %v9352_v16  ;;  %v9424_v16 = vld [vmem:[#allocation2 + $0x5c8] ss:$16 sps:$4 sm:$0xff]  }
 0x4ef   :  { %6416 = vmatpush2.bf16.msra.mxu1 %v9355_v23  ;;  %6364 = vmatprep.subr.bf16.mxu0 %v9360_v42  ;;  %v9427_v23 = vld [vmem:[#allocation2 + $0x7c8] ss:$16 sps:$4 sm:$0xff]   ;;  %v9432_v42 = vld [vmem:[#allocation2 + $0x5ac] ss:$16 sps:$4 sm:$0xff]  }
 0x4f0   :  { %6417 = vmatprep.subr.bf16.mxu1 %v9363_v52  ;;  %v9435_v52 = vld [vmem:[#allocation2 + $0x7ac] ss:$16 sps:$4 sm:$0xff]  }
 0x4f2   :  { %6365 = vmatpush2.bf16.msra.mxu0 %v9358_v53  ;;  %v9430_v53 = vld [vmem:[#allocation2 + $0x5a8] ss:$16 sps:$4 sm:$0xff]  }
 0x4f3   :  { %6418 = vmatpush2.bf16.msra.mxu1 %v9361_v47  ;;  %6366 = vmatprep.subr.bf16.mxu0 %v9366_v35  ;;  %v9433_v47 = vld [vmem:[#allocation2 + $0x7a8] ss:$16 sps:$4 sm:$0xff]   ;;  %v9438_v35 = vld [vmem:[#allocation2 + $0x58c] ss:$16 sps:$4 sm:$0xff]  }
 0x4f4   :  { %6419 = vmatprep.subr.bf16.mxu1 %v9369_v58  ;;  %v9441_v58 = vld [vmem:[#allocation2 + $0x78c] ss:$16 sps:$4 sm:$0xff]  }
 0x4f6   :  { %6367 = vmatpush2.bf16.msra.mxu0 %v9364_v48  ;;  %v9436_v48 = vld [vmem:[#allocation2 + $0x588] ss:$16 sps:$4 sm:$0xff]  }
 0x4f7   :  { %6420 = vmatpush2.bf16.msra.mxu1 %v9367_v24  ;;  %6442 = vmatprep.subr.bf16.mxu0 %v9372_v60  ;;  %v9439_v24 = vld [vmem:[#allocation2 + $0x788] ss:$16 sps:$4 sm:$0xff]   ;;  %v9444_v60 = vld [vmem:[#allocation2 + $0x56c] ss:$16 sps:$4 sm:$0xff]  }
 0x4f8   :  { %6495 = vmatprep.subr.bf16.mxu1 %v9375_v55  ;;  %v9447_v55 = vld [vmem:[#allocation2 + $0x76c] ss:$16 sps:$4 sm:$0xff]  }
 0x4f9   :  { %6369 = vmatmul.mubr.bf16.vlgmr.msra.gmra.mxu0 %v10317_v61  ;;  %v9385_v61 = vld [vmem:[#allocation2 + $0x6a8] ss:$16 sps:$4 sm:$0xff]  }
 0x4fa   :  { %6422 = vmatmul.mubr.bf16.vlgmr.msra.gmra.mxu1 %v10319_v37  ;;  %6378 = vmatprep.mubr.bf16.mxu0 %v10329_v10  ;;  %v9393_v37 = vld [vmem:[#allocation2 + $0x68c] ss:$16 sps:$4 sm:$0xff]   ;;  %v9388_v10 = vld [vmem:[#allocation2 + $0x488] ss:$16 sps:$4 sm:$0xff]  }
 0x4fb   :  { %6431 = vmatprep.mubr.bf16.mxu1 %v10331_v15  ;;  %6443 = vmatpush1.bf16.msra.mxu0 %v9370_v30  ;;  %v9391_v15 = vld [vmem:[#allocation2 + $0x688] ss:$16 sps:$4 sm:$0xff]  }
 0x4fc   :  { %6496 = vmatpush1.bf16.msra.mxu1 %v9373_v33  ;;  %6444 = vmatprep.subr.bf16.mxu0 %v9378_v19  ;;  %v9442_v30 = vld [vmem:[#allocation2 + $0x568] ss:$16 sps:$4 sm:$0xff]   ;;  %v9450_v19 = vld [vmem:[#allocation2 + $0x54c] ss:$16 sps:$4 sm:$0xff]  }
 0x4fd   :  { %6497 = vmatprep.subr.bf16.mxu1 %v9381_v59  ;;  %v9445_v33 = vld [vmem:[#allocation2 + $0x768] ss:$16 sps:$4 sm:$0xff]   ;;  %v9453_v59 = vld [vmem:[#allocation2 + $0x74c] ss:$16 sps:$4 sm:$0xff]  }
 0x4ff   :  { %6445 = vmatpush1.bf16.msra.mxu0 %v9376_v31  ;;  %v9448_v31 = vld [vmem:[#allocation2 + $0x548] ss:$16 sps:$4 sm:$0xff]  }
 0x500   :  { %6498 = vmatpush1.bf16.msra.mxu1 %v9379_v2  ;;  %6446 = vmatprep.subr.bf16.mxu0 %v9384_v13  ;;  %v9451_v2 = vld [vmem:[#allocation2 + $0x748] ss:$16 sps:$4 sm:$0xff]   ;;  %v9456_v13 = vld [vmem:[#allocation2 + $0x52c] ss:$16 sps:$4 sm:$0xff]  }
 0x501   :  { %6379 = vmatmul.mubr.bf16.gmra.mxu0 %v10325_v57  ;;  %6499 = vmatprep.subr.bf16.mxu1 %v9387_v9  ;;  %v9397_v57 = vld [vmem:[#allocation2 + $0x668] ss:$16 sps:$4 sm:$0xff]   ;;  %v9459_v9 = vld [vmem:[#allocation2 + $0x72c] ss:$16 sps:$4 sm:$0xff]  }
 0x502   :  { %6432 = vmatmul.mubr.bf16.gmra.mxu1 %v10327_v3  ;;  %6474 = vmatprep.mubr.bf16.mxu0 %v10262_v45  ;;  %v9405_v3 = vld [vmem:[#allocation2 + $0x64c] ss:$16 sps:$4 sm:$0xff]   ;;  %v9400_v45 = vld [vmem:[#allocation2 + $0x448] ss:$16 sps:$4 sm:$0xff]  }
 0x503   :  { %6447 = vmatpush1.bf16.msra.mxu0 %v9382_v5  ;;  %6527 = vmatprep.mubr.bf16.mxu1 %v10264_v49  ;;  %v9408_v49 = vld [vmem:[#allocation2 + $0x42c] ss:$16 sps:$4 sm:$0xff]   ;;  %v9454_v5 = vld [vmem:[#allocation2 + $0x528] ss:$16 sps:$4 sm:$0xff]  }
 0x504   :  { %6500 = vmatpush1.bf16.msra.mxu1 %v9385_v61  ;;  %6448 = vmatprep.subr.bf16.mxu0 %v9390_v36  ;;  %v9457_v61 = vld [vmem:[#allocation2 + $0x728] ss:$16 sps:$4 sm:$0xff]   ;;  %v9462_v36 = vld [vmem:[#allocation2 + $0x50c] ss:$16 sps:$4 sm:$0xff]  }
 0x505   :  { %6501 = vmatprep.subr.bf16.mxu1 %v9393_v37  ;;  %v9465_v37 = vld [vmem:[#allocation2 + $0x70c] ss:$16 sps:$4 sm:$0xff]  }
 0x507   :  { %6449 = vmatpush1.bf16.msra.mxu0 %v9388_v10  ;;  %v9460_v10 = vld [vmem:[#allocation2 + $0x508] ss:$16 sps:$4 sm:$0xff]  }
 0x508   :  { %6502 = vmatpush1.bf16.msra.mxu1 %v9391_v15  ;;  %6450 = vmatprep.subr.bf16.mxu0 %v9396_v62  ;;  %v9463_v15 = vld [vmem:[#allocation2 + $0x708] ss:$16 sps:$4 sm:$0xff]   ;;  %v9468_v62 = vld [vmem:[#allocation2 + $0x8ec] ss:$16 sps:$4 sm:$0xff]  }
 0x509   :  { %6503 = vmatprep.subr.bf16.mxu1 %v9399_v6  ;;  %v9471_v6 = vld [vmem:[#allocation2 + $0xaec] ss:$16 sps:$4 sm:$0xff]  }
 0x50b   :  { %6451 = vmatpush1.bf16.msra.mxu0 %v9394_v4  ;;  %v9466_v4 = vld [vmem:[#allocation2 + $0x8e8] ss:$16 sps:$4 sm:$0xff]  }
 0x50c   :  { %6504 = vmatpush1.bf16.msra.mxu1 %v9397_v57  ;;  %6452 = vmatprep.subr.bf16.mxu0 %v9402_v51  ;;  %v9469_v57 = vld [vmem:[#allocation2 + $0xae8] ss:$16 sps:$4 sm:$0xff]   ;;  %v9474_v51 = vld [vmem:[#allocation2 + $0x8cc] ss:$16 sps:$4 sm:$0xff]  }
 0x50d   :  { %6505 = vmatprep.subr.bf16.mxu1 %v9405_v3  ;;  %v9477_v3 = vld [vmem:[#allocation2 + $0xacc] ss:$16 sps:$4 sm:$0xff]  }
 0x50f   :  { %6453 = vmatpush1.bf16.msra.mxu0 %v9400_v45  ;;  %v9472_v45 = vld [vmem:[#allocation2 + $0x8c8] ss:$16 sps:$4 sm:$0xff]  }
 0x510   :  { %6506 = vmatpush1.bf16.msra.mxu1 %v9403_v32  ;;  %6454 = vmatprep.subr.bf16.mxu0 %v9408_v49  ;;  %v9475_v32 = vld [vmem:[#allocation2 + $0xac8] ss:$16 sps:$4 sm:$0xff]   ;;  %v9480_v49 = vld [vmem:[#allocation2 + $0x8ac] ss:$16 sps:$4 sm:$0xff]  }
 0x511   :  { %6507 = vmatprep.subr.bf16.mxu1 %v9411_v7  ;;  %v9483_v7 = vld [vmem:[#allocation2 + $0xaac] ss:$16 sps:$4 sm:$0xff]  }
 0x513   :  { %6455 = vmatpush1.bf16.msra.mxu0 %v9406_v54  ;;  %v10395_v54 = vpop.f32.mrf.mxu0 }
 0x514   :  { %6508 = vmatpush1.bf16.msra.mxu1 %v9409_v41  ;;  %6456 = vmatprep.subr.bf16.mxu0 %v9414_v25  ;;  %v9478_v41 = vld [vmem:[#allocation2 + $0x8a8] ss:$16 sps:$4 sm:$0xff]   ;;  %v9486_v25 = vld [vmem:[#allocation2 + $0x88c] ss:$16 sps:$4 sm:$0xff]  }
 0x515   :  { %6509 = vmatprep.subr.bf16.mxu1 %v9417_v39  ;;  %v9489_v39 = vld [vmem:[#allocation2 + $0xa8c] ss:$16 sps:$4 sm:$0xff]  }
 0x517   :  { %6457 = vmatpush1.bf16.msra.mxu0 %v9412_v21  ;;  %v10400_v21 = vpop.f32.mrf.mxu0 }
 0x518   :  { %6510 = vmatpush1.bf16.msra.mxu1 %v9415_v0  ;;  %6458 = vmatprep.subr.bf16.mxu0 %v9420_v40  ;;  %v9492_v0 = vld [vmem:[#allocation2 + $0x86c] ss:$16 sps:$4 sm:$0xff]  }
 0x519   :  { %6511 = vmatprep.subr.bf16.mxu1 %v9423_v1  ;;  %v9495_v1 = vld [vmem:[#allocation2 + $0xa6c] ss:$16 sps:$4 sm:$0xff]  }
 0x51b   :  { %6459 = vmatpush2.bf16.msra.mxu0 %v9418_v56  ;;  %v9490_v56 = vld [vmem:[#allocation2 + $0x868] ss:$16 sps:$4 sm:$0xff]  }
 0x51c   :  { %6512 = vmatpush2.bf16.msra.mxu1 %v9421_v43  ;;  %6460 = vmatprep.subr.bf16.mxu0 %v9426_v38  ;;  %v9498_v43 = vld [vmem:[#allocation2 + $0x84c] ss:$16 sps:$4 sm:$0xff]  }
 0x51d   :  { %6513 = vmatprep.subr.bf16.mxu1 %v9429_v29 }
 0x51f   :  { %6461 = vmatpush2.bf16.msra.mxu0 %v9424_v16  ;;  %v9496_v16 = vld [vmem:[#allocation2 + $0x848] ss:$16 sps:$4 sm:$0xff]  }
 0x520   :  { %6514 = vmatpush2.bf16.msra.mxu1 %v9427_v23  ;;  %6462 = vmatprep.subr.bf16.mxu0 %v9432_v42  ;;  %v9504_v23 = vld [vmem:[#allocation2 + $0x82c] ss:$16 sps:$4 sm:$0xff]  }
 0x521   :  { %6515 = vmatprep.subr.bf16.mxu1 %v9435_v52 }
 0x523   :  { %6463 = vmatpush2.bf16.msra.mxu0 %v9430_v53  ;;  %v9507_v53 = vld [vmem:[#allocation2 + $0xa2c] ss:$16 sps:$4 sm:$0xff]  }
 0x524   :  { %6516 = vmatpush2.bf16.msra.mxu1 %v9433_v47  ;;  %6464 = vmatprep.subr.bf16.mxu0 %v9438_v35  ;;  %v9502_v35 = vld [vmem:[#allocation2 + $0x828] ss:$16 sps:$4 sm:$0xff]  }
 0x525   :  { %6517 = vmatprep.subr.bf16.mxu1 %v9441_v58  ;;  %v9505_v58 = vld [vmem:[#allocation2 + $0xa28] ss:$16 sps:$4 sm:$0xff]  }
 0x527   :  { %6465 = vmatpush2.bf16.msra.mxu0 %v9436_v48  ;;  %v9510_v48 = vld [vmem:[#allocation2 + $0x80c] ss:$16 sps:$4 sm:$0xff]  }
 0x528   :  { %6518 = vmatpush2.bf16.msra.mxu1 %v9439_v24  ;;  %6466 = vmatprep.subr.bf16.mxu0 %v9444_v60  ;;  %v9513_v60 = vld [vmem:[#allocation2 + $0xa0c] ss:$16 sps:$4 sm:$0xff]  }
 0x529   :  { %6519 = vmatprep.subr.bf16.mxu1 %v9447_v55 }
 0x52b   :  { %6467 = vmatpush2.bf16.msra.mxu0 %v9442_v30  ;;  %v9508_v30 = vld [vmem:[#allocation2 + $0x808] ss:$16 sps:$4 sm:$0xff]  }
 0x52c   :  { %6520 = vmatpush2.bf16.msra.mxu1 %v9445_v33  ;;  %6468 = vmatprep.subr.bf16.mxu0 %v9450_v19  ;;  %v9511_v33 = vld [vmem:[#allocation2 + $0xa08] ss:$16 sps:$4 sm:$0xff]   ;;  %v9516_v19 = vld [vmem:[#allocation2 + $0x9ec] ss:$16 sps:$4 sm:$0xff]  }
 0x52d   :  { %6521 = vmatprep.subr.bf16.mxu1 %v9453_v59 }
 0x52f   :  { %6469 = vmatpush2.bf16.msra.mxu0 %v9448_v31  ;;  %v9519_v31 = vld [vmem:[#allocation2 + $0xbec] ss:$16 sps:$4 sm:$0xff]  }
 0x530   :  { %6522 = vmatpush2.bf16.msra.mxu1 %v9451_v2  ;;  %6470 = vmatprep.subr.bf16.mxu0 %v9456_v13  ;;  %v9514_v13 = vld [vmem:[#allocation2 + $0x9e8] ss:$16 sps:$4 sm:$0xff]  }
 0x531   :  { %6523 = vmatprep.subr.bf16.mxu1 %v9459_v9  ;;  %v9517_v9 = vld [vmem:[#allocation2 + $0xbe8] ss:$16 sps:$4 sm:$0xff]  }
 0x533   :  { %6471 = vmatpush2.bf16.msra.mxu0 %v9454_v5  ;;  %v9522_v5 = vld [vmem:[#allocation2 + $0x9cc] ss:$16 sps:$4 sm:$0xff]  }
 0x534   :  { %6524 = vmatpush2.bf16.msra.mxu1 %v9457_v61  ;;  %6472 = vmatprep.subr.bf16.mxu0 %v9462_v36  ;;  %v9525_v36 = vld [vmem:[#allocation2 + $0xbcc] ss:$16 sps:$4 sm:$0xff]  }
 0x535   :  { %6525 = vmatprep.subr.bf16.mxu1 %v9465_v37 }
 0x537   :  { %6473 = vmatpush2.bf16.msra.mxu0 %v9460_v10 }
 0x538   :  { %6526 = vmatpush2.bf16.msra.mxu1 %v9463_v15  ;;  %6548 = vmatprep.subr.bf16.mxu0 %v9468_v62  ;;  %v9520_v15 = vld [vmem:[#allocation2 + $0x9c8] ss:$16 sps:$4 sm:$0xff]  }
 0x539   :  { %6601 = vmatprep.subr.bf16.mxu1 %v9471_v6  ;;  %v9523_v62 = vld [vmem:[#allocation2 + $0xbc8] ss:$16 sps:$4 sm:$0xff]   ;;  %v9528_v6 = vld [vmem:[#allocation2 + $0x9ac] ss:$16 sps:$4 sm:$0xff]  }
 0x53a   :  { %6475 = vmatmul.mubr.bf16.vlgmr.msra.gmra.mxu0 %v10275_v14  ;;  %v9481_v14 = vld [vmem:[#allocation2 + $0xaa8] ss:$16 sps:$4 sm:$0xff]  }
 0x53b   :  { %6528 = vmatmul.mubr.bf16.vlgmr.msra.gmra.mxu1 %v10277_v18  ;;  %6549 = vmatpush1.bf16.msra.mxu0 %v9466_v4  ;;  %v10397_v18 = vpop.f32.mrf.mxu1 }
 0x53c   :  { %6602 = vmatpush1.bf16.msra.mxu1 %v9469_v57  ;;  %6550 = vmatprep.subr.bf16.mxu0 %v9474_v51  ;;  %v9531_v57 = vld [vmem:[#allocation2 + $0xbac] ss:$16 sps:$4 sm:$0xff]  }
 0x53d   :  { %6603 = vmatprep.subr.bf16.mxu1 %v9477_v3  ;;  %6484 = vmatprep.mubr.bf16.mxu0 %v10245_v11  ;;  %v9484_v11 = vld [vmem:[#allocation2 + $0x888] ss:$16 sps:$4 sm:$0xff]   ;;  %v10404_v40 = vpop.f32.mrf.mxu1 }
 0x53e   :  { %6537 = vmatprep.mubr.bf16.mxu1 %v10247_v17  ;;  %v9487_v17 = vld [vmem:[#allocation2 + $0xa88] ss:$16 sps:$4 sm:$0xff]  }
 0x53f   :  { %6551 = vmatpush1.bf16.msra.mxu0 %v9472_v45  ;;  %v10409_v38 = vpop.f32.mrf.mxu1  ;;  %v9526_v3 = vld [vmem:[#allocation2 + $0x9a8] ss:$16 sps:$4 sm:$0xff]  }
 0x540   :  { %6604 = vmatpush1.bf16.msra.mxu1 %v9475_v32  ;;  %6552 = vmatprep.subr.bf16.mxu0 %v9480_v49  ;;  %v9529_v45 = vld [vmem:[#allocation2 + $0xba8] ss:$16 sps:$4 sm:$0xff]   ;;  %v9534_v32 = vld [vmem:[#allocation2 + $0x98c] ss:$16 sps:$4 sm:$0xff]  }
 0x541   :  { %6605 = vmatprep.subr.bf16.mxu1 %v9483_v7  ;;  %v10413_v42 = vpop.f32.mrf.mxu1  ;;  %v9537_v7 = vld [vmem:[#allocation2 + $0xb8c] ss:$16 sps:$4 sm:$0xff]  }
 0x542   :  { %6485 = vmatmul.mubr.bf16.gmra.mxu0 %v10253_v12  ;;  %v10407_v12 = vpop.f32.mrf.mxu0 }
 0x543   :  { %6538 = vmatmul.mubr.bf16.gmra.mxu1 %v10255_v8  ;;  %6553 = vmatpush1.bf16.msra.mxu0 %v9478_v41  ;;  %v9493_v8 = vld [vmem:[#allocation2 + $0xa68] ss:$16 sps:$4 sm:$0xff]   ;;  %v10417_v47 = vpop.f32.mrf.mxu1 }
 0x544   :  { %6580 = vmatprep.mubr.bf16.mxu0 %v10351_v22  ;;  %6606 = vmatpush1.bf16.msra.mxu1 %v9481_v14  ;;  %v9501_v22 = vld [vmem:[#allocation2 + $0xa4c] ss:$16 sps:$4 sm:$0xff]   ;;  %v10411_v29 = vpop.f32.mrf.mxu0  ;;  %v9532_v14 = vld [vmem:[#allocation2 + $0x988] ss:$16 sps:$4 sm:$0xff]  }
 0x545   :  { %6633 = vmatprep.mubr.bf16.mxu1 %v10353_v50  ;;  %6554 = vmatprep.subr.bf16.mxu0 %v9486_v25  ;;  %v9499_v50 = vld [vmem:[#allocation2 + $0xa48] ss:$16 sps:$4 sm:$0xff]   ;;  %v10421_v55 = vpop.f32.mrf.mxu1 }
 0x546   :  { %6607 = vmatprep.subr.bf16.mxu1 %v9489_v39  ;;  %v10415_v52 = vpop.f32.mrf.mxu0  ;;  %v9535_v25 = vld [vmem:[#allocation2 + $0xb88] ss:$16 sps:$4 sm:$0xff]   ;;  %v9540_v39 = vld [vmem:[#allocation2 + $0x96c] ss:$16 sps:$4 sm:$0xff]  }
 0x547   :  { %6555 = vmatpush1.bf16.msra.mxu0 %v9484_v11  ;;  %v10425_v2 = vpop.f32.mrf.mxu1 }
 0x548   :  { %6608 = vmatpush1.bf16.msra.mxu1 %v9487_v17  ;;  %6556 = vmatprep.subr.bf16.mxu0 %v9492_v0  ;;  %v10419_v24 = vpop.f32.mrf.mxu0  ;;  %v9543_v17 = vld [vmem:[#allocation2 + $0xb6c] ss:$16 sps:$4 sm:$0xff]  }
 0x549   :  { %6609 = vmatprep.subr.bf16.mxu1 %v9495_v1  ;;  %v10429_v37 = vpop.f32.mrf.mxu1  ;;  %v9538_v1 = vld [vmem:[#allocation2 + $0x968] ss:$16 sps:$4 sm:$0xff]  }
 0x54a   :  { %v10423_v59 = vpop.f32.mrf.mxu0 }
 0x54b   :  { %6557 = vmatpush1.bf16.msra.mxu0 %v9490_v56  ;;  %v10433_v4 = vpop.f32.mrf.mxu1  ;;  %v9541_v56 = vld [vmem:[#allocation2 + $0xb68] ss:$16 sps:$4 sm:$0xff]  }
 0x54c   :  { %6610 = vmatpush1.bf16.msra.mxu1 %v9493_v8  ;;  %6558 = vmatprep.subr.bf16.mxu0 %v9498_v43  ;;  %v10427_v61 = vpop.f32.mrf.mxu0  ;;  %v9546_v8 = vld [vmem:[#allocation2 + $0x94c] ss:$16 sps:$4 sm:$0xff]  }
 0x54d   :  { %6611 = vmatprep.subr.bf16.mxu1 %v9501_v22  ;;  %v10437_v49 = vpop.f32.mrf.mxu1  ;;  %v9549_v22 = vld [vmem:[#allocation2 + $0xb4c] ss:$16 sps:$4 sm:$0xff]  }
 0x54e   :  { %v10431_v10 = vpop.f32.mrf.mxu0 }
 0x54f   :  { %6559 = vmatpush1.bf16.msra.mxu0 %v9496_v16  ;;  %v10441_v11 = vpop.f32.mrf.mxu1 }
 0x550   :  { %6612 = vmatpush1.bf16.msra.mxu1 %v9499_v50  ;;  %6560 = vmatprep.subr.bf16.mxu0 %v9504_v23  ;;  %v10435_v51 = vpop.f32.mrf.mxu0  ;;  %v9544_v23 = vld [vmem:[#allocation2 + $0x948] ss:$16 sps:$4 sm:$0xff]  }
 0x551   :  { %6613 = vmatprep.subr.bf16.mxu1 %v9507_v53  ;;  %v10445_v43 = vpop.f32.mrf.mxu1  ;;  %v9547_v53 = vld [vmem:[#allocation2 + $0xb48] ss:$16 sps:$4 sm:$0xff]  }
 0x552   :  { %v10439_v41 = vpop.f32.mrf.mxu0 }
 0x553   :  { %6561 = vmatpush1.bf16.msra.mxu0 %v9502_v35  ;;  %v10449_v50 = vpop.f32.mrf.mxu1  ;;  %v9552_v35 = vld [vmem:[#allocation2 + $0x92c] ss:$16 sps:$4 sm:$0xff]  }
 0x554   :  { %6614 = vmatpush1.bf16.msra.mxu1 %v9505_v58  ;;  %6562 = vmatprep.subr.bf16.mxu0 %v9510_v48  ;;  %v10443_v0 = vpop.f32.mrf.mxu0  ;;  %v9555_v58 = vld [vmem:[#allocation2 + $0xb2c] ss:$16 sps:$4 sm:$0xff]  }
 0x555   :  { %6615 = vmatprep.subr.bf16.mxu1 %v9513_v60  ;;  %v10451_v60 = vpop.f32.mrf.mxu1 }
 0x556   :  { %v10447_v16 = vpop.f32.mrf.mxu0 }
 0x557   :  { %6563 = vmatpush1.bf16.msra.mxu0 %v9508_v30  ;;  %v9550_v30 = vld [vmem:[#allocation2 + $0x928] ss:$16 sps:$4 sm:$0xff]  }
 0x558   :  { %6616 = vmatpush1.bf16.msra.mxu1 %v9511_v33  ;;  %6564 = vmatprep.subr.bf16.mxu0 %v9516_v19  ;;  %v6170_v48 = vpop.f32.mrf.mxu0  ;;  %v9553_v33 = vld [vmem:[#allocation2 + $0xb28] ss:$16 sps:$4 sm:$0xff]   ;;  %v9558_v19 = vld [vmem:[#allocation2 + $0x90c] ss:$16 sps:$4 sm:$0xff]  }
 0x559   :  { %6617 = vmatprep.subr.bf16.mxu1 %v9519_v31  ;;  %v9561_v31 = vld [vmem:[#allocation2 + $0xb0c] ss:$16 sps:$4 sm:$0xff]  }
 0x55b   :  { %6565 = vmatpush2.bf16.msra.mxu0 %v9514_v13  ;;  %v6172_v13 = vpop.f32.mrf.mxu0 }
 0x55c   :  { %6618 = vmatpush2.bf16.msra.mxu1 %v9517_v9  ;;  %6566 = vmatprep.subr.bf16.mxu0 %v9522_v5  ;;  %v6225_v9 = vpop.f32.mrf.mxu1  ;;  %v9556_v5 = vld [vmem:[#allocation2 + $0x908] ss:$16 sps:$4 sm:$0xff]  }
 0x55d   :  { %6619 = vmatprep.subr.bf16.mxu1 %v9525_v36  ;;  %v9559_v36 = vld [vmem:[#allocation2 + $0xb08] ss:$16 sps:$4 sm:$0xff]  }
 0x55f   :  { %6567 = vmatpush2.bf16.msra.mxu0 %v9520_v15  ;;  %v10453_v15 = vld [vmem:[#allocation11] sm:$0xf] }
 0x560   :  { %6620 = vmatpush2.bf16.msra.mxu1 %v9523_v62  ;;  %6568 = vmatprep.subr.bf16.mxu0 %v9528_v6  ;;  %v6174_v62 = vpop.f32.mrf.mxu0  ;;  %v6227_v6 = vpop.f32.mrf.mxu1 }
 0x561   :  { %6621 = vmatprep.subr.bf16.mxu1 %v9531_v57  ;;  %v4081_v57 = vrot.slane %v10453_v15, %v10117_v26 }
 0x563   :  { %6569 = vmatpush2.bf16.msra.mxu0 %v9526_v3 }
 0x564   :  { %6622 = vmatpush2.bf16.msra.mxu1 %v9529_v45  ;;  %6570 = vmatprep.subr.bf16.mxu0 %v9534_v32  ;;  %v4085_v32 = vrot.slane %v10453_v15, %v10122_v34 }
 0x565   :  { %6623 = vmatprep.subr.bf16.mxu1 %v9537_v7  ;;  %v6067_v7 = vadd.f32 %v10423_v59, %v4081_v57  ;;  %v6057_v59 = vadd.f32 %v10407_v12, %v4081_v57 }
 0x567   :  { %6571 = vmatpush2.bf16.msra.mxu0 %v9532_v14 }
 0x568   :  { %6624 = vmatpush2.bf16.msra.mxu1 %v9535_v25  ;;  %6572 = vmatprep.subr.bf16.mxu0 %v9540_v39  ;;  %v6065_v39 = vadd.f32 %v10419_v24, %v4085_v32 }
 0x569   :  { %6625 = vmatprep.subr.bf16.mxu1 %v9543_v17  ;;  %v6069_v17 = vadd.f32 %v10427_v61, %v4085_v32 }
 0x56a   :  { %v6118_v24 = vadd.f32 %v10421_v55, %v6065_v39 }
 0x56b   :  { %6573 = vmatpush2.bf16.msra.mxu0 %v9538_v1  ;;  %v6063_v1 = vadd.f32 %v10415_v52, %v4081_v57  ;;  %v6122_v61 = vadd.f32 %v10429_v37, %v6069_v17  ;;  %v10527_v17 = vld [vmem:[#allocation17] sm:$0x3] }
 0x56c   :  { %6626 = vmatpush2.bf16.msra.mxu1 %v9541_v56  ;;  %6574 = vmatprep.subr.bf16.mxu0 %v9546_v8  ;;  %v6171_v12 = vadd.f32 %v6170_v48, %v6118_v24  ;;  %v6810_v24 = vld [vmem:[%s10922_s12 + $0x50] sm:$0xff] }
 0x56d   :  { %6627 = vmatprep.subr.bf16.mxu1 %v9549_v22  ;;  %v6116_v52 = vadd.f32 %v10417_v47, %v6063_v1  ;;  %v6830_v1 = vld [vmem:[%s10922_s12 + $0xf0] sm:$0xff] }
 0x56f   :  { %6575 = vmatpush2.bf16.msra.mxu0 %v9544_v23  ;;  %v6055_v23 = vadd.f32 %v10400_v21, %v4085_v32  ;;  %v6169_v21 = vadd.f32 %v10447_v16, %v6116_v52  ;;  %v6824_v52 = vld [vmem:[%s10922_s12 + $0xc0] sm:$0xff] }
 0x570   :  { %6628 = vmatpush2.bf16.msra.mxu1 %v9547_v53  ;;  %6576 = vmatprep.subr.bf16.mxu0 %v9552_v35 }
 0x571   :  { %6629 = vmatprep.subr.bf16.mxu1 %v9555_v58 }
 0x573   :  { %6577 = vmatpush2.bf16.msra.mxu0 %v9550_v30  ;;  %v6175_v30 = vadd.f32 %v6174_v62, %v6122_v61  ;;  %v6825_v61 = vld [vmem:[%s10922_s12 + $0xc8] sm:$0xff] }
 0x574   :  { %6630 = vmatpush2.bf16.msra.mxu1 %v9553_v33  ;;  %6578 = vmatprep.subr.bf16.mxu0 %v9558_v19 }
 0x575   :  { %6631 = vmatprep.subr.bf16.mxu1 %v9561_v31  ;;  %v6228_v16 = vadd.f32 %v6227_v6, %v6175_v30  ;;  %v6821_v30 = vld [vmem:[%s10922_s12 + $0xa8] sm:$0xff] }
 0x577   :  { %6579 = vmatpush2.bf16.msra.mxu0 %v9556_v5 }
 0x578   :  { %6632 = vmatpush2.bf16.msra.mxu1 %v9559_v36 }
 0x579   :  { %v10457_v3 = vpop.f32.mrf.mxu0 }
 0x57a   :  { %v10459_v45 = vpop.f32.mrf.mxu1  ;;  %6581 = vmatmul.mubr.bf16.vlgmr.msra.gmra.mxu0 %v10361_v28  ;;  %v6059_v28 = vadd.f32 %v10411_v29, %v4085_v32 }
 0x57b   :  { %6634 = vmatmul.mubr.bf16.vlgmr.msra.gmra.mxu1 %v10365_v44  ;;  %6590 = vmatprep.mubr.bf16.mxu0 %v10367_v46  ;;  %v6266_v14 = vpop.f32.mrf.mxu0  ;;  %v6120_v44 = vadd.f32 %v10425_v2, %v6067_v7  ;;  %v6110_v2 = vadd.f32 %v10409_v38, %v6057_v59  ;;  %v6224_v38 = vadd.f32 %v10451_v60, %v6171_v12  ;;  %v6828_v59 = vld [vmem:[%s10922_s12 + $0xe0] sm:$0xff]  ;;  %v6806_v12 = vld [vmem:[%s10922_s12 + $0x30] sm:$0xff] }
 0x57c   :  { %v10467_v25 = vpop.f32.mrf.mxu1  ;;  %6643 = vmatprep.mubr.bf16.mxu1 %v10369_v63  ;;  %v6053_v63 = vadd.f32 %v10395_v54, %v4081_v57  ;;  %v6112_v29 = vadd.f32 %v10413_v42, %v6059_v28  ;;  %v6108_v54 = vadd.f32 %v10404_v40, %v6055_v23  ;;  %v6813_v28 = vld [vmem:[%s10922_s12 + $0x68] sm:$0xff]  ;;  %v6826_v23 = vld [vmem:[%s10922_s12 + $0xd0] sm:$0xff] }
 0x57d   :  { %v6268_v56 = vpop.f32.mrf.mxu0  ;;  %v6173_v53 = vadd.f32 %v6172_v13, %v6120_v44  ;;  %v6163_v42 = vadd.f32 %v10439_v41, %v6110_v2  ;;  %v6222_v13 = vadd.f32 %v10449_v50, %v6169_v21  ;;  %v6812_v44 = vld [vmem:[%s10922_s12 + $0x60] sm:$0xff]  ;;  %v6805_v2 = vld [vmem:[%s10922_s12 + $0x28] sm:$0xff] }
 0x57e   :  { %v6321_v8 = vpop.f32.mrf.mxu1  ;;  %v6165_v47 = vadd.f32 %v10443_v0, %v6112_v29  ;;  %v6106_v33 = vadd.f32 %v10397_v18, %v6053_v63  ;;  %v6809_v63 = vld [vmem:[%s10922_s12 + $0x48] sm:$0xff]  ;;  %v6822_v29 = vld [vmem:[%s10922_s12 + $0xb0] sm:$0xff]  ;;  %v6820_v21 = vld [vmem:[%s10922_s12 + $0xa0] sm:$0xff] }
 0x57f   :  { %v6270_v46 = vpop.f32.mrf.mxu0  ;;  %v6226_v48 = vadd.f32 %v6225_v9, %v6173_v53  ;;  %v6216_v41 = vadd.f32 %v10441_v11, %v6163_v42  ;;  %v6808_v53 = vld [vmem:[%s10922_s12 + $0x40] sm:$0xff] }
 0x580   :  { %v6323_v22 = vpop.f32.mrf.mxu1  ;;  %v6218_v0 = vadd.f32 %v10445_v43, %v6165_v47  ;;  %v6818_v47 = vld [vmem:[%s10922_s12 + $0x90] sm:$0xff] }
 0x581   :  { %v6274_v35 = vpop.f32.mrf.mxu0 }
 0x582   :  { %v6327_v58 = vpop.f32.mrf.mxu1  ;;  %6591 = vmatmul.mubr.bf16.gmra.mxu0 %v10375_v20  ;;  %v6161_v20 = vadd.f32 %v10435_v51, %v6108_v54  ;;  %v6275_v9 = vadd.f32 %v6274_v35, %v6222_v13  ;;  %v6271_v51 = vadd.f32 %v6270_v46, %v6218_v0  ;;  %v6827_v46 = vld [vmem:[%s10922_s12 + $0xd8] sm:$0xff] }
 0x583   :  { %6644 = vmatmul.mubr.bf16.gmra.mxu1 %v10377_v27  ;;  %v6276_v55 = vpop.f32.mrf.mxu0  ;;  %v6159_v27 = vadd.f32 %v10431_v10, %v6106_v33  ;;  %v6269_v10 = vadd.f32 %v6268_v56, %v6216_v41  ;;  %v6814_v56 = vld [vmem:[%s10922_s12 + $0x70] sm:$0xff]  ;;  %v6823_v35 = vld [vmem:[%s10922_s12 + $0xb8] sm:$0xff] }
 0x584   :  { %v6329_v37 = vpop.f32.mrf.mxu1  ;;  %v6277_v18 = vadd.f32 %v6276_v55, %v6224_v38  ;;  %v6214_v57 = vadd.f32 %v10437_v49, %v6161_v20  ;;  %v10506_v39 = vadd.f32 %v6327_v58, %v6275_v9  ;;  %v10509_v49 = vadd.f32 %v6323_v22, %v6271_v51  ;;  %v6811_v22 = vld [vmem:[%s10922_s12 + $0x58] sm:$0xff]  ;;  %v6804_v55 = vld [vmem:[%s10922_s12 + $0x20] sm:$0xff]  ;;  %v6802_v33 = vld [vmem:[%s10922_s12 + $0x10] sm:$0xff] }
 0x585   :  { %v6278_v19 = vpop.f32.mrf.mxu0  ;;  %v6212_v60 = vadd.f32 %v10433_v4, %v6159_v27  ;;  %v10512_v11 = vadd.f32 %v6321_v8, %v6269_v10  ;;  %v6829_v8 = vld [vmem:[%s10922_s12 + $0xe8] sm:$0xff]  ;;  %v6807_v58 = vld [vmem:[%s10922_s12 + $0x38] sm:$0xff] }
 0x586   :  { %v6331_v31 = vpop.f32.mrf.mxu1  ;;  %v6279_v5 = vadd.f32 %v6278_v19, %v6226_v48  ;;  %v6267_v50 = vadd.f32 %v6266_v14, %v6214_v57  ;;  %v10502_v7 = vadd.f32 %v6329_v37, %v6277_v18  ;;  %10957 = vst [vmem:[#allocation37_spill] sm:$0xff] %v10506_v39  ;;  %10958 = vst [vmem:[#allocation38_spill] sm:$0xff] %v10509_v49  ;;  %v6819_v37 = vld [vmem:[%s10922_s12 + $0x98] sm:$0xff] }
 0x587   :  { %v6280_v40 = vpop.f32.mrf.mxu0  ;;  %v6265_v43 = vadd.f32 %v10457_v3, %v6212_v60  ;;  %10959 = vst [vmem:[#allocation39_spill] sm:$0xff] %v10512_v11  ;;  %v10932_v3 = vmov 0.0   ;;  %v6803_v54 = vld [vmem:[%s10922_s12 + $0x18] sm:$0xff] }
 0x588   :  { %v6333_v36 = vpop.f32.mrf.mxu1  ;;  %v6281_v62 = vadd.f32 %v6280_v40, %v6228_v16  ;;  %v10500_v6 = vadd.f32 %v6331_v31, %v6279_v5  ;;  %10956 = vst [vmem:[#allocation36_spill] sm:$0xff] %v10502_v7  ;;  %v10516_v4 = vadd.f32 %v10467_v25, %v6267_v50  ;;  %6722 = vmatprep.mubr.f32.mxu0 %v10932_v3  ;;  %v6815_v25 = vld [vmem:[%s10922_s12 + $0x78] sm:$0xff] }
 0x589   :  { %v10520_v14 = vadd.f32 %v10459_v45, %v6265_v43  ;;  %6793 = vmatprep.mubr.f32.mxu1 %v10932_v3  ;;  %v6831_v45 = vld [vmem:[%s10922_s12 + $0xf8] sm:$0xff] }
 0x58a   :  { %v10497_v32 = vadd.f32 %v6333_v36, %v6281_v62  ;;  %10955 = vst [vmem:[#allocation35_spill] sm:$0xff] %v10500_v6  ;;  %10960 = vst [vmem:[#allocation40_spill] sm:$0xff] %v10516_v4 }
 0x58b   :  { %10961 = vst [vmem:[#allocation41_spill] sm:$0xff] %v10520_v14 }
 0x58c   :  { %10954 = vst [vmem:[#allocation34_spill] sm:$0xff] %v10497_v32  ;;  %6682 = vmatprep.subr.mxu0 %v10497_v32 }
 0x58d   :  { %6683 = vmatpush1.msra.mxu0 %v10500_v6 }
 0x58e   :  { %6684 = vmatprep.subr.mxu0 %v10502_v7 }
 0x58f   :  { %6685 = vmatpush1.msra.mxu0 %v10506_v39 }
 0x590   :  { %6686 = vmatprep.subr.mxu0 %v10509_v49 }
 0x591   :  { %6687 = vmatpush1.msra.mxu0 %v10512_v11 }
 0x592   :  { %6688 = vmatprep.subr.mxu0 %v10516_v4 }
 0x593   :  { %6689 = vmatpush1.msra.mxu0 %v10520_v14 }
 0x594   :  { %8282 = vmatmul.mubr.msk.f32.vlgmr.msra.gmra.mxu0 %vm608_vm0, %v10527_v17  ;;  %8292 = vmatprep.subr.mxu0 %v6831_v45 }
 0x595   :  { %8293 = vmatpush3.msra.mxu0 %v6815_v25 }
 0x596   :  { %8294 = vmatprep.subr.mxu0 %v6830_v1 }
 0x597   :  { %8295 = vmatpush3.msra.mxu0 %v6814_v56 }
 0x598   :  { %8296 = vmatprep.subr.mxu0 %v6829_v8 }
 0x599   :  { %8297 = vmatpush3.msra.mxu0 %v6813_v28 }
 0x59a   :  { %8298 = vmatprep.subr.mxu0 %v6828_v59 }
 0x59b   :  { %8299 = vmatpush3.msra.mxu0 %v6812_v44 }
 0x59c   :  { %8300 = vmatprep.subr.mxu0 %v6827_v46 }
 0x59d   :  { %8301 = vmatpush3.msra.mxu0 %v6811_v22  ;;  %v10962_v22 = vld [vmem:[#allocation32_spill] sm:$0xff] }
 0x59e   :  { %8302 = vmatprep.subr.mxu0 %v6826_v23  ;;  %v4089_v23 = vrot.slane %v10453_v15, %v10962_v22 }
 0x59f   :  { %8303 = vmatpush3.msra.mxu0 %v6810_v24 }
 0x5a0   :  { %8304 = vmatprep.subr.mxu0 %v6825_v61  ;;  %v10963_v61 = vld [vmem:[#allocation33_spill] sm:$0xff] }
 0x5a1   :  { %8305 = vmatpush3.msra.mxu0 %v6809_v63  ;;  %v4093_v63 = vrot.slane %v10453_v15, %v10963_v61 }
 0x5a2   :  { %8306 = vmatprep.subr.mxu0 %v6824_v52 }
 0x5a3   :  { %8307 = vmatpush3.msra.mxu0 %v6808_v53 }
 0x5a4   :  { %8308 = vmatprep.subr.mxu0 %v6823_v35 }
 0x5a5   :  { %8309 = vmatpush3.msra.mxu0 %v6807_v58 }
 0x5a6   :  { %8310 = vmatprep.subr.mxu0 %v6822_v29 }
 0x5a7   :  { %8311 = vmatpush3.msra.mxu0 %v6806_v12 }
 0x5a8   :  { %8312 = vmatprep.subr.mxu0 %v6821_v30 }
 0x5a9   :  { %8313 = vmatpush3.msra.mxu0 %v6805_v2 }
 0x5aa   :  { %8314 = vmatprep.subr.mxu0 %v6820_v21 }
 0x5ab   :  { %8315 = vmatpush3.msra.mxu0 %v6804_v55 }
 0x5ac   :  { %8316 = vmatprep.subr.mxu0 %v6819_v37 }
 0x5ad   :  { %8317 = vmatpush3.msra.mxu0 %v6803_v54 }
 0x5ae   :  { %8318 = vmatprep.subr.mxu0 %v6818_v47 }
 0x5af   :  { %8319 = vmatpush3.msra.mxu0 %v6802_v33 }
 0x5b9   :  { %v6370_v42 = vpop.f32.mrf.mxu0 }
 0x5ba   :  { %v10615_v48 = vpop.f32.mrf.mxu1  ;;  %v6371_v7 = vadd.f32 %v6370_v42, %v4089_v23 }
 0x5bb   :  { %v6372_v19 = vpop.f32.mrf.mxu0 }
 0x5bc   :  { %v6425_v31 = vpop.f32.mrf.mxu1  ;;  %v6373_v33 = vadd.f32 %v6372_v19, %v4093_v63 }
 0x5bd   :  { %v6374_v20 = vpop.f32.mrf.mxu0 }
 0x5be   :  { %v6427_v38 = vpop.f32.mrf.mxu1  ;;  %v6375_v37 = vadd.f32 %v6374_v20, %v4089_v23 }
 0x5bf   :  { %v6376_v16 = vpop.f32.mrf.mxu0 }
 0x5c0   :  { %v6429_v27 = vpop.f32.mrf.mxu1  ;;  %v6377_v21 = vadd.f32 %v6376_v16, %v4093_v63  ;;  %v6428_v4 = vadd.f32 %v6427_v38, %v6375_v37  ;;  %v6426_v16 = vadd.f32 %v6425_v31, %v6373_v33  ;;  %v6854_v37 = vld [vmem:[%s10922_s12 + $0x1b0] sm:$0xff]  ;;  %v6837_v33 = vld [vmem:[%s10922_s12 + $0x128] sm:$0xff] }
 0x5c1   :  { %v6380_v13 = vpop.f32.mrf.mxu0 }
 0x5c2   :  { %v6433_v5 = vpop.f32.mrf.mxu1  ;;  %v6381_v30 = vadd.f32 %v6380_v13, %v4089_v23 }
 0x5c3   :  { %v6382_v40 = vpop.f32.mrf.mxu0 }
 0x5c4   :  { %v6435_v36 = vpop.f32.mrf.mxu1  ;;  %v6383_v58 = vadd.f32 %v6382_v40, %v4093_v63  ;;  %v6434_v15 = vadd.f32 %v6433_v5, %v6381_v30  ;;  %v6856_v30 = vld [vmem:[%s10922_s12 + $0x1c0] sm:$0xff] }
 0x5c5   :  { %v6384_v0 = vpop.f32.mrf.mxu0 }
 0x5c6   :  { %v6437_v18 = vpop.f32.mrf.mxu1  ;;  %v6385_v53 = vadd.f32 %v6384_v0, %v4089_v23  ;;  %v6436_v3 = vadd.f32 %v6435_v36, %v6383_v58  ;;  %v6430_v0 = vadd.f32 %v6429_v27, %v6377_v21  ;;  %v6842_v58 = vld [vmem:[%s10922_s12 + $0x150] sm:$0xff]  ;;  %v6855_v21 = vld [vmem:[%s10922_s12 + $0x1b8] sm:$0xff] }
 0x5c7   :  { %v6386_v62 = vpop.f32.mrf.mxu0 }
 0x5c8   :  { %v6439_v9 = vpop.f32.mrf.mxu1  ;;  %v6387_v29 = vadd.f32 %v6386_v62, %v4093_v63  ;;  %v6438_v54 = vadd.f32 %v6437_v18, %v6385_v53  ;;  %v6424_v18 = vadd.f32 %v10615_v48, %v6371_v7 }
 0x5ca   :  { %v6440_v32 = vadd.f32 %v6439_v9, %v6387_v29  ;;  %v6857_v29 = vld [vmem:[%s10922_s12 + $0x1c8] sm:$0xff] }
 0x5fa   :  { %v6476_v41 = vpop.f32.mrf.mxu0 }
 0x5fb   :  { %v10617_v57 = vpop.f32.mrf.mxu1  ;;  %v6477_v23 = vadd.f32 %v6476_v41, %v6424_v18 }
 0x5fc   :  { %v6478_v51 = vpop.f32.mrf.mxu0 }
 0x5fd   :  { %v10619_v60 = vpop.f32.mrf.mxu1  ;;  %v6479_v63 = vadd.f32 %v6478_v51, %v6426_v16  ;;  %v6834_v16 = vld [vmem:[%s10922_s12 + $0x110] sm:$0xff] }
 0x5fe   :  { %v6480_v10 = vpop.f32.mrf.mxu0 }
 0x5ff   :  { %v6533_v50 = vpop.f32.mrf.mxu1  ;;  %v6481_v19 = vadd.f32 %v6480_v10, %v6428_v4  ;;  %v6532_v53 = vadd.f32 %v10619_v60, %v6479_v63  ;;  %v6800_v63 = vld [vmem:[%s10922_s12] sm:$0xff] }
 0x600   :  { %v6482_v43 = vpop.f32.mrf.mxu0 }
 0x601   :  { %v6535_v45 = vpop.f32.mrf.mxu1  ;;  %v6483_v61 = vadd.f32 %v6482_v43, %v6430_v0  ;;  %v6836_v0 = vld [vmem:[%s10922_s12 + $0x120] sm:$0xff] }
 0x602   :  { %v6486_v25 = vpop.f32.mrf.mxu0 }
 0x603   :  { %v6539_v1 = vpop.f32.mrf.mxu1  ;;  %v6487_v13 = vadd.f32 %v6486_v25, %v6434_v15  ;;  %v6852_v15 = vld [vmem:[%s10922_s12 + $0x1a0] sm:$0xff] }
 0x604   :  { %v6488_v56 = vpop.f32.mrf.mxu0 }
 0x605   :  { %v6541_v8 = vpop.f32.mrf.mxu1  ;;  %v6489_v11 = vadd.f32 %v6488_v56, %v6436_v3  ;;  %v6540_v27 = vadd.f32 %v6539_v1, %v6487_v13  ;;  %v6536_v56 = vadd.f32 %v6535_v45, %v6483_v61  ;;  %v6847_v45 = vld [vmem:[%s10922_s12 + $0x178] sm:$0xff]  ;;  %v6862_v1 = vld [vmem:[%s10922_s12 + $0x1f0] sm:$0xff] }
 0x606   :  { %v6490_v28 = vpop.f32.mrf.mxu0  ;;  %v6859_v61 = vld [vmem:[%s10922_s12 + $0x1d8] sm:$0xff]  ;;  %v6850_v13 = vld [vmem:[%s10922_s12 + $0x190] sm:$0xff] }
 0x607   :  { %v6543_v59 = vpop.f32.mrf.mxu1  ;;  %v6491_v39 = vadd.f32 %v6490_v28, %v6438_v54  ;;  %v6542_v42 = vadd.f32 %v6541_v8, %v6489_v11  ;;  %v6846_v8 = vld [vmem:[%s10922_s12 + $0x170] sm:$0xff] }
 0x608   :  { %v6492_v44 = vpop.f32.mrf.mxu0  ;;  %v6838_v54 = vld [vmem:[%s10922_s12 + $0x130] sm:$0xff] }
 0x609   :  { %v6545_v46 = vpop.f32.mrf.mxu1  ;;  %v6493_v40 = vadd.f32 %v6492_v44, %v6440_v32  ;;  %v6544_v36 = vadd.f32 %v6543_v59, %v6491_v39  ;;  %v6534_v44 = vadd.f32 %v6533_v50, %v6481_v19  ;;  %v6530_v39 = vadd.f32 %v10617_v57, %v6477_v23  ;;  %v6861_v59 = vld [vmem:[%s10922_s12 + $0x1e8] sm:$0xff]  ;;  %v6832_v23 = vld [vmem:[%s10922_s12 + $0x100] sm:$0xff] }
 0x60a   :  { %v6801_v19 = vld [vmem:[%s10922_s12 + $0x8] sm:$0xff] }
 0x60b   :  { %v6546_v5 = vadd.f32 %v6545_v46, %v6493_v40  ;;  %v6845_v46 = vld [vmem:[%s10922_s12 + $0x168] sm:$0xff]  ;;  %v6851_v40 = vld [vmem:[%s10922_s12 + $0x198] sm:$0xff] }
 0x63a   :  { %v6582_v24 = vpop.f32.mrf.mxu0 }
 0x63b   :  { %v10625_v52 = vpop.f32.mrf.mxu1 }
 0x63c   :  { %v6584_v35 = vpop.f32.mrf.mxu0 }
 0x63d   :  { %v6637_v12 = vpop.f32.mrf.mxu1  ;;  %v6585_v41 = vadd.f32 %v6584_v35, %v6532_v53  ;;  %v6858_v35 = vld [vmem:[%s10922_s12 + $0x1d0] sm:$0xff] }
 0x63e   :  { %v6586_v2 = vpop.f32.mrf.mxu0 }
 0x63f   :  { %v6639_v55 = vpop.f32.mrf.mxu1  ;;  %v6587_v11 = vadd.f32 %v6586_v2, %v6534_v44  ;;  %v10646_v57 = vadd.f32 %v6637_v12, %v6585_v41  ;;  %v6841_v12 = vld [vmem:[%s10922_s12 + $0x148] sm:$0xff]  ;;  %v6840_v2 = vld [vmem:[%s10922_s12 + $0x140] sm:$0xff] }
 0x640   :  { %v6588_v47 = vpop.f32.mrf.mxu0  ;;  %v7004_v44 = vld [vmem:[%s10917_s7] sm:$0xff] }
 0x641   :  { %v6641_v6 = vpop.f32.mrf.mxu1  ;;  %v6589_v7 = vadd.f32 %v6588_v47, %v6536_v56  ;;  %v10643_v60 = vadd.f32 %v6639_v55, %v6587_v11  ;;  %v6839_v55 = vld [vmem:[%s10922_s12 + $0x138] sm:$0xff]  ;;  %v6853_v47 = vld [vmem:[%s10922_s12 + $0x1a8] sm:$0xff] }
 0x642   :  { %v6592_v49 = vpop.f32.mrf.mxu0  ;;  %v7007_v56 = vld [vmem:[%s10917_s7 + $0x18] sm:$0xff] }
 0x643   :  { %v6645_v62 = vpop.f32.mrf.mxu1  ;;  %v6593_v31 = vadd.f32 %v6592_v49, %v6540_v27  ;;  %v10640_v49 = vadd.f32 %v6641_v6, %v6589_v7  ;;  %v6863_v6 = vld [vmem:[%s10922_s12 + $0x1f8] sm:$0xff]  ;;  %v10964_v27 = vmov 0.0  }
 0x644   :  { %v6594_v14 = vpop.f32.mrf.mxu0 }
 0x645   :  { %v6647_v20 = vpop.f32.mrf.mxu1  ;;  %v6595_v38 = vadd.f32 %v6594_v14, %v6542_v42  ;;  %v6583_v14 = vadd.f32 %v6582_v24, %v6530_v39  ;;  %v10637_v10 = vadd.f32 %v6645_v62, %v6593_v31  ;;  %v6844_v24 = vld [vmem:[%s10922_s12 + $0x160] sm:$0xff]  ;;  %v6835_v62 = vld [vmem:[%s10922_s12 + $0x118] sm:$0xff]  ;;  %v6849_v42 = vld [vmem:[%s10922_s12 + $0x188] sm:$0xff] }
 0x646   :  { %v6596_v9 = vpop.f32.mrf.mxu0 }
 0x647   :  { %v6649_v28 = vpop.f32.mrf.mxu1  ;;  %v6597_v3 = vadd.f32 %v6596_v9, %v6544_v36  ;;  %v10634_v51 = vadd.f32 %v6647_v20, %v6595_v38  ;;  %v10650_v50 = vadd.f32 %v10625_v52, %v6583_v14  ;;  %v6843_v52 = vld [vmem:[%s10922_s12 + $0x158] sm:$0xff]  ;;  %v6817_v20 = vld [vmem:[%s10922_s12 + $0x88] sm:$0xff]  ;;  %v6816_v36 = vld [vmem:[%s10922_s12 + $0x80] sm:$0xff] }
 0x648   :  { %v6598_v32 = vpop.f32.mrf.mxu0  ;;  %8320 = vmatprep.subr.mxu0 %v6817_v20  ;;  %v7006_v38 = vld [vmem:[%s10917_s7 + $0x10] sm:$0xff] }
 0x649   :  { %v6599_v25 = vadd.f32 %v6598_v32, %v6546_v5  ;;  %v6651_v43 = vpop.f32.mrf.mxu1  ;;  %v10632_v48 = vadd.f32 %v6649_v28, %v6597_v3  ;;  %8321 = vmatpush3.msra.mxu0 %v6801_v19  ;;  %v6833_v5 = vld [vmem:[%s10922_s12 + $0x108] sm:$0xff]  ;;  %v6848_v28 = vld [vmem:[%s10922_s12 + $0x180] sm:$0xff] }
 0x64a   :  { %8322 = vmatprep.subr.mxu0 %v6816_v36  ;;  %v7089_v14 = vld [vmem:[#allocation14] sm:$0xff] }
 0x64b   :  { %v10629_v4 = vadd.f32 %v6651_v43, %v6599_v25  ;;  %8323 = vmatpush3.msra.mxu0 %v6800_v63  ;;  %v7005_v25 = vld [vmem:[%s10917_s7 + $0x8] sm:$0xff] }
 0x64c   :  { %8369 = vmatprep.subr.mxu0 %v10964_v27 }
 0x64d   :  { %6753 = vmatprep.subr.mxu1 %v10629_v4 }
 0x64e   :  { %6754 = vmatpush1.msra.mxu1 %v10632_v48 }
 0x64f   :  { %6755 = vmatprep.subr.mxu1 %v10634_v51 }
 0x650   :  { %6756 = vmatpush1.msra.mxu1 %v10637_v10 }
 0x651   :  { %6757 = vmatprep.subr.mxu1 %v10640_v49 }
 0x652   :  { %6758 = vmatpush1.msra.mxu1 %v10643_v60 }
 0x653   :  { %6759 = vmatprep.subr.mxu1 %v10646_v57 }
 0x654   :  { %6760 = vmatpush1.msra.mxu1 %v10650_v50  ;;  %v6724_v18 = vpop.f32.mrf.mxu0 }
 0x655   :  { %8283 = vmatmul.mubr.msk.f32.vlgmr.msra.gmra.mxu1 %vm608_vm0, %v10527_v17  ;;  %8327 = vmatprep.subr.mxu1 %v6863_v6  ;;  %v6860_v17 = vld [vmem:[%s10922_s12 + $0x1e0] sm:$0xff]  ;;  %v8284_v6 = vld [vmem:[#allocation12] ss:$0 sm:$0xff] }
 0x656   :  { %8328 = vmatpush3.msra.mxu1 %v6847_v45  ;;  %v6726_v9 = vpop.f32.mrf.mxu0 }
 0x657   :  { %8329 = vmatprep.subr.mxu1 %v6862_v1  ;;  %6928 = vmatprep.mubr.f32.mxu0 %v6726_v9 }
 0x658   :  { %8330 = vmatpush3.msra.mxu1 %v6846_v8  ;;  %6929 = vmatmul.mubr.f32.vlgmr.msra.gmra.mxu0 %v6724_v18  ;;  %v9820_v18 = vmov 1966171168  }
 0x659   :  { %8331 = vmatprep.subr.mxu1 %v6861_v59  ;;  %8370 = vmatpush3.msra.mxu0 %v7007_v56  ;;  %v7345_v19 = vunpack.c.l.s4 %v9820_v18  ;;  %v7442_v18 = vld [vmem:[%s10910_s0 + $0x60] sm:$0xff] }
 0x65a   :  { %8332 = vmatpush3.msra.mxu1 %v6845_v46  ;;  %8371 = vmatprep.subr.mxu0 %v10964_v27  ;;  %v7190_v46 = vld [vmem:[#allocation18 + $0x68] sm:$0xff] }
 0x65b   :  { %8333 = vmatprep.subr.mxu1 %v6860_v17  ;;  %8372 = vmatpush3.msra.mxu0 %v7006_v38  ;;  %v7192_v17 = vld [vmem:[#allocation18 + $0x78] sm:$0xff]  ;;  %v7346_v36 = vunpack.c.0.s8 %v7345_v19 }
 0x65c   :  { %8334 = vmatpush3.msra.mxu1 %v6844_v24  ;;  %8373 = vmatprep.subr.mxu0 %v10964_v27  ;;  %v7189_v24 = vld [vmem:[#allocation18 + $0x60] sm:$0xff]  ;;  %v7443_v19 = vld [vmem:[%s10910_s0 + $0x68] sm:$0xff] }
 0x65d   :  { %8335 = vmatprep.subr.mxu1 %v6859_v61  ;;  %8374 = vmatpush3.msra.mxu0 %v7005_v25  ;;  %v7191_v61 = vld [vmem:[#allocation18 + $0x70] sm:$0xff] }
 0x65e   :  { %8336 = vmatpush3.msra.mxu1 %v6843_v52  ;;  %8377 = vmatprep.mubr.msk.f32.mxu0 %vm9819_vm1, %v10964_v27  ;;  %v7186_v52 = vld [vmem:[#allocation18 + $0x48] sm:$0xff] }
 0x65f   :  { %8337 = vmatprep.subr.mxu1 %v6858_v35  ;;  %8375 = vmatprep.subr.mxu0 %v10964_v27  ;;  %v7188_v35 = vld [vmem:[#allocation18 + $0x58] sm:$0xff] }
 0x660   :  { %8338 = vmatpush3.msra.mxu1 %v6842_v58  ;;  %8376 = vmatpush3.msra.mxu0 %v7004_v44  ;;  %v7185_v58 = vld [vmem:[#allocation18 + $0x40] sm:$0xff] }
 0x661   :  { %8339 = vmatprep.subr.mxu1 %v6857_v29  ;;  %7291 = vmatprep.subr.mxu0 %v7192_v17  ;;  %v7187_v29 = vld [vmem:[#allocation18 + $0x50] sm:$0xff] }
 0x662   :  { %8340 = vmatpush3.msra.mxu1 %v6841_v12  ;;  %v7182_v12 = vld [vmem:[#allocation18 + $0x28] sm:$0xff] }
 0x663   :  { %8341 = vmatprep.subr.mxu1 %v6856_v30  ;;  %v7184_v30 = vld [vmem:[#allocation18 + $0x38] sm:$0xff] }
 0x664   :  { %8342 = vmatpush3.msra.mxu1 %v6840_v2  ;;  %v7181_v2 = vld [vmem:[#allocation18 + $0x20] sm:$0xff] }
 0x665   :  { %8343 = vmatprep.subr.mxu1 %v6855_v21  ;;  %v7183_v21 = vld [vmem:[#allocation18 + $0x30] sm:$0xff] }
 0x666   :  { %8344 = vmatpush3.msra.mxu1 %v6839_v55  ;;  %v7178_v55 = vld [vmem:[#allocation18 + $0x8] sm:$0xff] }
 0x667   :  { %8345 = vmatprep.subr.mxu1 %v6854_v37  ;;  %v7180_v37 = vld [vmem:[#allocation18 + $0x18] sm:$0xff] }
 0x668   :  { %8346 = vmatpush3.msra.mxu1 %v6838_v54  ;;  %v7177_v54 = vld [vmem:[#allocation18] sm:$0xff] }
 0x669   :  { %8347 = vmatprep.subr.mxu1 %v6853_v47  ;;  %v7179_v47 = vld [vmem:[#allocation18 + $0x10] sm:$0xff] }
 0x66a   :  { %8348 = vmatpush3.msra.mxu1 %v6837_v33  ;;  %v8286_v33 = vld [vmem:[#allocation15] ss:$0 sm:$0xff] }
 0x66b   :  { %8349 = vmatprep.subr.mxu1 %v6852_v15 }
 0x66c   :  { %8350 = vmatpush3.msra.mxu1 %v6836_v0 }
 0x66d   :  { %8351 = vmatprep.subr.mxu1 %v6851_v40 }
 0x66e   :  { %8352 = vmatpush3.msra.mxu1 %v6835_v62 }
 0x66f   :  { %8353 = vmatprep.subr.mxu1 %v6850_v13 }
 0x670   :  { %8354 = vmatpush3.msra.mxu1 %v6834_v16 }
 0x671   :  { %8355 = vmatprep.subr.mxu1 %v6849_v42  ;;  %v10965_v42 = vld [vmem:[#allocation31_spill] sm:$0xff] }
 0x672   :  { %8356 = vmatpush3.msra.mxu1 %v6833_v5  ;;  %v7349_v5 = vsub.s32 %v7346_v36, %v10965_v42 }
 0x673   :  { %8357 = vmatprep.subr.mxu1 %v6848_v28 }
 0x674   :  { %8358 = vmatpush3.msra.mxu1 %v6832_v23 }
 0x675   :  { %8380 = vmatprep.subr.mxu1 %v10964_v27 }
 0x715   :  { %v6795_v3 = vpop.f32.mrf.mxu1 }
 0x717   :  { %v6797_v32 = vpop.f32.mrf.mxu1 }
 0x718   :  { %6998 = vmatprep.mubr.f32.mxu1 %v6797_v32  ;;  %v8324_v31 = vpop.f32.mrf.mxu0 }
 0x719   :  { %6999 = vmatmul.mubr.f32.vlgmr.msra.gmra.mxu1 %v6795_v3 }
 0x71a   :  { %8382 = vmatprep.mubr.msk.f32.mxu1 %vm9819_vm1, %v10964_v27  ;;  %v8325_v53 = vpop.f32.mrf.mxu0  ;;  %8381 = vmatpush3.msra.mxu1 %v7089_v14 }
 0x71b   :  { %v8326_v39 = vadd.f32 %v8325_v53, %v8324_v31  ;;  %7220 = vmatprep.subr.mxu1 %v7190_v46  ;;  %v10968_v46 = vld [vmem:[#allocation40_spill] sm:$0xff] }
 0x7d9   :  { %v8359_v43 = vpop.f32.mrf.mxu1 }
 0x7db   :  { %v8360_v7 = vpop.f32.mrf.mxu1 }
 0x7dc   :  { %v8361_v11 = vadd.f32 %v8360_v7, %v8359_v43 }
 0x7de   :  { %v7001_v41 = vadd.f32 %v8361_v11, %v8326_v39  ;;  %v10966_v39 = vld [vmem:[#allocation33_spill] sm:$0xff] }
 0x7e0   :  { %8378 = vmatmul.mubr.msk.f32.vlgmr.msra.gmra.mxu0 %vm608_vm0, %v7001_v41 }
 0x7e1   :  { %7331 = vmatprep.mubr.f32.mxu0 %v10964_v27  ;;  %7292 = vmatpush1.msra.mxu0 %v7191_v61 }
 0x7e2   :  { %7293 = vmatprep.subr.mxu0 %v7188_v35 }
 0x7e3   :  { %7294 = vmatpush1.msra.mxu0 %v7187_v29 }
 0x7e4   :  { %7295 = vmatprep.subr.mxu0 %v7184_v30  ;;  %v7435_v30 = vld [vmem:[%s10910_s0 + $0x28] sm:$0xff] }
 0x7e5   :  { %7296 = vmatpush1.msra.mxu0 %v7183_v21  ;;  %v10971_v21 = vld [vmem:[#allocation37_spill] sm:$0xff] }
 0x7e6   :  { %7297 = vmatprep.subr.mxu0 %v7180_v37  ;;  %v10972_v37 = vld [vmem:[#allocation36_spill] sm:$0xff] }
 0x7e7   :  { %7298 = vmatpush1.msra.mxu0 %v7179_v47  ;;  %v7437_v47 = vld [vmem:[%s10910_s0 + $0x38] sm:$0xff] }
 0x8a0   :  { %v7084_v45 = vpop.f32.mrf.mxu0 }
 0x8a1   :  { %v7085_v1 = vadd.f32 %v8284_v6, %v7084_v45 }
 0x8a2   :  { %v8379_v8 = vpop.f32.mrf.mxu0 }
 0x8a3   :  { %v7088_v59 = vmax.f32 %v7085_v1, 0.0  ;;  %v7430_v1 = vld [vmem:[%s10910_s0] sm:$0xff] }
 0x8a4   :  { %v10967_v8 = vld [vmem:[#allocation41_spill] sm:$0xff] }
 0x8a5   :  { %8383 = vmatmul.mubr.msk.f32.vlgmr.msra.gmra.mxu1 %vm7097_vm2, %v7088_v59 }
 0x8a6   :  { %7260 = vmatprep.mubr.f32.mxu1 %v10964_v27  ;;  %7221 = vmatpush1.msra.mxu1 %v7189_v24 }
 0x8a7   :  { %7222 = vmatprep.subr.mxu1 %v7186_v52  ;;  %v10969_v52 = vld [vmem:[#allocation39_spill] sm:$0xff] }
 0x8a8   :  { %7223 = vmatpush1.msra.mxu1 %v7185_v58  ;;  %v10970_v58 = vld [vmem:[#allocation38_spill] sm:$0xff] }
 0x8a9   :  { %7224 = vmatprep.subr.mxu1 %v7182_v12  ;;  %v7434_v12 = vld [vmem:[%s10910_s0 + $0x20] sm:$0xff] }
 0x8aa   :  { %7225 = vmatpush1.msra.mxu1 %v7181_v2  ;;  %v7436_v2 = vld [vmem:[%s10910_s0 + $0x30] sm:$0xff] }
 0x8ab   :  { %7226 = vmatprep.subr.mxu1 %v7178_v55 }
 0x8ac   :  { %7227 = vmatpush1.msra.mxu1 %v7177_v54 }
 0x965   :  { %v7167_v15 = vpop.f32.mrf.mxu1 }
 0x966   :  { %v7168_v0 = vadd.f32 %v8286_v33, %v7167_v15  ;;  %v7438_v33 = vld [vmem:[%s10910_s0 + $0x40] sm:$0xff]  ;;  %v7439_v15 = vld [vmem:[%s10910_s0 + $0x48] sm:$0xff] }
 0x967   :  { %v8384_v40 = vpop.f32.mrf.mxu1 }
 0x968   :  { %v8288_v62 = vmul.f32 -1.442695, %v7168_v0  ;;  %v10973_v0 = vld [vmem:[#allocation35_spill] sm:$0xff] }
 0x96a   :  { %9562 = vpow2.f32 %v8288_v62  ;;  %v10974_v62 = vld [vmem:[#allocation34_spill] sm:$0xff] }
 0x977   :  { %v9563_v13 = vpop.eup %9562 }
 0x978   :  { %v7174_v16 = vadd.f32 1.0, %v9563_v13 }
 0x97a   :  { %9564 = vrcp.f32 %v7174_v16  ;;  %v7440_v16 = vld [vmem:[%s10910_s0 + $0x50] sm:$0xff] }
 0x987   :  { %v9565_v20 = vpop.eup %9564 }
 0x988   :  { %8289 = vmatmul.mubr.msk.f32.vlgmr.msra.gmra.mxu1 %vm608_vm0, %v9565_v20  ;;  %8290 = vmatmul.mubr.msk.f32.vlgmr.msra.gmra.mxu0 %vm608_vm0, %v9565_v20  ;;  %v7441_v20 = vld [vmem:[%s10910_s0 + $0x58] sm:$0xff] }
 0xa48   :  { %v7262_v9 = vpop.f32.mrf.mxu1  ;;  %v7333_v63 = vpop.f32.mrf.mxu0 }
 0xa4a   :  { %v7264_v28 = vpop.f32.mrf.mxu1  ;;  %v7335_v23 = vpop.f32.mrf.mxu0 }
 0xa4b   :  { %v7342_v27 = vcombine.low %v7262_v9, %v7264_v28  ;;  %v7343_v3 = vcombine.low %v7333_v63, %v7335_v23 }
 0xa4d   :  { %v7350_v32 = vrot.slane %v7342_v27, %v7349_v5  ;;  %v7357_v56 = vrot.slane %v7343_v3, %v7349_v5 }
 0xa4f   :  { %v7358_v38 = vcombine.low %v7350_v32, %v7357_v56  ;;  %v7359_v25 = vcombine.high %v7350_v32, %v7357_v56 }
 0xa51   :  { %v7366_v44 = vrot.slane %v7358_v38, %v7349_v5  ;;  %v7373_v31 = vrot.slane %v7359_v25, %v7349_v5 }
 0xa53   :  { %v7377_v43 = vrot.slane %v7366_v44, %v10117_v26  ;;  %v7381_v53 = vrot.slane %v7366_v44, %v10122_v34  ;;  %v7385_v7 = vrot.slane %v7366_v44, %v10962_v22  ;;  %v7389_v11 = vrot.slane %v7366_v44, %v10966_v39 }
 0xa54   :  { %v7393_v41 = vrot.slane %v7373_v31, %v10117_v26  ;;  %v7397_v14 = vrot.slane %v7373_v31, %v10122_v34  ;;  %v7401_v6 = vrot.slane %v7373_v31, %v10962_v22  ;;  %v7405_v45 = vrot.slane %v7373_v31, %v10966_v39  ;;  %v7431_v26 = vld [vmem:[%s10910_s0 + $0x8] sm:$0xff]  ;;  %v7432_v34 = vld [vmem:[%s10910_s0 + $0x10] sm:$0xff]  ;;  %v7433_v22 = vld [vmem:[%s10910_s0 + $0x18] sm:$0xff] }
 0xa55   :  { %v7414_v59 = vmul.f32 %v7377_v43, %v10967_v8  ;;  %v7415_v17 = vmul.f32 %v7381_v53, %v10968_v46  ;;  %v7416_v24 = vmul.f32 %v7385_v7, %v10650_v50  ;;  %v7417_v61 = vmul.f32 %v7389_v11, %v10646_v57 }
 0xa56   :  { %v7418_v35 = vmul.f32 %v7377_v43, %v10969_v52  ;;  %v7419_v29 = vmul.f32 %v7381_v53, %v10970_v58  ;;  %v7420_v50 = vmul.f32 %v7385_v7, %v10643_v60  ;;  %v7421_v57 = vmul.f32 %v7389_v11, %v10640_v49 }
 0xa57   :  { %v7422_v55 = vmul.f32 %v7393_v41, %v10971_v21  ;;  %v7423_v54 = vmul.f32 %v7397_v14, %v10972_v37  ;;  %v7424_v60 = vmul.f32 %v7401_v6, %v10637_v10  ;;  %v7425_v49 = vmul.f32 %v7405_v45, %v10634_v51 }
 0xa58   :  { %v7426_v40 = vmul.f32 %v7393_v41, %v10973_v0  ;;  %v7427_v13 = vmul.f32 %v7397_v14, %v10974_v62  ;;  %v7428_v10 = vmul.f32 %v7401_v6, %v10632_v48  ;;  %v7429_v51 = vmul.f32 %v7405_v45, %v10629_v4  ;;  %v7444_v4 = vld [vmem:[%s10910_s0 + $0x70] sm:$0xff]  ;;  %v7445_v48 = vld [vmem:[%s10910_s0 + $0x78] sm:$0xff] }
 0xa59   :  { %v7446_v36 = vadd.f32 %v7430_v1, %v7414_v59  ;;  %v7447_v9 = vadd.f32 %v7431_v26, %v7415_v17  ;;  %v7448_v63 = vadd.f32 %v7432_v34, %v7416_v24  ;;  %v7449_v42 = vadd.f32 %v7433_v22, %v7417_v61 }
 0xa5a   :  { %v7450_v5 = vadd.f32 %v7434_v12, %v7418_v35  ;;  %v7451_v28 = vadd.f32 %v7435_v30, %v7419_v29  ;;  %v7452_v23 = vadd.f32 %v7436_v2, %v7420_v50  ;;  %v7453_v27 = vadd.f32 %v7437_v47, %v7421_v57 }
 0xa5b   :  { %v7454_v3 = vadd.f32 %v7438_v33, %v7422_v55  ;;  %v7455_v32 = vadd.f32 %v7439_v15, %v7423_v54  ;;  %v7456_v56 = vadd.f32 %v7440_v16, %v7424_v60  ;;  %v7457_v38 = vadd.f32 %v7441_v20, %v7425_v49  ;;  %7462 = vst [vmem:[%s10924_s14] sm:$0xff] %v7446_v36 }
 0xa5c   :  { %7463 = vst [vmem:[%s10924_s14 + $0x8] sm:$0xff] %v7447_v9  ;;  %7464 = vst [vmem:[%s10924_s14 + $0x10] sm:$0xff] %v7448_v63  ;;  %v7458_v25 = vadd.f32 %v7442_v18, %v7426_v40  ;;  %v7459_v44 = vadd.f32 %v7443_v19, %v7427_v13  ;;  %v7460_v31 = vadd.f32 %v7444_v4, %v7428_v10 }
 0xa5d   :  { %7465 = vst [vmem:[%s10924_s14 + $0x18] sm:$0xff] %v7449_v42  ;;  %v7461_v43 = vadd.f32 %v7445_v48, %v7429_v51  ;;  %7466 = vst [vmem:[%s10924_s14 + $0x20] sm:$0xff] %v7450_v5 }
 0xa5e   :  { %7467 = vst [vmem:[%s10924_s14 + $0x28] sm:$0xff] %v7451_v28  ;;  %7468 = vst [vmem:[%s10924_s14 + $0x30] sm:$0xff] %v7452_v23 }
 0xa5f   :  { %7469 = vst [vmem:[%s10924_s14 + $0x38] sm:$0xff] %v7453_v27  ;;  %7470 = vst [vmem:[%s10924_s14 + $0x40] sm:$0xff] %v7454_v3 }
 0xa60   :  { %7471 = vst [vmem:[%s10924_s14 + $0x48] sm:$0xff] %v7455_v32  ;;  %7472 = vst [vmem:[%s10924_s14 + $0x50] sm:$0xff] %v7456_v56 }
 0xa61   :  { %7473 = vst [vmem:[%s10924_s14 + $0x58] sm:$0xff] %v7457_v38  ;;  %7474 = vst [vmem:[%s10924_s14 + $0x60] sm:$0xff] %v7458_v25 }
 0xa62   :  { %7475 = vst [vmem:[%s10924_s14 + $0x68] sm:$0xff] %v7459_v44  ;;  %7476 = vst [vmem:[%s10924_s14 + $0x70] sm:$0xff] %v7460_v31 }
 0xa63   :  { %7477 = vst [vmem:[%s10924_s14 + $0x78] sm:$0xff] %v7461_v43 }
 0xa64   :  { %7482 = vsyncpa [#allocation5], 1 }
 0xa65   :  { %7483 = vsyncpa [#allocation7], 1 }
 0xa66   :  { %7484 = vsyncpa [#allocation10], 1 }
 0xa67   :  { %7485 = vsyncpa [#allocation13], 1 }
 0xa68   :  { %7486 = vsyncpa [#allocation16], 1 }
 0xa69   :  { %7487 = vsyncpa [#allocation19], 1 }
 0xa6a   :  { %7488 = vsyncmov [#allocation3] }
 0xa6d   :  { %s7489_s21 = vpop.sfrf %7488 }
 0xa6e   :  { %p8291_p13 = scmp.ne.s32.totalorder %s7489_s21, 0 }
 0xa70   :  { %7493 = shalt.err (%p8291_p13)  }

</bundles_post_ra>
